<compile_context>
chip_gen: v7x
topology: tpu7x:2x2x1
jax: 0.10.0
libtpu: 0.0.40
codegen_flags: <defaults>
</compile_context>

<pallas_src>
import jax
import jax.numpy as jnp
import numpy as np
from jax import lax
from jax.experimental import pallas as pl
from jax.experimental.pallas import tpu as pltpu

BN = 8  # samples per grid step in Kernel A (batch is padded to a multiple of this)


# ----------------------------------------------------------------------------- Kernel A
def conv_pool_kernel(xc_ref, w_ref, b_ref, o_ref):
    """xc_ref: (BN, 27, 1024)  im2col slab, lanes = phase*256 + pooled-spatial
       w_ref : (18, 27)        conv weight (branch-add x2 folded in), k = ci*9 + dh*3 + dw
       b_ref : (18, 1)         conv bias   (x2 folded in)
       o_ref : (BN, 18, 256)   pooled activations, channel-major (matches NCHW flatten)"""
    w = w_ref[...]                               # hoisted: single bulk weight load
    bias = b_ref[...]
    bn = o_ref.shape[0]
    for s in range(bn):                          # static unroll over samples in the block
        # one MXU matmul covering all 4 pooling phases for this sample
        y = jnp.dot(w, xc_ref[s], preferred_element_type=jnp.float32)       # (18, 1024)
        # 2x2 maxpool == max over the 4 phase lane-slices (256-lane aligned -> cheap VPU selects)
        m = jnp.maximum(jnp.maximum(y[:, 0:256], y[:, 256:512]),
                        jnp.maximum(y[:, 512:768], y[:, 768:1024]))         # (18, 256)
        # bias + relu after the pool (commutes with the max; 4x less elementwise work)
        o_ref[s] = jnp.maximum(m + bias, 0.0)


def conv_relu_pool(x_col, wt, bconv):
    n = x_col.shape[0]
    return pl.pallas_call(
        conv_pool_kernel,
        out_shape=jax.ShapeDtypeStruct((n, 18, 256), jnp.float32),
        grid=(n // BN,),
        in_specs=[
            pl.BlockSpec((BN, 27, 1024), lambda i: (i, 0, 0)),
            pl.BlockSpec((18, 27), lambda i: (0, 0)),
            pl.BlockSpec((18, 1), lambda i: (0, 0)),
        ],
        out_specs=pl.BlockSpec((BN, 18, 256), lambda i: (i, 0, 0)),
        compiler_params=pltpu.CompilerParams(dimension_semantics=("parallel",)),
    )(x_col, wt, bconv)


# ----------------------------------------------------------------------------- Kernel B
def mlp_kernel(x_ref, w1_ref, b1_ref, w2_ref, b2_ref, o_ref):
    """x: (TM,4608), w1: (4608,64), b1: (1,64), w2: (64,10), b2: (1,10) -> o: (TM,10)"""
    h = jnp.dot(x_ref[...], w1_ref[...], preferred_element_type=jnp.float32) + b1_ref[...]
    h = jnp.maximum(h, 0.0)
    o_ref[...] = jnp.dot(h, w2_ref[...], preferred_element_type=jnp.float32) + b2_ref[...]


def mlp(x_flat, w1, b1, w2, b2):
    n, k = x_flat.shape
    tm = next(t for t in (128, 64, 32, 16, 8) if n % t == 0)   # n is a multiple of BN=8
    return pl.pallas_call(
        mlp_kernel,
        out_shape=jax.ShapeDtypeStruct((n, 10), jnp.float32),
        grid=(n // tm,),
        in_specs=[
            pl.BlockSpec((tm, k), lambda i: (i, 0)),
            pl.BlockSpec((k, 64), lambda i: (0, 0)),    # constant block idx -> stays VMEM-resident
            pl.BlockSpec((1, 64), lambda i: (0, 0)),
            pl.BlockSpec((64, 10), lambda i: (0, 0)),
            pl.BlockSpec((1, 10), lambda i: (0, 0)),
        ],
        out_specs=pl.BlockSpec((tm, 10), lambda i: (i, 0)),
        compiler_params=pltpu.CompilerParams(dimension_semantics=("parallel",)),
    )(x_flat, w1, b1, w2, b2)


# ----------------------------------------------------------------------------- forward (glue + kernels)
@jax.jit
def forward(x_nchw, wc, bc, w1_pt, b1, w2_pt, b2):
    N = x_nchw.shape[0]
    npad = ((N + BN - 1) // BN) * BN
    # one pad op: batch -> multiple of BN, plus zero spatial padding for the 3x3 / pad-1 conv
    xpad = jnp.pad(x_nchw, ((0, npad - N), (0, 0), (1, 1), (1, 1)))       # (npad,3,34,34)

    # im2col, all 4 pooling phases packed on the lane axis:
    #   x_col[n, ci*9+dh*3+dw, (2a+b)*256 + 16*ho+wo] = xpad[n, ci, 2*ho + a + dh, 2*wo + b + dw]
    cols = []
    for a in range(2):
        for b in range(2):
            taps = []
            for ci in range(3):
                for dh in range(3):
                    for dw in range(3):
                        taps.append(
                            xpad[:, ci, a + dh:a + dh + 32:2, b + dw:b + dw + 32:2]
                            .reshape(npad, 256))
            cols.append(jnp.stack(taps, axis=1))                          # (npad,27,256)
    x_col = jnp.concatenate(cols, axis=-1)                                # (npad,27,1024)

    # fold the identical-branch add (pool(x) + pool(x) == 2*pool(x)) into conv weight & bias
    wt = (2.0 * wc).reshape(18, 27)                                       # (O, ci*9+dh*3+dw)
    bconv = (2.0 * bc).reshape(18, 1)

    pooled = conv_relu_pool(x_col, wt, bconv)                             # (npad,18,256)
    x_flat = pooled.reshape(npad, 18 * 256)   # free reshape; already torch NCHW flatten order

    out = mlp(x_flat, w1_pt.T, b1.reshape(1, 64), w2_pt.T, b2.reshape(1, 10))
    return out[:N]


# ----------------------------------------------------------------------------- pure-JAX reference
def reference(x, wc, bc, w1_pt, b1, w2_pt, b2):
    y = lax.conv_general_dilated(x, wc, (1, 1), ((1, 1), (1, 1)),
                                 dimension_numbers=('NCHW', 'OIHW', 'NCHW'))
    y = jax.nn.relu(y + bc.reshape(1, -1, 1, 1))
    p = lax.reduce_window(y, -jnp.inf, lax.max, (1, 1, 2, 2), (1, 1, 2, 2), 'VALID')
    xf = (p + p).reshape(x.shape[0], -1)
    h = jax.nn.relu(xf @ w1_pt.T + b1)
    return h @ w2_pt.T + b2


if __name__ == "__main__":
    key = jax.random.PRNGKey(0)
    ks = jax.random.split(key, 7)
    # input implied by fc1 = Linear(18*16*16, 64) and pool stride 2  ->  (N, 3, 32, 32)
    x = jax.random.normal(ks[0], (2, 3, 32, 32), jnp.float32)
    wc = jax.random.normal(ks[1], (18, 3, 3, 3), jnp.float32) * 0.10       # conv1.weight (O,I,Kh,Kw)
    bc = jax.random.normal(ks[2], (18,), jnp.float32) * 0.10               # conv1.bias
    w1 = jax.random.normal(ks[3], (64, 18 * 16 * 16), jnp.float32) * 0.02  # fc1.weight
    b1 = jax.random.normal(ks[4], (64,), jnp.float32) * 0.10               # fc1.bias
    w2 = jax.random.normal(ks[5], (10, 64), jnp.float32) * 0.05            # fc2.weight
    b2 = jax.random.normal(ks[6], (10,), jnp.float32) * 0.10               # fc2.bias

    out = forward(x, wc, bc, w1, b1, w2, b2)
    out = jax.block_until_ready(out)

    ref = reference(x, wc, bc, w1, b1, w2, b2)
    assert out.shape == (2, 10) and out.dtype == jnp.float32
    assert np.allclose(np.asarray(out), np.asarray(ref), rtol=1e-3, atol=1e-3), "mismatch vs reference"
    print("KERNEL_OK")
</pallas_src>

<mosaic_0001>
module attributes {stable_mosaic.version = 11 : i64} {
  func.func @conv_pool_kernel(%arg0: i32, %arg1: memref<8x27x1024xf32, #tpu.memory_space<vmem>>, %arg2: memref<18x27xf32, #tpu.memory_space<vmem>>, %arg3: memref<18x1xf32, #tpu.memory_space<vmem>>, %arg4: memref<8x18x256xf32, #tpu.memory_space<vmem>>) attributes {dimension_semantics = [#tpu.dimension_semantics<parallel>], iteration_bounds = array<i64: 1>, scalar_prefetch = 0 : i64, scratch_operands = 0 : i64, tpu.core_type = #tpu.core_type<tc>, window_params = [{transform_indices = @transform_0, window_bounds = array<i64: 8, 27, 1024>}, {pipeline_mode = #tpu.pipeline_mode<synchronous>, transform_indices = @transform_1, window_bounds = array<i64: 18, 27>}, {pipeline_mode = #tpu.pipeline_mode<synchronous>, transform_indices = @transform_2, window_bounds = array<i64: 18, 1>}, {transform_indices = @transform_3, window_bounds = array<i64: 8, 18, 256>}]} {
    %c0 = arith.constant 0 : index
    %c0_0 = arith.constant 0 : index
    %0 = vector.load %arg2[%c0, %c0_0] : memref<18x27xf32, #tpu.memory_space<vmem>>, vector<18x27xf32>
    %c0_1 = arith.constant 0 : index
    %c0_2 = arith.constant 0 : index
    %1 = vector.load %arg3[%c0_1, %c0_2] : memref<18x1xf32, #tpu.memory_space<vmem>>, vector<18x1xf32>
    %c0_3 = arith.constant 0 : index
    %c0_4 = arith.constant 0 : index
    %c0_5 = arith.constant 0 : index
    %2 = vector.load %arg1[%c0_3, %c0_4, %c0_5] : memref<8x27x1024xf32, #tpu.memory_space<vmem>>, vector<1x27x1024xf32>
    %3 = vector.shape_cast %2 : vector<1x27x1024xf32> to vector<27x1024xf32>
    %cst = arith.constant dense<0.000000e+00> : vector<18x1024xf32>
    %4 = tpu.matmul %0, %3, %cst {dimension_numbers = #tpu.dot_dimension_numbers<[1], [0], [0], [1], [0, 0, 1, 1], [], []>} : vector<18x27xf32>, vector<27x1024xf32>, vector<18x1024xf32> -> vector<18x1024xf32>
    %5 = vector.extract_strided_slice %4 {offsets = [0, 0], sizes = [18, 256], strides = [1, 1]} : vector<18x1024xf32> to vector<18x256xf32>
    %6 = vector.extract_strided_slice %4 {offsets = [0, 256], sizes = [18, 256], strides = [1, 1]} : vector<18x1024xf32> to vector<18x256xf32>
    %7 = arith.maximumf %5, %6 : vector<18x256xf32>
    %8 = vector.extract_strided_slice %4 {offsets = [0, 512], sizes = [18, 256], strides = [1, 1]} : vector<18x1024xf32> to vector<18x256xf32>
    %9 = vector.extract_strided_slice %4 {offsets = [0, 768], sizes = [18, 256], strides = [1, 1]} : vector<18x1024xf32> to vector<18x256xf32>
    %10 = arith.maximumf %8, %9 : vector<18x256xf32>
    %11 = arith.maximumf %7, %10 : vector<18x256xf32>
    %12 = vector.broadcast %1 : vector<18x1xf32> to vector<18x256xf32>
    %13 = arith.addf %11, %12 : vector<18x256xf32>
    %cst_6 = arith.constant 0.000000e+00 : f32
    %14 = vector.broadcast %cst_6 : f32 to vector<18x256xf32>
    %15 = arith.maximumf %13, %14 : vector<18x256xf32>
    %c0_7 = arith.constant 0 : index
    %c0_8 = arith.constant 0 : index
    %c0_9 = arith.constant 0 : index
    %16 = vector.load %arg4[%c0_7, %c0_8, %c0_9] : memref<8x18x256xf32, #tpu.memory_space<vmem>>, vector<1x18x256xf32>
    %17 = vector.shape_cast %16 : vector<1x18x256xf32> to vector<18x256xf32>
    %18 = vector.shape_cast %15 : vector<18x256xf32> to vector<1x18x256xf32>
    tpu.vector_store %arg4[%c0_7, %c0_8, %c0_9], %18 {strides = array<i32>} : memref<8x18x256xf32, #tpu.memory_space<vmem>>, vector<1x18x256xf32>,
    %c1 = arith.constant 1 : index
    %c0_10 = arith.constant 0 : index
    %c0_11 = arith.constant 0 : index
    %19 = vector.load %arg1[%c1, %c0_10, %c0_11] : memref<8x27x1024xf32, #tpu.memory_space<vmem>>, vector<1x27x1024xf32>
    %20 = vector.shape_cast %19 : vector<1x27x1024xf32> to vector<27x1024xf32>
    %cst_12 = arith.constant dense<0.000000e+00> : vector<18x1024xf32>
    %21 = tpu.matmul %0, %20, %cst_12 {dimension_numbers = #tpu.dot_dimension_numbers<[1], [0], [0], [1], [0, 0, 1, 1], [], []>} : vector<18x27xf32>, vector<27x1024xf32>, vector<18x1024xf32> -> vector<18x1024xf32>
    %22 = vector.extract_strided_slice %21 {offsets = [0, 0], sizes = [18, 256], strides = [1, 1]} : vector<18x1024xf32> to vector<18x256xf32>
    %23 = vector.extract_strided_slice %21 {offsets = [0, 256], sizes = [18, 256], strides = [1, 1]} : vector<18x1024xf32> to vector<18x256xf32>
    %24 = arith.maximumf %22, %23 : vector<18x256xf32>
    %25 = vector.extract_strided_slice %21 {offsets = [0, 512], sizes = [18, 256], strides = [1, 1]} : vector<18x1024xf32> to vector<18x256xf32>
    %26 = vector.extract_strided_slice %21 {offsets = [0, 768], sizes = [18, 256], strides = [1, 1]} : vector<18x1024xf32> to vector<18x256xf32>
    %27 = arith.maximumf %25, %26 : vector<18x256xf32>
    %28 = arith.maximumf %24, %27 : vector<18x256xf32>
    %29 = vector.broadcast %1 : vector<18x1xf32> to vector<18x256xf32>
    %30 = arith.addf %28, %29 : vector<18x256xf32>
    %cst_13 = arith.constant 0.000000e+00 : f32
    %31 = vector.broadcast %cst_13 : f32 to vector<18x256xf32>
    %32 = arith.maximumf %30, %31 : vector<18x256xf32>
    %c1_14 = arith.constant 1 : index
    %c0_15 = arith.constant 0 : index
    %c0_16 = arith.constant 0 : index
    %33 = vector.load %arg4[%c1_14, %c0_15, %c0_16] : memref<8x18x256xf32, #tpu.memory_space<vmem>>, vector<1x18x256xf32>
    %34 = vector.shape_cast %33 : vector<1x18x256xf32> to vector<18x256xf32>
    %35 = vector.shape_cast %32 : vector<18x256xf32> to vector<1x18x256xf32>
    tpu.vector_store %arg4[%c1_14, %c0_15, %c0_16], %35 {strides = array<i32>} : memref<8x18x256xf32, #tpu.memory_space<vmem>>, vector<1x18x256xf32>,
    %c2 = arith.constant 2 : index
    %c0_17 = arith.constant 0 : index
    %c0_18 = arith.constant 0 : index
    %36 = vector.load %arg1[%c2, %c0_17, %c0_18] : memref<8x27x1024xf32, #tpu.memory_space<vmem>>, vector<1x27x1024xf32>
    %37 = vector.shape_cast %36 : vector<1x27x1024xf32> to vector<27x1024xf32>
    %cst_19 = arith.constant dense<0.000000e+00> : vector<18x1024xf32>
    %38 = tpu.matmul %0, %37, %cst_19 {dimension_numbers = #tpu.dot_dimension_numbers<[1], [0], [0], [1], [0, 0, 1, 1], [], []>} : vector<18x27xf32>, vector<27x1024xf32>, vector<18x1024xf32> -> vector<18x1024xf32>
    %39 = vector.extract_strided_slice %38 {offsets = [0, 0], sizes = [18, 256], strides = [1, 1]} : vector<18x1024xf32> to vector<18x256xf32>
    %40 = vector.extract_strided_slice %38 {offsets = [0, 256], sizes = [18, 256], strides = [1, 1]} : vector<18x1024xf32> to vector<18x256xf32>
    %41 = arith.maximumf %39, %40 : vector<18x256xf32>
    %42 = vector.extract_strided_slice %38 {offsets = [0, 512], sizes = [18, 256], strides = [1, 1]} : vector<18x1024xf32> to vector<18x256xf32>
    %43 = vector.extract_strided_slice %38 {offsets = [0, 768], sizes = [18, 256], strides = [1, 1]} : vector<18x1024xf32> to vector<18x256xf32>
    %44 = arith.maximumf %42, %43 : vector<18x256xf32>
    %45 = arith.maximumf %41, %44 : vector<18x256xf32>
    %46 = vector.broadcast %1 : vector<18x1xf32> to vector<18x256xf32>
    %47 = arith.addf %45, %46 : vector<18x256xf32>
    %cst_20 = arith.constant 0.000000e+00 : f32
    %48 = vector.broadcast %cst_20 : f32 to vector<18x256xf32>
    %49 = arith.maximumf %47, %48 : vector<18x256xf32>
    %c2_21 = arith.constant 2 : index
    %c0_22 = arith.constant 0 : index
    %c0_23 = arith.constant 0 : index
    %50 = vector.load %arg4[%c2_21, %c0_22, %c0_23] : memref<8x18x256xf32, #tpu.memory_space<vmem>>, vector<1x18x256xf32>
    %51 = vector.shape_cast %50 : vector<1x18x256xf32> to vector<18x256xf32>
    %52 = vector.shape_cast %49 : vector<18x256xf32> to vector<1x18x256xf32>
    tpu.vector_store %arg4[%c2_21, %c0_22, %c0_23], %52 {strides = array<i32>} : memref<8x18x256xf32, #tpu.memory_space<vmem>>, vector<1x18x256xf32>,
    %c3 = arith.constant 3 : index
    %c0_24 = arith.constant 0 : index
    %c0_25 = arith.constant 0 : index
    %53 = vector.load %arg1[%c3, %c0_24, %c0_25] : memref<8x27x1024xf32, #tpu.memory_space<vmem>>, vector<1x27x1024xf32>
    %54 = vector.shape_cast %53 : vector<1x27x1024xf32> to vector<27x1024xf32>
    %cst_26 = arith.constant dense<0.000000e+00> : vector<18x1024xf32>
    %55 = tpu.matmul %0, %54, %cst_26 {dimension_numbers = #tpu.dot_dimension_numbers<[1], [0], [0], [1], [0, 0, 1, 1], [], []>} : vector<18x27xf32>, vector<27x1024xf32>, vector<18x1024xf32> -> vector<18x1024xf32>
    %56 = vector.extract_strided_slice %55 {offsets = [0, 0], sizes = [18, 256], strides = [1, 1]} : vector<18x1024xf32> to vector<18x256xf32>
    %57 = vector.extract_strided_slice %55 {offsets = [0, 256], sizes = [18, 256], strides = [1, 1]} : vector<18x1024xf32> to vector<18x256xf32>
    %58 = arith.maximumf %56, %57 : vector<18x256xf32>
    %59 = vector.extract_strided_slice %55 {offsets = [0, 512], sizes = [18, 256], strides = [1, 1]} : vector<18x1024xf32> to vector<18x256xf32>
    %60 = vector.extract_strided_slice %55 {offsets = [0, 768], sizes = [18, 256], strides = [1, 1]} : vector<18x1024xf32> to vector<18x256xf32>
    %61 = arith.maximumf %59, %60 : vector<18x256xf32>
    %62 = arith.maximumf %58, %61 : vector<18x256xf32>
    %63 = vector.broadcast %1 : vector<18x1xf32> to vector<18x256xf32>
    %64 = arith.addf %62, %63 : vector<18x256xf32>
    %cst_27 = arith.constant 0.000000e+00 : f32
    %65 = vector.broadcast %cst_27 : f32 to vector<18x256xf32>
    %66 = arith.maximumf %64, %65 : vector<18x256xf32>
    %c3_28 = arith.constant 3 : index
    %c0_29 = arith.constant 0 : index
    %c0_30 = arith.constant 0 : index
    %67 = vector.load %arg4[%c3_28, %c0_29, %c0_30] : memref<8x18x256xf32, #tpu.memory_space<vmem>>, vector<1x18x256xf32>
    %68 = vector.shape_cast %67 : vector<1x18x256xf32> to vector<18x256xf32>
    %69 = vector.shape_cast %66 : vector<18x256xf32> to vector<1x18x256xf32>
    tpu.vector_store %arg4[%c3_28, %c0_29, %c0_30], %69 {strides = array<i32>} : memref<8x18x256xf32, #tpu.memory_space<vmem>>, vector<1x18x256xf32>,
    %c4 = arith.constant 4 : index
    %c0_31 = arith.constant 0 : index
    %c0_32 = arith.constant 0 : index
    %70 = vector.load %arg1[%c4, %c0_31, %c0_32] : memref<8x27x1024xf32, #tpu.memory_space<vmem>>, vector<1x27x1024xf32>
    %71 = vector.shape_cast %70 : vector<1x27x1024xf32> to vector<27x1024xf32>
    %cst_33 = arith.constant dense<0.000000e+00> : vector<18x1024xf32>
    %72 = tpu.matmul %0, %71, %cst_33 {dimension_numbers = #tpu.dot_dimension_numbers<[1], [0], [0], [1], [0, 0, 1, 1], [], []>} : vector<18x27xf32>, vector<27x1024xf32>, vector<18x1024xf32> -> vector<18x1024xf32>
    %73 = vector.extract_strided_slice %72 {offsets = [0, 0], sizes = [18, 256], strides = [1, 1]} : vector<18x1024xf32> to vector<18x256xf32>
    %74 = vector.extract_strided_slice %72 {offsets = [0, 256], sizes = [18, 256], strides = [1, 1]} : vector<18x1024xf32> to vector<18x256xf32>
    %75 = arith.maximumf %73, %74 : vector<18x256xf32>
    %76 = vector.extract_strided_slice %72 {offsets = [0, 512], sizes = [18, 256], strides = [1, 1]} : vector<18x1024xf32> to vector<18x256xf32>
    %77 = vector.extract_strided_slice %72 {offsets = [0, 768], sizes = [18, 256], strides = [1, 1]} : vector<18x1024xf32> to vector<18x256xf32>
    %78 = arith.maximumf %76, %77 : vector<18x256xf32>
    %79 = arith.maximumf %75, %78 : vector<18x256xf32>
    %80 = vector.broadcast %1 : vector<18x1xf32> to vector<18x256xf32>
    %81 = arith.addf %79, %80 : vector<18x256xf32>
    %cst_34 = arith.constant 0.000000e+00 : f32
    %82 = vector.broadcast %cst_34 : f32 to vector<18x256xf32>
    %83 = arith.maximumf %81, %82 : vector<18x256xf32>
    %c4_35 = arith.constant 4 : index
    %c0_36 = arith.constant 0 : index
    %c0_37 = arith.constant 0 : index
    %84 = vector.load %arg4[%c4_35, %c0_36, %c0_37] : memref<8x18x256xf32, #tpu.memory_space<vmem>>, vector<1x18x256xf32>
    %85 = vector.shape_cast %84 : vector<1x18x256xf32> to vector<18x256xf32>
    %86 = vector.shape_cast %83 : vector<18x256xf32> to vector<1x18x256xf32>
    tpu.vector_store %arg4[%c4_35, %c0_36, %c0_37], %86 {strides = array<i32>} : memref<8x18x256xf32, #tpu.memory_space<vmem>>, vector<1x18x256xf32>,
    %c5 = arith.constant 5 : index
    %c0_38 = arith.constant 0 : index
    %c0_39 = arith.constant 0 : index
    %87 = vector.load %arg1[%c5, %c0_38, %c0_39] : memref<8x27x1024xf32, #tpu.memory_space<vmem>>, vector<1x27x1024xf32>
    %88 = vector.shape_cast %87 : vector<1x27x1024xf32> to vector<27x1024xf32>
    %cst_40 = arith.constant dense<0.000000e+00> : vector<18x1024xf32>
    %89 = tpu.matmul %0, %88, %cst_40 {dimension_numbers = #tpu.dot_dimension_numbers<[1], [0], [0], [1], [0, 0, 1, 1], [], []>} : vector<18x27xf32>, vector<27x1024xf32>, vector<18x1024xf32> -> vector<18x1024xf32>
    %90 = vector.extract_strided_slice %89 {offsets = [0, 0], sizes = [18, 256], strides = [1, 1]} : vector<18x1024xf32> to vector<18x256xf32>
    %91 = vector.extract_strided_slice %89 {offsets = [0, 256], sizes = [18, 256], strides = [1, 1]} : vector<18x1024xf32> to vector<18x256xf32>
    %92 = arith.maximumf %90, %91 : vector<18x256xf32>
    %93 = vector.extract_strided_slice %89 {offsets = [0, 512], sizes = [18, 256], strides = [1, 1]} : vector<18x1024xf32> to vector<18x256xf32>
    %94 = vector.extract_strided_slice %89 {offsets = [0, 768], sizes = [18, 256], strides = [1, 1]} : vector<18x1024xf32> to vector<18x256xf32>
    %95 = arith.maximumf %93, %94 : vector<18x256xf32>
    %96 = arith.maximumf %92, %95 : vector<18x256xf32>
    %97 = vector.broadcast %1 : vector<18x1xf32> to vector<18x256xf32>
    %98 = arith.addf %96, %97 : vector<18x256xf32>
    %cst_41 = arith.constant 0.000000e+00 : f32
    %99 = vector.broadcast %cst_41 : f32 to vector<18x256xf32>
    %100 = arith.maximumf %98, %99 : vector<18x256xf32>
    %c5_42 = arith.constant 5 : index
    %c0_43 = arith.constant 0 : index
    %c0_44 = arith.constant 0 : index
    %101 = vector.load %arg4[%c5_42, %c0_43, %c0_44] : memref<8x18x256xf32, #tpu.memory_space<vmem>>, vector<1x18x256xf32>
    %102 = vector.shape_cast %101 : vector<1x18x256xf32> to vector<18x256xf32>
    %103 = vector.shape_cast %100 : vector<18x256xf32> to vector<1x18x256xf32>
    tpu.vector_store %arg4[%c5_42, %c0_43, %c0_44], %103 {strides = array<i32>} : memref<8x18x256xf32, #tpu.memory_space<vmem>>, vector<1x18x256xf32>,
    %c6 = arith.constant 6 : index
    %c0_45 = arith.constant 0 : index
    %c0_46 = arith.constant 0 : index
    %104 = vector.load %arg1[%c6, %c0_45, %c0_46] : memref<8x27x1024xf32, #tpu.memory_space<vmem>>, vector<1x27x1024xf32>
    %105 = vector.shape_cast %104 : vector<1x27x1024xf32> to vector<27x1024xf32>
    %cst_47 = arith.constant dense<0.000000e+00> : vector<18x1024xf32>
    %106 = tpu.matmul %0, %105, %cst_47 {dimension_numbers = #tpu.dot_dimension_numbers<[1], [0], [0], [1], [0, 0, 1, 1], [], []>} : vector<18x27xf32>, vector<27x1024xf32>, vector<18x1024xf32> -> vector<18x1024xf32>
    %107 = vector.extract_strided_slice %106 {offsets = [0, 0], sizes = [18, 256], strides = [1, 1]} : vector<18x1024xf32> to vector<18x256xf32>
    %108 = vector.extract_strided_slice %106 {offsets = [0, 256], sizes = [18, 256], strides = [1, 1]} : vector<18x1024xf32> to vector<18x256xf32>
    %109 = arith.maximumf %107, %108 : vector<18x256xf32>
    %110 = vector.extract_strided_slice %106 {offsets = [0, 512], sizes = [18, 256], strides = [1, 1]} : vector<18x1024xf32> to vector<18x256xf32>
    %111 = vector.extract_strided_slice %106 {offsets = [0, 768], sizes = [18, 256], strides = [1, 1]} : vector<18x1024xf32> to vector<18x256xf32>
    %112 = arith.maximumf %110, %111 : vector<18x256xf32>
    %113 = arith.maximumf %109, %112 : vector<18x256xf32>
    %114 = vector.broadcast %1 : vector<18x1xf32> to vector<18x256xf32>
    %115 = arith.addf %113, %114 : vector<18x256xf32>
    %cst_48 = arith.constant 0.000000e+00 : f32
    %116 = vector.broadcast %cst_48 : f32 to vector<18x256xf32>
    %117 = arith.maximumf %115, %116 : vector<18x256xf32>
    %c6_49 = arith.constant 6 : index
    %c0_50 = arith.constant 0 : index
    %c0_51 = arith.constant 0 : index
    %118 = vector.load %arg4[%c6_49, %c0_50, %c0_51] : memref<8x18x256xf32, #tpu.memory_space<vmem>>, vector<1x18x256xf32>
    %119 = vector.shape_cast %118 : vector<1x18x256xf32> to vector<18x256xf32>
    %120 = vector.shape_cast %117 : vector<18x256xf32> to vector<1x18x256xf32>
    tpu.vector_store %arg4[%c6_49, %c0_50, %c0_51], %120 {strides = array<i32>} : memref<8x18x256xf32, #tpu.memory_space<vmem>>, vector<1x18x256xf32>,
    %c7 = arith.constant 7 : index
    %c0_52 = arith.constant 0 : index
    %c0_53 = arith.constant 0 : index
    %121 = vector.load %arg1[%c7, %c0_52, %c0_53] : memref<8x27x1024xf32, #tpu.memory_space<vmem>>, vector<1x27x1024xf32>
    %122 = vector.shape_cast %121 : vector<1x27x1024xf32> to vector<27x1024xf32>
    %cst_54 = arith.constant dense<0.000000e+00> : vector<18x1024xf32>
    %123 = tpu.matmul %0, %122, %cst_54 {dimension_numbers = #tpu.dot_dimension_numbers<[1], [0], [0], [1], [0, 0, 1, 1], [], []>} : vector<18x27xf32>, vector<27x1024xf32>, vector<18x1024xf32> -> vector<18x1024xf32>
    %124 = vector.extract_strided_slice %123 {offsets = [0, 0], sizes = [18, 256], strides = [1, 1]} : vector<18x1024xf32> to vector<18x256xf32>
    %125 = vector.extract_strided_slice %123 {offsets = [0, 256], sizes = [18, 256], strides = [1, 1]} : vector<18x1024xf32> to vector<18x256xf32>
    %126 = arith.maximumf %124, %125 : vector<18x256xf32>
    %127 = vector.extract_strided_slice %123 {offsets = [0, 512], sizes = [18, 256], strides = [1, 1]} : vector<18x1024xf32> to vector<18x256xf32>
    %128 = vector.extract_strided_slice %123 {offsets = [0, 768], sizes = [18, 256], strides = [1, 1]} : vector<18x1024xf32> to vector<18x256xf32>
    %129 = arith.maximumf %127, %128 : vector<18x256xf32>
    %130 = arith.maximumf %126, %129 : vector<18x256xf32>
    %131 = vector.broadcast %1 : vector<18x1xf32> to vector<18x256xf32>
    %132 = arith.addf %130, %131 : vector<18x256xf32>
    %cst_55 = arith.constant 0.000000e+00 : f32
    %133 = vector.broadcast %cst_55 : f32 to vector<18x256xf32>
    %134 = arith.maximumf %132, %133 : vector<18x256xf32>
    %c7_56 = arith.constant 7 : index
    %c0_57 = arith.constant 0 : index
    %c0_58 = arith.constant 0 : index
    %135 = vector.load %arg4[%c7_56, %c0_57, %c0_58] : memref<8x18x256xf32, #tpu.memory_space<vmem>>, vector<1x18x256xf32>
    %136 = vector.shape_cast %135 : vector<1x18x256xf32> to vector<18x256xf32>
    %137 = vector.shape_cast %134 : vector<18x256xf32> to vector<1x18x256xf32>
    tpu.vector_store %arg4[%c7_56, %c0_57, %c0_58], %137 {strides = array<i32>} : memref<8x18x256xf32, #tpu.memory_space<vmem>>, vector<1x18x256xf32>,
    return
  }
  func.func @transform_0(%arg0: i32) -> (i32, i32, i32) {
    %c0_i32 = arith.constant 0 : i32
    %c0_i32_0 = arith.constant 0 : i32
    %c0_i32_1 = arith.constant 0 : i32
    return %arg0, %c0_i32, %c0_i32_0 : i32, i32, i32
  }
  func.func @transform_1(%arg0: i32) -> (i32, i32) {
    %c0_i32 = arith.constant 0 : i32
    %c0_i32_0 = arith.constant 0 : i32
    %c0_i32_1 = arith.constant 0 : i32
    return %c0_i32, %c0_i32_0 : i32, i32
  }
  func.func @transform_2(%arg0: i32) -> (i32, i32) {
    %c0_i32 = arith.constant 0 : i32
    %c0_i32_0 = arith.constant 0 : i32
    %c0_i32_1 = arith.constant 0 : i32
    return %c0_i32, %c0_i32_0 : i32, i32
  }
  func.func @transform_3(%arg0: i32) -> (i32, i32, i32) {
    %c0_i32 = arith.constant 0 : i32
    %c0_i32_0 = arith.constant 0 : i32
    %c0_i32_1 = arith.constant 0 : i32
    return %arg0, %c0_i32, %c0_i32_0 : i32, i32, i32
  }
}

module attributes {stable_mosaic.version = 11 : i64} {
  func.func @mlp_kernel(%arg0: i32, %arg1: memref<8x4608xf32, #tpu.memory_space<vmem>>, %arg2: memref<4608x64xf32, #tpu.memory_space<vmem>>, %arg3: memref<1x64xf32, #tpu.memory_space<vmem>>, %arg4: memref<64x10xf32, #tpu.memory_space<vmem>>, %arg5: memref<1x10xf32, #tpu.memory_space<vmem>>, %arg6: memref<8x10xf32, #tpu.memory_space<vmem>>) attributes {dimension_semantics = [#tpu.dimension_semantics<parallel>], iteration_bounds = array<i64: 1>, scalar_prefetch = 0 : i64, scratch_operands = 0 : i64, tpu.core_type = #tpu.core_type<tc>, window_params = [{transform_indices = @transform_0, window_bounds = array<i64: 8, 4608>}, {pipeline_mode = #tpu.pipeline_mode<synchronous>, transform_indices = @transform_1, window_bounds = array<i64: 4608, 64>}, {pipeline_mode = #tpu.pipeline_mode<synchronous>, transform_indices = @transform_2, window_bounds = array<i64: 1, 64>}, {pipeline_mode = #tpu.pipeline_mode<synchronous>, transform_indices = @transform_3, window_bounds = array<i64: 64, 10>}, {pipeline_mode = #tpu.pipeline_mode<synchronous>, transform_indices = @transform_4, window_bounds = array<i64: 1, 10>}, {transform_indices = @transform_5, window_bounds = array<i64: 8, 10>}]} {
    %c0 = arith.constant 0 : index
    %c0_0 = arith.constant 0 : index
    %0 = vector.load %arg1[%c0, %c0_0] : memref<8x4608xf32, #tpu.memory_space<vmem>>, vector<8x4608xf32>
    %c0_1 = arith.constant 0 : index
    %c0_2 = arith.constant 0 : index
    %1 = vector.load %arg2[%c0_1, %c0_2] : memref<4608x64xf32, #tpu.memory_space<vmem>>, vector<4608x64xf32>
    %cst = arith.constant dense<0.000000e+00> : vector<8x64xf32>
    %2 = tpu.matmul %0, %1, %cst {dimension_numbers = #tpu.dot_dimension_numbers<[1], [0], [0], [1], [0, 0, 1, 1], [], []>} : vector<8x4608xf32>, vector<4608x64xf32>, vector<8x64xf32> -> vector<8x64xf32>
    %c0_3 = arith.constant 0 : index
    %c0_4 = arith.constant 0 : index
    %3 = vector.load %arg3[%c0_3, %c0_4] : memref<1x64xf32, #tpu.memory_space<vmem>>, vector<1x64xf32>
    %4 = vector.broadcast %3 : vector<1x64xf32> to vector<8x64xf32>
    %5 = arith.addf %2, %4 : vector<8x64xf32>
    %cst_5 = arith.constant 0.000000e+00 : f32
    %6 = vector.broadcast %cst_5 : f32 to vector<8x64xf32>
    %7 = arith.maximumf %5, %6 : vector<8x64xf32>
    %c0_6 = arith.constant 0 : index
    %c0_7 = arith.constant 0 : index
    %8 = vector.load %arg4[%c0_6, %c0_7] : memref<64x10xf32, #tpu.memory_space<vmem>>, vector<64x10xf32>
    %cst_8 = arith.constant dense<0.000000e+00> : vector<8x10xf32>
    %9 = tpu.matmul %7, %8, %cst_8 {dimension_numbers = #tpu.dot_dimension_numbers<[1], [0], [0], [1], [0, 0, 1, 1], [], []>} : vector<8x64xf32>, vector<64x10xf32>, vector<8x10xf32> -> vector<8x10xf32>
    %c0_9 = arith.constant 0 : index
    %c0_10 = arith.constant 0 : index
    %10 = vector.load %arg5[%c0_9, %c0_10] : memref<1x10xf32, #tpu.memory_space<vmem>>, vector<1x10xf32>
    %11 = vector.broadcast %10 : vector<1x10xf32> to vector<8x10xf32>
    %12 = arith.addf %9, %11 : vector<8x10xf32>
    %c0_11 = arith.constant 0 : index
    %c0_12 = arith.constant 0 : index
    %13 = vector.load %arg6[%c0_11, %c0_12] : memref<8x10xf32, #tpu.memory_space<vmem>>, vector<8x10xf32>
    tpu.vector_store %arg6[%c0_11, %c0_12], %12 {strides = array<i32>} : memref<8x10xf32, #tpu.memory_space<vmem>>, vector<8x10xf32>,
    return
  }
  func.func @transform_0(%arg0: i32) -> (i32, i32) {
    %c0_i32 = arith.constant 0 : i32
    %c0_i32_0 = arith.constant 0 : i32
    return %arg0, %c0_i32 : i32, i32
  }
  func.func @transform_1(%arg0: i32) -> (i32, i32) {
    %c0_i32 = arith.constant 0 : i32
    %c0_i32_0 = arith.constant 0 : i32
    %c0_i32_1 = arith.constant 0 : i32
    return %c0_i32, %c0_i32_0 : i32, i32
  }
  func.func @transform_2(%arg0: i32) -> (i32, i32) {
    %c0_i32 = arith.constant 0 : i32
    %c0_i32_0 = arith.constant 0 : i32
    %c0_i32_1 = arith.constant 0 : i32
    return %c0_i32, %c0_i32_0 : i32, i32
  }
  func.func @transform_3(%arg0: i32) -> (i32, i32) {
    %c0_i32 = arith.constant 0 : i32
    %c0_i32_0 = arith.constant 0 : i32
    %c0_i32_1 = arith.constant 0 : i32
    return %c0_i32, %c0_i32_0 : i32, i32
  }
  func.func @transform_4(%arg0: i32) -> (i32, i32) {
    %c0_i32 = arith.constant 0 : i32
    %c0_i32_0 = arith.constant 0 : i32
    %c0_i32_1 = arith.constant 0 : i32
    return %c0_i32, %c0_i32_0 : i32, i32
  }
  func.func @transform_5(%arg0: i32) -> (i32, i32) {
    %c0_i32 = arith.constant 0 : i32
    %c0_i32_0 = arith.constant 0 : i32
    return %arg0, %c0_i32 : i32, i32
  }
}

</mosaic_0001>

<bundles_post_ra>
// kernel: squeeze.155
= control target key start
LH: loop header
LB: loop body
LE: loop exit
PB: predicated region body
PF: predicated region fallthrough
CT: control target
= control target key end

     0   :  { %vm4_vm0 = vcmask 1047556   ;;  %s349_s16 = smov 96   ;;  %s350_s21 = smov 112   ;;  %vm6_vm1 = vcmask 130048   ;;  %vm28_vm2 = vcmask 1048448   ;;  %vm52_vm3 = vcmask 917248   ;;  %s530_s0 = inlined_call_operand.vmem [shape: f32[8,1,16,16], index: 0, kind: input, shape index: {}]   ;;  %s531_s1 = inlined_call_operand.vmem [shape: f32[8,1,256], index: 1, kind: output, shape index: {}]  }
   0x1   :  { %v303_v0 = vld [vmem:[%s530_s0 + $0x6] ss:$8 sm:$0xf]   ;;  %v299_v2 = vld [vmem:[%s530_s0 + $0x7] ss:$8 sm:$0xf]  }
   0x2   :  { %v304_v1 = vld [vmem:[%s530_s0 + $0x6] ss:$8 sm:$0xf0]   ;;  %v300_v4 = vld [vmem:[%s530_s0 + $0x7] ss:$8 sm:$0xf0]  }
   0x3   :  { %v49_v3 = vsel %vm4_vm0, %v304_v1, %v303_v0  ;;  %v305_v5 = vld [vmem:[%s530_s0 + $0x46] ss:$8 sm:$0xf]   ;;  %v25_v6 = vsel %vm4_vm0, %v300_v4, %v299_v2  ;;  %v301_v8 = vld [vmem:[%s530_s0 + $0x47] ss:$8 sm:$0xf]  }
   0x4   :  { %50 = vrot.lane.b32.xlu1 %v49_v3, %s349_s16  ;;  %v306_v7 = vld [vmem:[%s530_s0 + $0x46] ss:$8 sm:$0xf0]   ;;  %26 = vrot.lane.b32.xlu0 %v25_v6, %s350_s21  ;;  %v302_v10 = vld [vmem:[%s530_s0 + $0x47] ss:$8 sm:$0xf0]  }
   0x5   :  { %v60_v9 = vsel %vm4_vm0, %v306_v7, %v305_v5  ;;  %v36_v11 = vsel %vm4_vm0, %v302_v10, %v301_v8  ;;  %v309_v12 = vld [vmem:[%s530_s0 + $0x45] ss:$8 sm:$0xf]   ;;  %v313_v18 = vld [vmem:[%s530_s0 + $0x44] ss:$8 sm:$0xf]  }
   0x6   :  { %v310_v13 = vld [vmem:[%s530_s0 + $0x45] ss:$8 sm:$0xf0]   ;;  %v314_v19 = vld [vmem:[%s530_s0 + $0x44] ss:$8 sm:$0xf0]  }
   0x7   :  { %v307_v14 = vld [vmem:[%s530_s0 + $0x5] ss:$8 sm:$0xf]   ;;  %v84_v16 = vsel %vm4_vm0, %v310_v13, %v309_v12  ;;  %v311_v20 = vld [vmem:[%s530_s0 + $0x4] ss:$8 sm:$0xf]   ;;  %v108_v22 = vsel %vm4_vm0, %v314_v19, %v313_v18 }
   0x8   :  { %v308_v15 = vld [vmem:[%s530_s0 + $0x5] ss:$8 sm:$0xf0]   ;;  %61 = vrot.lane.b32.xlu1 %v60_v9, %s349_s16  ;;  %37 = vrot.lane.b32.xlu0 %v36_v11, %s350_s21  ;;  %v312_v21 = vld [vmem:[%s530_s0 + $0x4] ss:$8 sm:$0xf0]  }
   0x9   :  { %v73_v17 = vsel %vm4_vm0, %v308_v15, %v307_v14  ;;  %s351_s11 = smov 80   ;;  %v317_v23 = vld [vmem:[%s530_s0 + $0x43] ss:$8 sm:$0xf]   ;;  %v97_v24 = vsel %vm4_vm0, %v312_v21, %v311_v20  ;;  %s352_s20 = smov 64   ;;  %vm76_vm4 = vcmask 786048  }
   0xa   :  { %v318_v25 = vld [vmem:[%s530_s0 + $0x43] ss:$8 sm:$0xf0]   ;;  %v321_v28 = vld [vmem:[%s530_s0 + $0x42] ss:$8 sm:$0xf]  }
   0xb   :  { %v315_v26 = vld [vmem:[%s530_s0 + $0x3] ss:$8 sm:$0xf]   ;;  %v322_v29 = vld [vmem:[%s530_s0 + $0x42] ss:$8 sm:$0xf0]   ;;  %v132_v30 = vsel %vm4_vm0, %v318_v25, %v317_v23 }
   0xc   :  { %85 = vrot.lane.b32.xlu1 %v84_v16, %s351_s11  ;;  %74 = vrot.lane.b32.xlu0 %v73_v17, %s351_s11  ;;  %v316_v27 = vld [vmem:[%s530_s0 + $0x3] ss:$8 sm:$0xf0]   ;;  %v2_v31 = vld [vmem:[%s530_s0] ss:$8 sm:$0xf]   ;;  %v156_v40 = vsel %vm4_vm0, %v322_v29, %v321_v28 }
   0xd   :  { %v3_v32 = vld [vmem:[%s530_s0] ss:$8 sm:$0xf0]   ;;  %v121_v33 = vsel %vm4_vm0, %v316_v27, %v315_v26  ;;  %v319_v37 = vld [vmem:[%s530_s0 + $0x2] ss:$8 sm:$0xf]  }
   0xe   :  { %v5_v34 = vsel %vm4_vm0, %v3_v32, %v2_v31  ;;  %v297_v35 = vld [vmem:[%s530_s0 + $0x40] ss:$8 sm:$0xf]   ;;  %v320_v38 = vld [vmem:[%s530_s0 + $0x2] ss:$8 sm:$0xf0]  }
   0xf   :  { %v298_v36 = vld [vmem:[%s530_s0 + $0x40] ss:$8 sm:$0xf0]   ;;  %7 = vst.msk [vmem:[#allocation0] ss:$8 sm:$0xf] %vm6_vm1, %v5_v34   ;;  %v145_v41 = vsel %vm4_vm0, %v320_v38, %v319_v37 }
  0x10   :  { %109 = vrot.lane.b32.xlu1 %v108_v22, %s352_s20  ;;  %98 = vrot.lane.b32.xlu0 %v97_v24, %s352_s20  ;;  %8 = vst.msk [vmem:[#allocation0] ss:$8 sm:$0xf0] %vm6_vm1, %v5_v34   ;;  %v14_v39 = vsel %vm4_vm0, %v298_v36, %v297_v35  ;;  %s353_s8 = smov 48   ;;  %s355_s17 = smov 16   ;;  %vm100_vm5 = vcmask 654848  }
  0x11   :  { %17 = vst.msk [vmem:[#allocation0 + $0x40] ss:$8 sm:$0xf] %vm6_vm1, %v14_v39   ;;  %19 = vst.msk [vmem:[#allocation0 + $0x40] ss:$8 sm:$0xf0] %vm6_vm1, %v14_v39  }
  0x12   :  { %v325_v42 = vld [vmem:[%s530_s0 + $0x41] ss:$8 sm:$0xf]   ;;  %vm124_vm6 = vcmask 523648   ;;  %vm148_vm7 = vcmask 392448   ;;  %vm172_vm8 = vcmask 261248  }
  0x13   :  { %v326_v43 = vld [vmem:[%s530_s0 + $0x41] ss:$8 sm:$0xf0]  }
  0x14   :  { %133 = vrot.lane.b32.xlu1 %v132_v30, %s353_s8  ;;  %122 = vrot.lane.b32.xlu0 %v121_v33, %s353_s8  ;;  %v323_v44 = vld [vmem:[%s530_s0 + $0x1] ss:$8 sm:$0xf]   ;;  %v180_v46 = vsel %vm4_vm0, %v326_v43, %v325_v42 }
  0x15   :  { %v324_v45 = vld [vmem:[%s530_s0 + $0x1] ss:$8 sm:$0xf0]   ;;  %s354_s0 = smov 32  }
  0x16   :  { %v169_v47 = vsel %vm4_vm0, %v324_v45, %v323_v44 }
  0x18   :  { %157 = vrot.lane.b32.xlu1 %v156_v40, %s354_s0  ;;  %146 = vrot.lane.b32.xlu0 %v145_v41, %s354_s0 }
  0x1c   :  { %181 = vrot.lane.b32.xlu1 %v180_v46, %s355_s17  ;;  %170 = vrot.lane.b32.xlu0 %v169_v47, %s355_s17 }
  0x76   :  { %v51_v48 = vpop.permute.xlu1 %50   ;;  %v27_v49 = vpop.permute.xlu0 %26  }
  0x77   :  { %29 = vst.msk [vmem:[#allocation0] ss:$8 sm:$0xf] %vm28_vm2, %v27_v49   ;;  %30 = vst.msk [vmem:[#allocation0] ss:$8 sm:$0xf0] %vm28_vm2, %v27_v49  }
  0x78   :  { %53 = vst.msk [vmem:[#allocation0] ss:$8 sm:$0xf] %vm52_vm3, %v51_v48   ;;  %54 = vst.msk [vmem:[#allocation0] ss:$8 sm:$0xf0] %vm52_vm3, %v51_v48  }
  0x7a   :  { %v62_v50 = vpop.permute.xlu1 %61   ;;  %v38_v51 = vpop.permute.xlu0 %37  }
  0x7b   :  { %41 = vst.msk [vmem:[#allocation0 + $0x40] ss:$8 sm:$0xf] %vm28_vm2, %v38_v51   ;;  %43 = vst.msk [vmem:[#allocation0 + $0x40] ss:$8 sm:$0xf0] %vm28_vm2, %v38_v51  }
  0x7c   :  { %65 = vst.msk [vmem:[#allocation0 + $0x40] ss:$8 sm:$0xf] %vm52_vm3, %v62_v50   ;;  %67 = vst.msk [vmem:[#allocation0 + $0x40] ss:$8 sm:$0xf0] %vm52_vm3, %v62_v50  }
  0x7e   :  { %v86_v52 = vpop.permute.xlu1 %85   ;;  %v75_v53 = vpop.permute.xlu0 %74  }
  0x7f   :  { %89 = vst.msk [vmem:[#allocation0 + $0x40] ss:$8 sm:$0xf] %vm76_vm4, %v86_v52   ;;  %91 = vst.msk [vmem:[#allocation0 + $0x40] ss:$8 sm:$0xf0] %vm76_vm4, %v86_v52  }
  0x80   :  { %77 = vst.msk [vmem:[#allocation0] ss:$8 sm:$0xf] %vm76_vm4, %v75_v53   ;;  %78 = vst.msk [vmem:[#allocation0] ss:$8 sm:$0xf0] %vm76_vm4, %v75_v53  }
  0x82   :  { %v110_v54 = vpop.permute.xlu1 %109   ;;  %v99_v55 = vpop.permute.xlu0 %98  }
  0x83   :  { %113 = vst.msk [vmem:[#allocation0 + $0x40] ss:$8 sm:$0xf] %vm100_vm5, %v110_v54   ;;  %115 = vst.msk [vmem:[#allocation0 + $0x40] ss:$8 sm:$0xf0] %vm100_vm5, %v110_v54  }
  0x84   :  { %101 = vst.msk [vmem:[#allocation0] ss:$8 sm:$0xf] %vm100_vm5, %v99_v55   ;;  %102 = vst.msk [vmem:[#allocation0] ss:$8 sm:$0xf0] %vm100_vm5, %v99_v55  }
  0x86   :  { %v134_v56 = vpop.permute.xlu1 %133   ;;  %v123_v57 = vpop.permute.xlu0 %122  }
  0x87   :  { %137 = vst.msk [vmem:[#allocation0 + $0x40] ss:$8 sm:$0xf] %vm124_vm6, %v134_v56   ;;  %139 = vst.msk [vmem:[#allocation0 + $0x40] ss:$8 sm:$0xf0] %vm124_vm6, %v134_v56  }
  0x88   :  { %125 = vst.msk [vmem:[#allocation0] ss:$8 sm:$0xf] %vm124_vm6, %v123_v57   ;;  %126 = vst.msk [vmem:[#allocation0] ss:$8 sm:$0xf0] %vm124_vm6, %v123_v57  }
  0x8a   :  { %v158_v58 = vpop.permute.xlu1 %157   ;;  %v147_v59 = vpop.permute.xlu0 %146  }
  0x8b   :  { %161 = vst.msk [vmem:[#allocation0 + $0x40] ss:$8 sm:$0xf] %vm148_vm7, %v158_v58   ;;  %163 = vst.msk [vmem:[#allocation0 + $0x40] ss:$8 sm:$0xf0] %vm148_vm7, %v158_v58  }
  0x8c   :  { %149 = vst.msk [vmem:[#allocation0] ss:$8 sm:$0xf] %vm148_vm7, %v147_v59   ;;  %150 = vst.msk [vmem:[#allocation0] ss:$8 sm:$0xf0] %vm148_vm7, %v147_v59  }
  0x8e   :  { %v182_v60 = vpop.permute.xlu1 %181   ;;  %v171_v61 = vpop.permute.xlu0 %170  }
  0x8f   :  { %185 = vst.msk [vmem:[#allocation0 + $0x40] ss:$8 sm:$0xf] %vm172_vm8, %v182_v60   ;;  %187 = vst.msk [vmem:[#allocation0 + $0x40] ss:$8 sm:$0xf0] %vm172_vm8, %v182_v60  }
  0x90   :  { %173 = vst.msk [vmem:[#allocation0] ss:$8 sm:$0xf] %vm172_vm8, %v171_v61   ;;  %174 = vst.msk [vmem:[#allocation0] ss:$8 sm:$0xf0] %vm172_vm8, %v171_v61  }
  0x96   :  { %v236_v62 = vld [vmem:[#allocation0 + $0x40] sm:$0x1]  ;;  %v242_v63 = vld [vmem:[#allocation0 + $0x48] sm:$0x1]  ;;  %v248_v0 = vld [vmem:[#allocation0 + $0x50] sm:$0x1] }
  0x97   :  { %334 = vst [vmem:[%s531_s1 + $0x8] sm:$0x1] %v236_v62  ;;  %335 = vst [vmem:[%s531_s1 + $0x9] sm:$0x1] %v242_v63  ;;  %v254_v1 = vld [vmem:[#allocation0 + $0x58] sm:$0x1] }
  0x98   :  { %336 = vst [vmem:[%s531_s1 + $0xa] sm:$0x1] %v248_v0  ;;  %v260_v2 = vld [vmem:[#allocation0 + $0x60] sm:$0x1]  ;;  %v266_v3 = vld [vmem:[#allocation0 + $0x68] sm:$0x1] }
  0x99   :  { %337 = vst [vmem:[%s531_s1 + $0xb] sm:$0x1] %v254_v1  ;;  %338 = vst [vmem:[%s531_s1 + $0xc] sm:$0x1] %v260_v2  ;;  %v272_v4 = vld [vmem:[#allocation0 + $0x70] sm:$0x1] }
  0x9a   :  { %339 = vst [vmem:[%s531_s1 + $0xd] sm:$0x1] %v266_v3  ;;  %v278_v5 = vld [vmem:[#allocation0 + $0x78] sm:$0x1]  ;;  %v191_v6 = vld [vmem:[#allocation0] sm:$0x1] }
  0x9b   :  { %340 = vst [vmem:[%s531_s1 + $0xe] sm:$0x1] %v272_v4  ;;  %341 = vst [vmem:[%s531_s1 + $0xf] sm:$0x1] %v278_v5  ;;  %v195_v7 = vld [vmem:[#allocation0 + $0x8] sm:$0x1] }
  0x9c   :  { %193 = vst [vmem:[%s531_s1] sm:$0x1] %v191_v6  ;;  %v200_v8 = vld [vmem:[#allocation0 + $0x10] sm:$0x1]  ;;  %v206_v9 = vld [vmem:[#allocation0 + $0x18] sm:$0x1] }
  0x9d   :  { %327 = vst [vmem:[%s531_s1 + $0x1] sm:$0x1] %v195_v7  ;;  %328 = vst [vmem:[%s531_s1 + $0x2] sm:$0x1] %v200_v8  ;;  %v212_v10 = vld [vmem:[#allocation0 + $0x20] sm:$0x1] }
  0x9e   :  { %329 = vst [vmem:[%s531_s1 + $0x3] sm:$0x1] %v206_v9  ;;  %v218_v11 = vld [vmem:[#allocation0 + $0x28] sm:$0x1]  ;;  %v224_v12 = vld [vmem:[#allocation0 + $0x30] sm:$0x1] }
  0x9f   :  { %330 = vst [vmem:[%s531_s1 + $0x4] sm:$0x1] %v212_v10  ;;  %331 = vst [vmem:[%s531_s1 + $0x5] sm:$0x1] %v218_v11  ;;  %v230_v13 = vld [vmem:[#allocation0 + $0x38] sm:$0x1] }
  0xa0   :  { %332 = vst [vmem:[%s531_s1 + $0x6] sm:$0x1] %v224_v12  ;;  %333 = vst [vmem:[%s531_s1 + $0x7] sm:$0x1] %v230_v13 }

// kernel: forward.2
= control target key start
LH: loop header
LB: loop body
LE: loop exit
PB: predicated region body
PF: predicated region fallthrough
CT: control target
= control target key end

     0   :  { %vm62_vm0 = vcmask 1042432   ;;  %v4210_v3 = vmov 0.0   ;;  %v4211_v8 = vmov 0   ;;  %vm4212_vm1 = vmmov 1   ;;  %s5659_s0 = inlined_call_operand.vmem [shape: f32[8,27,1024], index: 0, kind: input, shape index: {}]   ;;  %s5660_s1 = inlined_call_operand.vmem [shape: f32[18,27], index: 1, kind: input, shape index: {}]   ;;  %s5661_s2 = inlined_call_operand.vmem [shape: f32[18,1], index: 2, kind: input, shape index: {}]   ;;  %s5662_s3 = inlined_call_operand.vmem [shape: f32[8,18,256], index: 3, kind: output, shape index: {}]  }
   0x1   :  { %v21_v0 = vld [vmem:[%s5659_s0 + $0x8] sm:$0xff]  ;;  %v23_v2 = vld [vmem:[%s5659_s0 + $0x18] sm:$0xff]  ;;  %151 = vmatprep.mubr.f32.mxu0 %v4210_v3  ;;  %234 = vmatprep.mubr.f32.mxu1 %v4210_v3  ;;  %v20_v6 = vld [vmem:[%s5659_s0] sm:$0xff]  ;;  %vm52_vm3 = vcmask 220160  }
   0x2   :  { %v29_v1 = vld [vmem:[%s5659_s0 + $0x48] sm:$0xff]  ;;  %v31_v5 = vld [vmem:[%s5659_s0 + $0x58] sm:$0xff]  ;;  %v28_v7 = vld [vmem:[%s5659_s0 + $0x40] sm:$0xff]  ;;  %4205 = vset.pattern.permute.xlu0 %v4211_v8  ;;  %4206 = vset.pattern.permute.xlu1 %v4211_v8 }
   0x3   :  { %v3882_v4 = vpack.c.bf16 %v29_v1, %v21_v0  ;;  %v3892_v9 = vpack.c.bf16 %v31_v5, %v23_v2  ;;  %v3884_v10 = vpack.c.bf16 %v28_v7, %v20_v6  ;;  %v22_v11 = vld [vmem:[%s5659_s0 + $0x10] sm:$0xff]  ;;  %v37_v13 = vld [vmem:[%s5659_s0 + $0x88] sm:$0xff]  ;;  %vm4266_vm2 = vmpackc.low %vm62_vm0, %vm4212_vm1 }
   0x4   :  { %v30_v12 = vld [vmem:[%s5659_s0 + $0x50] sm:$0xff]  ;;  %v45_v15 = vld [vmem:[%s5659_s0 + $0xc8] sm:$0x7]  ;;  %v39_v17 = vld [vmem:[%s5659_s0 + $0x98] sm:$0xff] }
   0x5   :  { %3883 = vmatprep.subr.bf16.mxu0 %v3882_v4  ;;  %v3894_v14 = vpack.c.bf16 %v30_v12, %v22_v11  ;;  %3893 = vmatprep.subr.bf16.mxu1 %v3892_v9  ;;  %v3886_v18 = vpack.c.bf16 %v45_v15, %v37_v13  ;;  %v47_v19 = vld [vmem:[%s5659_s0 + $0xd8] sm:$0x7]  ;;  %v36_v20 = vld [vmem:[%s5659_s0 + $0x80] sm:$0xff]  ;;  %v38_v24 = vld [vmem:[%s5659_s0 + $0x90] sm:$0xff] }
   0x6   :  { %3885 = vmatpush1.bf16.msra.mxu0 %v3884_v10  ;;  %v44_v21 = vld [vmem:[%s5659_s0 + $0xc0] sm:$0x7]  ;;  %v3896_v22 = vpack.c.bf16 %v47_v19, %v39_v17  ;;  %v46_v25 = vld [vmem:[%s5659_s0 + $0xd0] sm:$0x7]  ;;  %v25_v27 = vld [vmem:[%s5659_s0 + $0x28] sm:$0xff] }
   0x7   :  { %3895 = vmatpush1.bf16.msra.mxu1 %v3894_v14  ;;  %v3889_v23 = vpack.c.bf16 %v44_v21, %v36_v20  ;;  %3888 = vmatprep.subr.msk.bf16.mxu0 %vm4266_vm2, %v3886_v18  ;;  %v3899_v26 = vpack.c.bf16 %v46_v25, %v38_v24  ;;  %v33_v28 = vld [vmem:[%s5659_s0 + $0x68] sm:$0xff]  ;;  %v27_v29 = vld [vmem:[%s5659_s0 + $0x38] sm:$0xff]  ;;  %v24_v32 = vld [vmem:[%s5659_s0 + $0x20] sm:$0xff] }
   0x8   :  { %3898 = vmatprep.subr.msk.bf16.mxu1 %vm4266_vm2, %v3896_v22  ;;  %v3902_v30 = vpack.c.bf16 %v33_v28, %v25_v27  ;;  %v35_v31 = vld [vmem:[%s5659_s0 + $0x78] sm:$0xff]  ;;  %v32_v33 = vld [vmem:[%s5659_s0 + $0x60] sm:$0xff]  ;;  %v26_v37 = vld [vmem:[%s5659_s0 + $0x30] sm:$0xff] }
   0x9   :  { %v4315_v34 = vld [vmem:[%s5660_s1] sm:$0xff]  ;;  %v3912_v35 = vpack.c.bf16 %v35_v31, %v27_v29  ;;  %v3904_v36 = vpack.c.bf16 %v32_v33, %v24_v32  ;;  %v34_v38 = vld [vmem:[%s5659_s0 + $0x70] sm:$0xff]  ;;  %v41_v40 = vld [vmem:[%s5659_s0 + $0xa8] sm:$0xff] }
   0xa   :  { %3891 = vmatpush1.bf16.msk.msra.mxu0 %vm4266_vm2, %v3889_v23  ;;  %v3914_v39 = vpack.c.bf16 %v34_v38, %v26_v37  ;;  %v49_v41 = vld [vmem:[%s5659_s0 + $0xe8] sm:$0x7]  ;;  %v43_v42 = vld [vmem:[%s5659_s0 + $0xb8] sm:$0xff]  ;;  %v40_v45 = vld [vmem:[%s5659_s0 + $0xa0] sm:$0xff] }
   0xb   :  { %3901 = vmatpush1.bf16.msk.msra.mxu1 %vm4266_vm2, %v3899_v26  ;;  %3903 = vmatprep.subr.bf16.mxu0 %v3902_v30  ;;  %v3906_v43 = vpack.c.bf16 %v49_v41, %v41_v40  ;;  %v51_v44 = vld [vmem:[%s5659_s0 + $0xf8] sm:$0x7]  ;;  %v48_v46 = vld [vmem:[%s5659_s0 + $0xe0] sm:$0x7]  ;;  %v4348_v47 = vld [vmem:[%s5660_s1 + $0x8] sm:$0xff] }
   0xc   :  { %3913 = vmatprep.subr.bf16.mxu1 %v3912_v35  ;;  %v3916_v48 = vpack.c.bf16 %v51_v44, %v43_v42  ;;  %v42_v49 = vld [vmem:[%s5659_s0 + $0xb0] sm:$0xff]  ;;  %v3477_v51 = vld [vmem:[%s5659_s0 + $0x108] sm:$0xff]  ;;  %v3479_v53 = vld [vmem:[%s5659_s0 + $0x118] sm:$0xff]  ;;  %v3909_v54 = vpack.c.bf16 %v48_v46, %v40_v45 }
   0xd   :  { %3458 = vmatmul.mubr.msk.f32.vlgmr.msra.gmra.mrb[0].mxu0 %vm52_vm3, %v4315_v34  ;;  %v50_v50 = vld [vmem:[%s5659_s0 + $0xf0] sm:$0x7]  ;;  %v3485_v52 = vld [vmem:[%s5659_s0 + $0x148] sm:$0xff]  ;;  %v3487_v55 = vld [vmem:[%s5659_s0 + $0x158] sm:$0xff] }
   0xe   :  { %3463 = vmatmul.mubr.msk.f32.vlgmr.msra.gmra.mrb[0].mxu1 %vm52_vm3, %v4315_v34  ;;  %3905 = vmatpush1.bf16.msra.mxu0 %v3904_v36  ;;  %v3919_v56 = vpack.c.bf16 %v50_v50, %v42_v49  ;;  %v3922_v57 = vpack.c.bf16 %v3485_v52, %v3477_v51  ;;  %v3932_v58 = vpack.c.bf16 %v3487_v55, %v3479_v53  ;;  %v4384_v59 = vld [vmem:[%s5660_s1 + $0x10] sm:$0x3]  ;;  %v3476_v60 = vld [vmem:[%s5659_s0 + $0x100] sm:$0xff]  ;;  %v3493_v0 = vld [vmem:[%s5659_s0 + $0x188] sm:$0xff] }
   0xf   :  { %3915 = vmatpush1.bf16.msra.mxu1 %v3914_v39  ;;  %157 = vmatprep.mubr.f32.mxu0 %v4210_v3  ;;  %v3484_v61 = vld [vmem:[%s5659_s0 + $0x140] sm:$0xff]  ;;  %v3478_v62 = vld [vmem:[%s5659_s0 + $0x110] sm:$0xff]  ;;  %v3501_v1 = vld [vmem:[%s5659_s0 + $0x1c8] sm:$0x7] }
  0x10   :  { %240 = vmatprep.mubr.f32.mxu1 %v4210_v3  ;;  %3908 = vmatprep.subr.msk.bf16.mxu0 %vm4266_vm2, %v3906_v43  ;;  %v3486_v63 = vld [vmem:[%s5659_s0 + $0x150] sm:$0xff]  ;;  %v3924_v2 = vpack.c.bf16 %v3484_v61, %v3476_v60  ;;  %v3495_v4 = vld [vmem:[%s5659_s0 + $0x198] sm:$0xff]  ;;  %v3926_v7 = vpack.c.bf16 %v3501_v1, %v3493_v0  ;;  %v3492_v8 = vld [vmem:[%s5659_s0 + $0x180] sm:$0xff] }
  0x11   :  { %3459 = vmatmul.mubr.msk.f32.gmra.mrb[2].mxu0 %vm52_vm3, %v4348_v47  ;;  %3918 = vmatprep.subr.msk.bf16.mxu1 %vm4266_vm2, %v3916_v48  ;;  %v3503_v5 = vld [vmem:[%s5659_s0 + $0x1d8] sm:$0x7]  ;;  %v3934_v6 = vpack.c.bf16 %v3486_v63, %v3478_v62  ;;  %v3500_v9 = vld [vmem:[%s5659_s0 + $0x1c0] sm:$0x7]  ;;  %v3494_v10 = vld [vmem:[%s5659_s0 + $0x190] sm:$0xff] }
  0x12   :  { %3464 = vmatmul.mubr.msk.f32.gmra.mrb[2].mxu1 %vm52_vm3, %v4348_v47  ;;  %163 = vmatprep.mubr.f32.mxu0 %v4210_v3  ;;  %v3936_v11 = vpack.c.bf16 %v3503_v5, %v3495_v4  ;;  %v3502_v12 = vld [vmem:[%s5659_s0 + $0x1d0] sm:$0x7]  ;;  %v3481_v13 = vld [vmem:[%s5659_s0 + $0x128] sm:$0xff]  ;;  %v3483_v15 = vld [vmem:[%s5659_s0 + $0x138] sm:$0xff]  ;;  %v3929_v18 = vpack.c.bf16 %v3500_v9, %v3492_v8 }
  0x13   :  { %246 = vmatprep.mubr.f32.mxu1 %v4210_v3  ;;  %3911 = vmatpush1.bf16.msk.msra.mxu0 %vm4266_vm2, %v3909_v54  ;;  %v3489_v14 = vld [vmem:[%s5659_s0 + $0x168] sm:$0xff]  ;;  %v3491_v17 = vld [vmem:[%s5659_s0 + $0x178] sm:$0xff]  ;;  %v3939_v19 = vpack.c.bf16 %v3502_v12, %v3494_v10  ;;  %v3480_v22 = vld [vmem:[%s5659_s0 + $0x120] sm:$0xff] }
  0x14   :  { %3921 = vmatpush1.bf16.msk.msra.mxu1 %vm4266_vm2, %v3919_v56  ;;  %3923 = vmatprep.subr.bf16.mxu0 %v3922_v57  ;;  %v3942_v20 = vpack.c.bf16 %v3489_v14, %v3481_v13  ;;  %v3952_v21 = vpack.c.bf16 %v3491_v17, %v3483_v15  ;;  %v3488_v23 = vld [vmem:[%s5659_s0 + $0x160] sm:$0xff]  ;;  %v3482_v24 = vld [vmem:[%s5659_s0 + $0x130] sm:$0xff]  ;;  %v3497_v26 = vld [vmem:[%s5659_s0 + $0x1a8] sm:$0xff] }
  0x15   :  { %3460 = vmatmul.mubr.msk.f32.gmra.mrb[4].mxu0 %vm52_vm3, %v4384_v59  ;;  %3933 = vmatprep.subr.bf16.mxu1 %v3932_v58  ;;  %v3490_v25 = vld [vmem:[%s5659_s0 + $0x170] sm:$0xff]  ;;  %v3505_v27 = vld [vmem:[%s5659_s0 + $0x1e8] sm:$0x7]  ;;  %v3944_v28 = vpack.c.bf16 %v3488_v23, %v3480_v22  ;;  %v3499_v29 = vld [vmem:[%s5659_s0 + $0x1b8] sm:$0xff] }
  0x16   :  { %3465 = vmatmul.mubr.msk.f32.gmra.mrb[4].mxu1 %vm52_vm3, %v4384_v59  ;;  %317 = vmatprep.mubr.f32.mxu0 %v4210_v3  ;;  %v3507_v30 = vld [vmem:[%s5659_s0 + $0x1f8] sm:$0x7]  ;;  %v3954_v31 = vpack.c.bf16 %v3490_v25, %v3482_v24  ;;  %v3946_v32 = vpack.c.bf16 %v3505_v27, %v3497_v26  ;;  %v3496_v33 = vld [vmem:[%s5659_s0 + $0x1a0] sm:$0xff]  ;;  %v3498_v36 = vld [vmem:[%s5659_s0 + $0x1b0] sm:$0xff] }
  0x17   :  { %400 = vmatprep.mubr.f32.mxu1 %v4210_v3  ;;  %v3504_v35 = vld [vmem:[%s5659_s0 + $0x1e0] sm:$0x7]  ;;  %v3956_v37 = vpack.c.bf16 %v3507_v30, %v3499_v29  ;;  %v3506_v38 = vld [vmem:[%s5659_s0 + $0x1f0] sm:$0x7]  ;;  %v3535_v39 = vld [vmem:[%s5659_s0 + $0x208] sm:$0xff] }
  0x18   :  { %v3543_v40 = vld [vmem:[%s5659_s0 + $0x248] sm:$0xff]  ;;  %v3537_v41 = vld [vmem:[%s5659_s0 + $0x218] sm:$0xff]  ;;  %v3949_v43 = vpack.c.bf16 %v3504_v35, %v3496_v33  ;;  %v3959_v44 = vpack.c.bf16 %v3506_v38, %v3498_v36  ;;  %v3534_v48 = vld [vmem:[%s5659_s0 + $0x200] sm:$0xff] }
  0x19   :  { %3468 = vmatmul.mubr.msk.f32.vlgmr.msra.gmra.mrb[6].mxu0 %vm52_vm3, %v4315_v34  ;;  %v3545_v42 = vld [vmem:[%s5659_s0 + $0x258] sm:$0xff]  ;;  %v3962_v45 = vpack.c.bf16 %v3543_v40, %v3535_v39  ;;  %v3542_v49 = vld [vmem:[%s5659_s0 + $0x240] sm:$0xff]  ;;  %v3536_v50 = vld [vmem:[%s5659_s0 + $0x210] sm:$0xff] }
  0x1a   :  { %3473 = vmatmul.mubr.msk.f32.vlgmr.msra.gmra.mrb[6].mxu1 %vm52_vm3, %v4315_v34  ;;  %3925 = vmatpush1.bf16.msra.mxu0 %v3924_v2  ;;  %v3972_v46 = vpack.c.bf16 %v3545_v42, %v3537_v41  ;;  %v3544_v51 = vld [vmem:[%s5659_s0 + $0x250] sm:$0xff]  ;;  %v3551_v52 = vld [vmem:[%s5659_s0 + $0x288] sm:$0xff]  ;;  %v3964_v54 = vpack.c.bf16 %v3542_v49, %v3534_v48  ;;  %v3553_v55 = vld [vmem:[%s5659_s0 + $0x298] sm:$0xff] }
  0x1b   :  { %3935 = vmatpush1.bf16.msra.mxu1 %v3934_v6  ;;  %323 = vmatprep.mubr.f32.mxu0 %v4210_v3  ;;  %v3559_v53 = vld [vmem:[%s5659_s0 + $0x2c8] sm:$0x7]  ;;  %v3561_v56 = vld [vmem:[%s5659_s0 + $0x2d8] sm:$0x7]  ;;  %v3974_v57 = vpack.c.bf16 %v3544_v51, %v3536_v50  ;;  %v3550_v60 = vld [vmem:[%s5659_s0 + $0x280] sm:$0xff] }
  0x1c   :  { %406 = vmatprep.mubr.f32.mxu1 %v4210_v3  ;;  %3928 = vmatprep.subr.msk.bf16.mxu0 %vm4266_vm2, %v3926_v7  ;;  %v3966_v58 = vpack.c.bf16 %v3559_v53, %v3551_v52  ;;  %v3558_v61 = vld [vmem:[%s5659_s0 + $0x2c0] sm:$0x7]  ;;  %v3552_v62 = vld [vmem:[%s5659_s0 + $0x290] sm:$0xff]  ;;  %v3976_v63 = vpack.c.bf16 %v3561_v56, %v3553_v55  ;;  %v3539_v1 = vld [vmem:[%s5659_s0 + $0x228] sm:$0xff] }
  0x1d   :  { %3469 = vmatmul.mubr.msk.f32.gmra.mrb[8].mxu0 %vm52_vm3, %v4348_v47  ;;  %3938 = vmatprep.subr.msk.bf16.mxu1 %vm4266_vm2, %v3936_v11  ;;  %v3560_v0 = vld [vmem:[%s5659_s0 + $0x2d0] sm:$0x7]  ;;  %v3547_v2 = vld [vmem:[%s5659_s0 + $0x268] sm:$0xff]  ;;  %v3541_v4 = vld [vmem:[%s5659_s0 + $0x238] sm:$0xff]  ;;  %v3969_v6 = vpack.c.bf16 %v3558_v61, %v3550_v60 }
  0x1e   :  { %3474 = vmatmul.mubr.msk.f32.gmra.mrb[8].mxu1 %vm52_vm3, %v4348_v47  ;;  %329 = vmatprep.mubr.f32.mxu0 %v4210_v3  ;;  %v3549_v5 = vld [vmem:[%s5659_s0 + $0x278] sm:$0xff]  ;;  %v3979_v7 = vpack.c.bf16 %v3560_v0, %v3552_v62  ;;  %v3982_v8 = vpack.c.bf16 %v3547_v2, %v3539_v1  ;;  %v3538_v10 = vld [vmem:[%s5659_s0 + $0x220] sm:$0xff]  ;;  %v3540_v12 = vld [vmem:[%s5659_s0 + $0x230] sm:$0xff] }
  0x1f   :  { %412 = vmatprep.mubr.f32.mxu1 %v4210_v3  ;;  %3931 = vmatpush1.bf16.msk.msra.mxu0 %vm4266_vm2, %v3929_v18  ;;  %v3992_v9 = vpack.c.bf16 %v3549_v5, %v3541_v4  ;;  %v3546_v11 = vld [vmem:[%s5659_s0 + $0x260] sm:$0xff]  ;;  %v3548_v13 = vld [vmem:[%s5659_s0 + $0x270] sm:$0xff]  ;;  %v3555_v15 = vld [vmem:[%s5659_s0 + $0x2a8] sm:$0xff] }
  0x20   :  { %3941 = vmatpush1.bf16.msk.msra.mxu1 %vm4266_vm2, %v3939_v19  ;;  %3943 = vmatprep.subr.bf16.mxu0 %v3942_v20  ;;  %v17_v14 = vld [vmem:[%s5661_s2] sm:$0xff]  ;;  %v3563_v17 = vld [vmem:[%s5659_s0 + $0x2e8] sm:$0x7]  ;;  %v19_v18 = vld [vmem:[%s5661_s2 + $0x10] sm:$0x3]  ;;  %v3984_v19 = vpack.c.bf16 %v3546_v11, %v3538_v10  ;;  %v3994_v22 = vpack.c.bf16 %v3548_v13, %v3540_v12 }
  0x21   :  { %3470 = vmatmul.mubr.msk.f32.gmra.mrb[10].mxu0 %vm52_vm3, %v4384_v59  ;;  %3953 = vmatprep.subr.bf16.mxu1 %v3952_v21  ;;  %v3557_v20 = vld [vmem:[%s5659_s0 + $0x2b8] sm:$0xff]  ;;  %v3986_v23 = vpack.c.bf16 %v3563_v17, %v3555_v15  ;;  %v3554_v24 = vld [vmem:[%s5659_s0 + $0x2a0] sm:$0xff]  ;;  %v3556_v26 = vld [vmem:[%s5659_s0 + $0x2b0] sm:$0xff] }
  0x22   :  { %3475 = vmatmul.mubr.msk.f32.gmra.mrb[10].mxu1 %vm52_vm3, %v4384_v59  ;;  %591 = vmatprep.mubr.f32.mxu0 %v4210_v3  ;;  %v3565_v21 = vld [vmem:[%s5659_s0 + $0x2f8] sm:$0x7]  ;;  %v3562_v25 = vld [vmem:[%s5659_s0 + $0x2e0] sm:$0x7]  ;;  %v3593_v29 = vld [vmem:[%s5659_s0 + $0x308] sm:$0xff] }
  0x23   :  { %674 = vmatprep.mubr.f32.mxu1 %v4210_v3  ;;  %439 = vperm.xlu0 %4205, %v17_v14   ;;  %v3996_v27 = vpack.c.bf16 %v3565_v21, %v3557_v20  ;;  %v3601_v30 = vld [vmem:[%s5659_s0 + $0x348] sm:$0xff]  ;;  %v3989_v33 = vpack.c.bf16 %v3562_v25, %v3554_v24  ;;  %v3592_v38 = vld [vmem:[%s5659_s0 + $0x300] sm:$0xff]  ;;  %v3594_v40 = vld [vmem:[%s5659_s0 + $0x310] sm:$0xff] }
  0x24   :  { %449 = vperm.xlu1 %4206, %v19_v18   ;;  %v4002_v36 = vpack.c.bf16 %v3601_v30, %v3593_v29  ;;  %v3600_v39 = vld [vmem:[%s5659_s0 + $0x340] sm:$0xff]  ;;  %v3602_v41 = vld [vmem:[%s5659_s0 + $0x350] sm:$0xff]  ;;  %v18_v42 = vld [vmem:[%s5661_s2 + $0x8] sm:$0xff] }
  0x25   :  { %3510 = vmatmul.mubr.msk.f32.vlgmr.msra.gmra.mrb[12].mxu0 %vm52_vm3, %v4315_v34  ;;  %v3619_v48 = vld [vmem:[%s5659_s0 + $0x3d8] sm:$0x7]  ;;  %v4014_v49 = vpack.c.bf16 %v3602_v41, %v3594_v40  ;;  %v3608_v51 = vld [vmem:[%s5659_s0 + $0x380] sm:$0xff]  ;;  %v3610_v53 = vld [vmem:[%s5659_s0 + $0x390] sm:$0xff] }
  0x26   :  { %3515 = vmatmul.mubr.msk.f32.vlgmr.msra.gmra.mrb[12].mxu1 %vm52_vm3, %v4315_v34  ;;  %3945 = vmatpush1.bf16.msra.mxu0 %v3944_v28  ;;  %v3564_v28 = vld [vmem:[%s5659_s0 + $0x2f0] sm:$0x7]  ;;  %v3616_v52 = vld [vmem:[%s5659_s0 + $0x3c0] sm:$0x7]  ;;  %v3597_v56 = vld [vmem:[%s5659_s0 + $0x328] sm:$0xff] }
  0x27   :  { %3955 = vmatpush1.bf16.msra.mxu1 %v3954_v31  ;;  %597 = vmatprep.mubr.f32.mxu0 %v4210_v3  ;;  %v3595_v31 = vld [vmem:[%s5659_s0 + $0x318] sm:$0xff]  ;;  %v3999_v35 = vpack.c.bf16 %v3564_v28, %v3556_v26  ;;  %v3618_v55 = vld [vmem:[%s5659_s0 + $0x3d0] sm:$0x7]  ;;  %v4009_v61 = vpack.c.bf16 %v3616_v52, %v3608_v51  ;;  %v3596_v1 = vld [vmem:[%s5659_s0 + $0x320] sm:$0xff] }
  0x28   :  { %680 = vmatprep.mubr.f32.mxu1 %v4210_v3  ;;  %3948 = vmatprep.subr.msk.bf16.mxu0 %vm4266_vm2, %v3946_v32  ;;  %v3603_v32 = vld [vmem:[%s5659_s0 + $0x358] sm:$0xff]  ;;  %v4019_v62 = vpack.c.bf16 %v3618_v55, %v3610_v53  ;;  %v3604_v2 = vld [vmem:[%s5659_s0 + $0x360] sm:$0xff]  ;;  %v3598_v4 = vld [vmem:[%s5659_s0 + $0x330] sm:$0xff] }
  0x29   :  { %3511 = vmatmul.mubr.msk.f32.gmra.mrb[14].mxu0 %vm52_vm3, %v4348_v47  ;;  %3958 = vmatprep.subr.msk.bf16.mxu1 %vm4266_vm2, %v3956_v37  ;;  %v4012_v37 = vpack.c.bf16 %v3603_v32, %v3595_v31  ;;  %v3607_v60 = vld [vmem:[%s5659_s0 + $0x378] sm:$0xff]  ;;  %v3606_v5 = vld [vmem:[%s5659_s0 + $0x370] sm:$0xff]  ;;  %v3612_v13 = vld [vmem:[%s5659_s0 + $0x3a0] sm:$0xff] }
  0x2a   :  { %3516 = vmatmul.mubr.msk.f32.gmra.mrb[14].mxu1 %vm52_vm3, %v4348_v47  ;;  %603 = vmatprep.mubr.f32.mxu0 %v4210_v3  ;;  %v3623_v10 = vld [vmem:[%s5659_s0 + $0x3f8] sm:$0x7]  ;;  %v4034_v11 = vpack.c.bf16 %v3606_v5, %v3598_v4  ;;  %v3620_v14 = vld [vmem:[%s5659_s0 + $0x3e0] sm:$0x7]  ;;  %v3614_v15 = vld [vmem:[%s5659_s0 + $0x3b0] sm:$0xff] }
  0x2b   :  { %686 = vmatprep.mubr.f32.mxu1 %v4210_v3  ;;  %3951 = vmatpush1.bf16.msk.msra.mxu0 %vm4266_vm2, %v3949_v43  ;;  %v3609_v43 = vld [vmem:[%s5659_s0 + $0x388] sm:$0xff]  ;;  %v3622_v18 = vld [vmem:[%s5659_s0 + $0x3f0] sm:$0x7]  ;;  %v3653_v21 = vld [vmem:[%s5659_s0 + $0x418] sm:$0xff] }
  0x2c   :  { %3961 = vmatpush1.bf16.msk.msra.mxu1 %vm4266_vm2, %v3959_v44  ;;  %3963 = vmatprep.subr.bf16.mxu0 %v3962_v45  ;;  %v3617_v44 = vld [vmem:[%s5659_s0 + $0x3c8] sm:$0x7]  ;;  %v4004_v45 = vpack.c.bf16 %v3600_v39, %v3592_v38  ;;  %v4039_v24 = vpack.c.bf16 %v3622_v18, %v3614_v15  ;;  %v3658_v28 = vld [vmem:[%s5659_s0 + $0x440] sm:$0xff]  ;;  %v3652_v29 = vld [vmem:[%s5659_s0 + $0x410] sm:$0xff] }
  0x2d   :  { %3512 = vmatmul.mubr.msk.f32.gmra.mrb[16].mxu0 %vm52_vm3, %v4384_v59  ;;  %3973 = vmatprep.subr.bf16.mxu1 %v3972_v46  ;;  %v3611_v46 = vld [vmem:[%s5659_s0 + $0x398] sm:$0xff]  ;;  %v4006_v50 = vpack.c.bf16 %v3617_v44, %v3609_v43  ;;  %v3659_v20 = vld [vmem:[%s5659_s0 + $0x448] sm:$0xff]  ;;  %v3660_v30 = vld [vmem:[%s5659_s0 + $0x450] sm:$0xff] }
  0x2e   :  { %3517 = vmatmul.mubr.msk.f32.gmra.mrb[16].mxu1 %vm52_vm3, %v4384_v59  ;;  %757 = vmatprep.mubr.f32.mxu0 %v4210_v3  ;;  %v3667_v31 = vld [vmem:[%s5659_s0 + $0x488] sm:$0xff]  ;;  %v3666_v39 = vld [vmem:[%s5659_s0 + $0x480] sm:$0xff]  ;;  %v3668_v41 = vld [vmem:[%s5659_s0 + $0x490] sm:$0xff] }
  0x2f   :  { %840 = vmatprep.mubr.f32.mxu1 %v4210_v3  ;;  %444 = vperm.xlu0 %4205, %v18_v42   ;;  %v3675_v32 = vld [vmem:[%s5659_s0 + $0x4c8] sm:$0x7]  ;;  %v3674_v40 = vld [vmem:[%s5659_s0 + $0x4c0] sm:$0x7]  ;;  %v3676_v43 = vld [vmem:[%s5659_s0 + $0x4d0] sm:$0x7] }
  0x30   :  { %v4046_v38 = vpack.c.bf16 %v3675_v32, %v3667_v31  ;;  %v3655_v44 = vld [vmem:[%s5659_s0 + $0x428] sm:$0xff]  ;;  %v3654_v53 = vld [vmem:[%s5659_s0 + $0x420] sm:$0xff]  ;;  %v3656_v55 = vld [vmem:[%s5659_s0 + $0x430] sm:$0xff] }
  0x31   :  { %3520 = vmatmul.mubr.msk.f32.vlgmr.msra.gmra.mrb[18].mxu0 %vm52_vm3, %v4315_v34  ;;  %v3672_v4 = vld [vmem:[%s5659_s0 + $0x4b0] sm:$0xff]  ;;  %v3708_v15 = vld [vmem:[%s5659_s0 + $0x500] sm:$0xff]  ;;  %v3713_v32 = vld [vmem:[%s5659_s0 + $0x528] sm:$0xff] }
  0x32   :  { %3525 = vmatmul.mubr.msk.f32.vlgmr.msra.gmra.mrb[18].mxu1 %vm52_vm3, %v4315_v34  ;;  %3965 = vmatpush1.bf16.msra.mxu0 %v3964_v54  ;;  %v4016_v54 = vpack.c.bf16 %v3619_v48, %v3611_v46  ;;  %v3657_v46 = vld [vmem:[%s5659_s0 + $0x438] sm:$0xff]  ;;  %v3710_v18 = vld [vmem:[%s5659_s0 + $0x510] sm:$0xff] }
  0x33   :  { %3975 = vmatpush1.bf16.msra.mxu1 %v3974_v57  ;;  %763 = vmatprep.mubr.f32.mxu0 %v4210_v3  ;;  %v3605_v57 = vld [vmem:[%s5659_s0 + $0x368] sm:$0xff]  ;;  %v3665_v48 = vld [vmem:[%s5659_s0 + $0x478] sm:$0xff]  ;;  %v3734_v31 = vld [vmem:[%s5659_s0 + $0x5d0] sm:$0x7] }
  0x34   :  { %846 = vmatprep.mubr.f32.mxu1 %v4210_v3  ;;  %3968 = vmatprep.subr.msk.bf16.mxu0 %vm4266_vm2, %v3966_v58  ;;  %v3599_v58 = vld [vmem:[%s5659_s0 + $0x338] sm:$0xff]  ;;  %v4072_v52 = vpack.c.bf16 %v3665_v48, %v3657_v46  ;;  %v3737_v46 = vld [vmem:[%s5659_s0 + $0x5e8] sm:$0x7] }
  0x35   :  { %3521 = vmatmul.mubr.msk.f32.gmra.mrb[20].mxu0 %vm52_vm3, %v4348_v47  ;;  %3978 = vmatprep.subr.msk.bf16.mxu1 %vm4266_vm2, %v3976_v63  ;;  %v4022_v63 = vpack.c.bf16 %v3605_v57, %v3597_v56  ;;  %v4032_v0 = vpack.c.bf16 %v3607_v60, %v3599_v58  ;;  %v3664_v56 = vld [vmem:[%s5659_s0 + $0x470] sm:$0xff]  ;;  %v3671_v57 = vld [vmem:[%s5659_s0 + $0x4a8] sm:$0xff] }
  0x36   :  { %3526 = vmatmul.mubr.msk.f32.gmra.mrb[20].mxu1 %vm52_vm3, %v4348_v47  ;;  %769 = vmatprep.mubr.f32.mxu0 %v4210_v3  ;;  %v3679_v58 = vld [vmem:[%s5659_s0 + $0x4e8] sm:$0x7] }
  0x37   :  { %852 = vmatprep.mubr.f32.mxu1 %v4210_v3  ;;  %3971 = vmatpush1.bf16.msk.msra.mxu0 %vm4266_vm2, %v3969_v6  ;;  %v3613_v6 = vld [vmem:[%s5659_s0 + $0x3a8] sm:$0xff] }
  0x38   :  { %3981 = vmatpush1.bf16.msk.msra.mxu1 %vm4266_vm2, %v3979_v7  ;;  %3983 = vmatprep.subr.bf16.mxu0 %v3982_v8  ;;  %v3621_v7 = vld [vmem:[%s5659_s0 + $0x3e8] sm:$0x7]  ;;  %v4024_v8 = vpack.c.bf16 %v3604_v2, %v3596_v1  ;;  %v3670_v1 = vld [vmem:[%s5659_s0 + $0x4a0] sm:$0xff] }
  0x39   :  { %3522 = vmatmul.mubr.msk.f32.gmra.mrb[22].mxu0 %vm52_vm3, %v4384_v59  ;;  %3993 = vmatprep.subr.bf16.mxu1 %v3992_v9  ;;  %v3615_v9 = vld [vmem:[%s5659_s0 + $0x3b8] sm:$0xff]  ;;  %v4026_v12 = vpack.c.bf16 %v3621_v7, %v3613_v6  ;;  %v3678_v2 = vld [vmem:[%s5659_s0 + $0x4e0] sm:$0x7]  ;;  %v3680_v6 = vld [vmem:[%s5659_s0 + $0x4f0] sm:$0x7] }
  0x3a   :  { %3527 = vmatmul.mubr.msk.f32.gmra.mrb[22].mxu1 %vm52_vm3, %v4384_v59  ;;  %1017 = vmatprep.mubr.f32.mxu0 %v4210_v3  ;;  %v4036_v17 = vpack.c.bf16 %v3623_v10, %v3615_v9  ;;  %v3709_v7 = vld [vmem:[%s5659_s0 + $0x508] sm:$0xff]  ;;  %v3711_v9 = vld [vmem:[%s5659_s0 + $0x518] sm:$0xff] }
  0x3b   :  { %1100 = vmatprep.mubr.f32.mxu1 %v4210_v3  ;;  %v3719_v10 = vld [vmem:[%s5659_s0 + $0x558] sm:$0xff] }
  0x3d   :  { %3568 = vmatmul.mubr.msk.f32.vlgmr.msra.gmra.mrb[24].mxu0 %vm52_vm3, %v4315_v34 }
  0x3e   :  { %3573 = vmatmul.mubr.msk.f32.vlgmr.msra.gmra.mrb[24].mxu1 %vm52_vm3, %v4315_v34  ;;  %3985 = vmatpush1.bf16.msra.mxu0 %v3984_v19  ;;  %v3651_v19 = vld [vmem:[%s5659_s0 + $0x408] sm:$0xff] }
  0x3f   :  { %3995 = vmatpush1.bf16.msra.mxu1 %v3994_v22  ;;  %1023 = vmatprep.mubr.f32.mxu0 %v4210_v3  ;;  %v3661_v22 = vld [vmem:[%s5659_s0 + $0x458] sm:$0xff]  ;;  %v4042_v25 = vpack.c.bf16 %v3659_v20, %v3651_v19  ;;  %v3718_v19 = vld [vmem:[%s5659_s0 + $0x550] sm:$0xff]  ;;  %v3725_v20 = vld [vmem:[%s5659_s0 + $0x588] sm:$0xff] }
  0x40   :  { %1106 = vmatprep.mubr.f32.mxu1 %v4210_v3  ;;  %3988 = vmatprep.subr.msk.bf16.mxu0 %vm4266_vm2, %v3986_v23  ;;  %v4029_v23 = vpack.c.bf16 %v3620_v14, %v3612_v13  ;;  %v4052_v26 = vpack.c.bf16 %v3661_v22, %v3653_v21  ;;  %v4092_v14 = vpack.c.bf16 %v3719_v10, %v3711_v9  ;;  %v3733_v21 = vld [vmem:[%s5659_s0 + $0x5c8] sm:$0x7] }
  0x41   :  { %3569 = vmatmul.mubr.msk.f32.gmra.mrb[26].mxu0 %vm52_vm3, %v4348_v47  ;;  %3998 = vmatprep.subr.msk.bf16.mxu1 %vm4266_vm2, %v3996_v27  ;;  %v3650_v27 = vld [vmem:[%s5659_s0 + $0x400] sm:$0xff]  ;;  %v3791_v9 = vld [vmem:[%s5659_s0 + $0x6c8] sm:$0x7] }
  0x42   :  { %3574 = vmatmul.mubr.msk.f32.gmra.mrb[26].mxu1 %vm52_vm3, %v4348_v47  ;;  %1029 = vmatprep.mubr.f32.mxu0 %v4210_v3 }
  0x43   :  { %1112 = vmatprep.mubr.f32.mxu1 %v4210_v3  ;;  %3991 = vmatpush1.bf16.msk.msra.mxu0 %vm4266_vm2, %v3989_v33  ;;  %v4044_v33 = vpack.c.bf16 %v3658_v28, %v3650_v27  ;;  %v3724_v27 = vld [vmem:[%s5659_s0 + $0x580] sm:$0xff] }
  0x44   :  { %4001 = vmatpush1.bf16.msk.msra.mxu1 %vm4266_vm2, %v3999_v35  ;;  %4003 = vmatprep.subr.bf16.mxu0 %v4002_v36  ;;  %v3669_v35 = vld [vmem:[%s5659_s0 + $0x498] sm:$0xff]  ;;  %v3732_v28 = vld [vmem:[%s5659_s0 + $0x5c0] sm:$0x7] }
  0x45   :  { %3570 = vmatmul.mubr.msk.f32.gmra.mrb[28].mxu0 %vm52_vm3, %v4384_v59  ;;  %4013 = vmatprep.subr.bf16.mxu1 %v4012_v37  ;;  %v3677_v36 = vld [vmem:[%s5659_s0 + $0x4d8] sm:$0x7]  ;;  %v4054_v37 = vpack.c.bf16 %v3660_v30, %v3652_v29  ;;  %v3726_v29 = vld [vmem:[%s5659_s0 + $0x590] sm:$0xff] }
  0x46   :  { %3575 = vmatmul.mubr.msk.f32.gmra.mrb[28].mxu1 %vm52_vm3, %v4384_v59  ;;  %1183 = vmatprep.mubr.f32.mxu0 %v4210_v3  ;;  %v4056_v42 = vpack.c.bf16 %v3677_v36, %v3669_v35  ;;  %v3715_v35 = vld [vmem:[%s5659_s0 + $0x538] sm:$0xff] }
  0x47   :  { %1266 = vmatprep.mubr.f32.mxu1 %v4210_v3  ;;  %v3723_v36 = vld [vmem:[%s5659_s0 + $0x578] sm:$0xff] }
  0x49   :  { %3578 = vmatmul.mubr.msk.f32.vlgmr.msra.gmra.mrb[30].mxu0 %vm52_vm3, %v4315_v34 }
  0x4a   :  { %3583 = vmatmul.mubr.msk.f32.vlgmr.msra.gmra.mrb[30].mxu1 %vm52_vm3, %v4315_v34  ;;  %4005 = vmatpush1.bf16.msra.mxu0 %v4004_v45  ;;  %v3663_v45 = vld [vmem:[%s5659_s0 + $0x468] sm:$0xff] }
  0x4b   :  { %4015 = vmatpush1.bf16.msra.mxu1 %v4014_v49  ;;  %1189 = vmatprep.mubr.f32.mxu0 %v4210_v3  ;;  %v4049_v49 = vpack.c.bf16 %v3674_v40, %v3666_v39  ;;  %v4062_v51 = vpack.c.bf16 %v3663_v45, %v3655_v44  ;;  %v4112_v40 = vpack.c.bf16 %v3723_v36, %v3715_v35  ;;  %v3722_v44 = vld [vmem:[%s5659_s0 + $0x570] sm:$0xff]  ;;  %v3729_v45 = vld [vmem:[%s5659_s0 + $0x5a8] sm:$0xff] }
  0x4c   :  { %1272 = vmatprep.mubr.f32.mxu1 %v4210_v3  ;;  %4008 = vmatprep.subr.msk.bf16.mxu0 %vm4266_vm2, %v4006_v50  ;;  %v4059_v50 = vpack.c.bf16 %v3676_v43, %v3668_v41  ;;  %v3712_v41 = vld [vmem:[%s5659_s0 + $0x520] sm:$0xff]  ;;  %v3714_v43 = vld [vmem:[%s5659_s0 + $0x530] sm:$0xff]  ;;  %v3795_v35 = vld [vmem:[%s5659_s0 + $0x6e8] sm:$0x7] }
  0x4d   :  { %3579 = vmatmul.mubr.msk.f32.gmra.mrb[32].mxu0 %vm52_vm3, %v4348_v47  ;;  %4018 = vmatprep.subr.msk.bf16.mxu1 %vm4266_vm2, %v4016_v54  ;;  %v3662_v54 = vld [vmem:[%s5659_s0 + $0x460] sm:$0xff] }
  0x4e   :  { %3584 = vmatmul.mubr.msk.f32.gmra.mrb[32].mxu1 %vm52_vm3, %v4348_v47  ;;  %1195 = vmatprep.mubr.f32.mxu0 %v4210_v3  ;;  %v4064_v60 = vpack.c.bf16 %v3662_v54, %v3654_v53  ;;  %v3728_v53 = vld [vmem:[%s5659_s0 + $0x5a0] sm:$0xff] }
  0x4f   :  { %1278 = vmatprep.mubr.f32.mxu1 %v4210_v3  ;;  %4011 = vmatpush1.bf16.msk.msra.mxu0 %vm4266_vm2, %v4009_v61  ;;  %v3673_v61 = vld [vmem:[%s5659_s0 + $0x4b8] sm:$0xff]  ;;  %v3736_v54 = vld [vmem:[%s5659_s0 + $0x5e0] sm:$0x7] }
  0x50   :  { %4021 = vmatpush1.bf16.msk.msra.mxu1 %vm4266_vm2, %v4019_v62  ;;  %4023 = vmatprep.subr.bf16.mxu0 %v4022_v63  ;;  %v3681_v62 = vld [vmem:[%s5659_s0 + $0x4f8] sm:$0x7]  ;;  %v4074_v63 = vpack.c.bf16 %v3664_v56, %v3656_v55  ;;  %v3730_v55 = vld [vmem:[%s5659_s0 + $0x5b0] sm:$0xff] }
  0x51   :  { %3580 = vmatmul.mubr.msk.f32.gmra.mrb[34].mxu0 %vm52_vm3, %v4384_v59  ;;  %4033 = vmatprep.subr.bf16.mxu1 %v4032_v0  ;;  %v4066_v0 = vpack.c.bf16 %v3679_v58, %v3671_v57  ;;  %v4076_v5 = vpack.c.bf16 %v3681_v62, %v3673_v61  ;;  %v3738_v57 = vld [vmem:[%s5659_s0 + $0x5f0] sm:$0x7]  ;;  %v3767_v58 = vld [vmem:[%s5659_s0 + $0x608] sm:$0xff]  ;;  %v3769_v61 = vld [vmem:[%s5659_s0 + $0x618] sm:$0xff] }
  0x52   :  { %3585 = vmatmul.mubr.msk.f32.gmra.mrb[34].mxu1 %vm52_vm3, %v4384_v59  ;;  %1443 = vmatprep.mubr.f32.mxu0 %v4210_v3  ;;  %v3777_v62 = vld [vmem:[%s5659_s0 + $0x658] sm:$0xff] }
  0x53   :  { %1526 = vmatprep.mubr.f32.mxu1 %v4210_v3 }
  0x55   :  { %3626 = vmatmul.mubr.msk.f32.vlgmr.msra.gmra.mrb[36].mxu0 %vm52_vm3, %v4315_v34 }
  0x56   :  { %3631 = vmatmul.mubr.msk.f32.vlgmr.msra.gmra.mrb[36].mxu1 %vm52_vm3, %v4315_v34  ;;  %4025 = vmatpush1.bf16.msra.mxu0 %v4024_v8  ;;  %v3717_v8 = vld [vmem:[%s5659_s0 + $0x548] sm:$0xff] }
  0x57   :  { %4035 = vmatpush1.bf16.msra.mxu1 %v4034_v11  ;;  %1449 = vmatprep.mubr.f32.mxu0 %v4210_v3  ;;  %v4069_v11 = vpack.c.bf16 %v3678_v2, %v3670_v1  ;;  %v4082_v13 = vpack.c.bf16 %v3717_v8, %v3709_v7  ;;  %v4132_v2 = vpack.c.bf16 %v3777_v62, %v3769_v61  ;;  %v3776_v7 = vld [vmem:[%s5659_s0 + $0x650] sm:$0xff]  ;;  %v3783_v8 = vld [vmem:[%s5659_s0 + $0x688] sm:$0xff] }
  0x58   :  { %1532 = vmatprep.mubr.f32.mxu1 %v4210_v3  ;;  %4028 = vmatprep.subr.msk.bf16.mxu0 %vm4266_vm2, %v4026_v12  ;;  %v4079_v12 = vpack.c.bf16 %v3680_v6, %v3672_v4  ;;  %v3766_v4 = vld [vmem:[%s5659_s0 + $0x600] sm:$0xff]  ;;  %v3768_v6 = vld [vmem:[%s5659_s0 + $0x610] sm:$0xff]  ;;  %v3849_v61 = vld [vmem:[%s5659_s0 + $0x7c8] sm:$0x7] }
  0x59   :  { %3627 = vmatmul.mubr.msk.f32.gmra.mrb[38].mxu0 %vm52_vm3, %v4348_v47  ;;  %4038 = vmatprep.subr.msk.bf16.mxu1 %vm4266_vm2, %v4036_v17  ;;  %v3716_v17 = vld [vmem:[%s5659_s0 + $0x540] sm:$0xff] }
  0x5a   :  { %3632 = vmatmul.mubr.msk.f32.gmra.mrb[38].mxu1 %vm52_vm3, %v4348_v47  ;;  %1455 = vmatprep.mubr.f32.mxu0 %v4210_v3  ;;  %v4084_v22 = vpack.c.bf16 %v3716_v17, %v3708_v15  ;;  %v3782_v15 = vld [vmem:[%s5659_s0 + $0x680] sm:$0xff] }
  0x5b   :  { %1538 = vmatprep.mubr.f32.mxu1 %v4210_v3  ;;  %4031 = vmatpush1.bf16.msk.msra.mxu0 %vm4266_vm2, %v4029_v23  ;;  %v3727_v23 = vld [vmem:[%s5659_s0 + $0x598] sm:$0xff]  ;;  %v3790_v17 = vld [vmem:[%s5659_s0 + $0x6c0] sm:$0x7] }
  0x5c   :  { %4041 = vmatpush1.bf16.msk.msra.mxu1 %vm4266_vm2, %v4039_v24  ;;  %4043 = vmatprep.subr.bf16.mxu0 %v4042_v25  ;;  %v3735_v24 = vld [vmem:[%s5659_s0 + $0x5d8] sm:$0x7]  ;;  %v4094_v25 = vpack.c.bf16 %v3718_v19, %v3710_v18  ;;  %v3784_v18 = vld [vmem:[%s5659_s0 + $0x690] sm:$0xff] }
  0x5d   :  { %3628 = vmatmul.mubr.msk.f32.gmra.mrb[40].mxu0 %vm52_vm3, %v4384_v59  ;;  %4053 = vmatprep.subr.bf16.mxu1 %v4052_v26  ;;  %v4086_v26 = vpack.c.bf16 %v3733_v21, %v3725_v20  ;;  %v4096_v30 = vpack.c.bf16 %v3735_v24, %v3727_v23  ;;  %v3792_v20 = vld [vmem:[%s5659_s0 + $0x6d0] sm:$0x7]  ;;  %v3771_v21 = vld [vmem:[%s5659_s0 + $0x628] sm:$0xff]  ;;  %v5193_v23 = vld [vmem:[%s5660_s1] sm:$0xff] }
  0x5e   :  { %3633 = vmatmul.mubr.msk.f32.gmra.mrb[40].mxu1 %vm52_vm3, %v4384_v59  ;;  %1609 = vmatprep.mubr.f32.mxu0 %v4210_v3  ;;  %v3781_v24 = vld [vmem:[%s5659_s0 + $0x678] sm:$0xff] }
  0x5f   :  { %1692 = vmatprep.mubr.f32.mxu1 %v4210_v3 }
  0x61   :  { %3636 = vmatmul.mubr.msk.f32.vlgmr.msra.gmra.mrb[42].mxu0 %vm52_vm3, %v4315_v34 }
  0x62   :  { %3641 = vmatmul.mubr.msk.f32.vlgmr.msra.gmra.mrb[42].mxu1 %vm52_vm3, %v4315_v34  ;;  %4045 = vmatpush1.bf16.msra.mxu0 %v4044_v33  ;;  %v3721_v33 = vld [vmem:[%s5659_s0 + $0x568] sm:$0xff] }
  0x63   :  { %4055 = vmatpush1.bf16.msra.mxu1 %v4054_v37  ;;  %1615 = vmatprep.mubr.f32.mxu0 %v4210_v3  ;;  %v4089_v37 = vpack.c.bf16 %v3732_v28, %v3724_v27  ;;  %v4102_v39 = vpack.c.bf16 %v3721_v33, %v3713_v32  ;;  %v3780_v32 = vld [vmem:[%s5659_s0 + $0x670] sm:$0xff]  ;;  %v3787_v33 = vld [vmem:[%s5659_s0 + $0x6a8] sm:$0xff] }
  0x64   :  { %1698 = vmatprep.mubr.f32.mxu1 %v4210_v3  ;;  %4048 = vmatprep.subr.msk.bf16.mxu0 %vm4266_vm2, %v4046_v38  ;;  %v4099_v38 = vpack.c.bf16 %v3734_v31, %v3726_v29  ;;  %v5214_v29 = vld [vmem:[%s5660_s1 + $0x8] sm:$0xff]  ;;  %v3772_v31 = vld [vmem:[%s5659_s0 + $0x630] sm:$0xff] }
  0x65   :  { %3637 = vmatmul.mubr.msk.f32.gmra.mrb[44].mxu0 %vm52_vm3, %v4348_v47  ;;  %4058 = vmatprep.subr.msk.bf16.mxu1 %vm4266_vm2, %v4056_v42  ;;  %v3720_v42 = vld [vmem:[%s5659_s0 + $0x560] sm:$0xff] }
  0x66   :  { %3642 = vmatmul.mubr.msk.f32.gmra.mrb[44].mxu1 %vm52_vm3, %v4348_v47  ;;  %1621 = vmatprep.mubr.f32.mxu0 %v4210_v3  ;;  %v4104_v48 = vpack.c.bf16 %v3720_v42, %v3712_v41  ;;  %v3786_v41 = vld [vmem:[%s5659_s0 + $0x6a0] sm:$0xff]  ;;  %v3788_v42 = vld [vmem:[%s5659_s0 + $0x6b0] sm:$0xff] }
  0x67   :  { %1704 = vmatprep.mubr.f32.mxu1 %v4210_v3  ;;  %4051 = vmatpush1.bf16.msk.msra.mxu0 %vm4266_vm2, %v4049_v49  ;;  %v3731_v49 = vld [vmem:[%s5659_s0 + $0x5b8] sm:$0xff] }
  0x68   :  { %4061 = vmatpush1.bf16.msk.msra.mxu1 %vm4266_vm2, %v4059_v50  ;;  %4063 = vmatprep.subr.bf16.mxu0 %v4062_v51  ;;  %v3739_v50 = vld [vmem:[%s5659_s0 + $0x5f8] sm:$0x7]  ;;  %v4114_v51 = vpack.c.bf16 %v3722_v44, %v3714_v43  ;;  %v3796_v44 = vld [vmem:[%s5659_s0 + $0x6f0] sm:$0x7] }
  0x69   :  { %3638 = vmatmul.mubr.msk.f32.gmra.mrb[46].mxu0 %vm52_vm3, %v4384_v59  ;;  %4073 = vmatprep.subr.bf16.mxu1 %v4072_v52  ;;  %v4106_v52 = vpack.c.bf16 %v3737_v46, %v3729_v45  ;;  %v4116_v56 = vpack.c.bf16 %v3739_v50, %v3731_v49  ;;  %v3825_v45 = vld [vmem:[%s5659_s0 + $0x708] sm:$0xff]  ;;  %v3835_v49 = vld [vmem:[%s5659_s0 + $0x758] sm:$0xff] }
  0x6a   :  { %3643 = vmatmul.mubr.msk.f32.gmra.mrb[46].mxu1 %vm52_vm3, %v4384_v59  ;;  %1869 = vmatprep.mubr.f32.mxu0 %v4210_v3  ;;  %v3833_v46 = vld [vmem:[%s5659_s0 + $0x748] sm:$0xff] }
  0x6b   :  { %1952 = vmatprep.mubr.f32.mxu1 %v4210_v3 }
  0x6d   :  { %3684 = vmatmul.mubr.msk.f32.vlgmr.msra.gmra.mrb[48].mxu0 %vm52_vm3, %v4315_v34 }
  0x6e   :  { %3689 = vmatmul.mubr.msk.f32.vlgmr.msra.gmra.mrb[48].mxu1 %vm52_vm3, %v4315_v34  ;;  %4065 = vmatpush1.bf16.msra.mxu0 %v4064_v60  ;;  %v3775_v60 = vld [vmem:[%s5659_s0 + $0x648] sm:$0xff] }
  0x6f   :  { %4075 = vmatpush1.bf16.msra.mxu1 %v4074_v63  ;;  %1875 = vmatprep.mubr.f32.mxu0 %v4210_v3  ;;  %v4109_v63 = vpack.c.bf16 %v3736_v54, %v3728_v53  ;;  %v4122_v1 = vpack.c.bf16 %v3775_v60, %v3767_v58  ;;  %v3824_v54 = vld [vmem:[%s5659_s0 + $0x700] sm:$0xff]  ;;  %v5313_v58 = vld [vmem:[%s5660_s1 + $0x10] sm:$0x3]  ;;  %v3841_v60 = vld [vmem:[%s5659_s0 + $0x788] sm:$0xff] }
  0x70   :  { %1958 = vmatprep.mubr.f32.mxu1 %v4210_v3  ;;  %4068 = vmatprep.subr.msk.bf16.mxu0 %vm4266_vm2, %v4066_v0  ;;  %v4119_v0 = vpack.c.bf16 %v3738_v57, %v3730_v55  ;;  %v3832_v55 = vld [vmem:[%s5659_s0 + $0x740] sm:$0xff]  ;;  %v3834_v57 = vld [vmem:[%s5659_s0 + $0x750] sm:$0xff] }
  0x71   :  { %3685 = vmatmul.mubr.msk.f32.gmra.mrb[50].mxu0 %vm52_vm3, %v4348_v47  ;;  %4078 = vmatprep.subr.msk.bf16.mxu1 %vm4266_vm2, %v4076_v5  ;;  %v3774_v5 = vld [vmem:[%s5659_s0 + $0x640] sm:$0xff]  ;;  %v4164_v62 = vpack.c.bf16 %v3832_v55, %v3824_v54 }
  0x72   :  { %3690 = vmatmul.mubr.msk.f32.gmra.mrb[50].mxu1 %vm52_vm3, %v4348_v47  ;;  %1881 = vmatprep.mubr.f32.mxu0 %v4210_v3  ;;  %v4124_v10 = vpack.c.bf16 %v3774_v5, %v3766_v4  ;;  %v3840_v4 = vld [vmem:[%s5659_s0 + $0x780] sm:$0xff] }
  0x73   :  { %1964 = vmatprep.mubr.f32.mxu1 %v4210_v3  ;;  %4071 = vmatpush1.bf16.msk.msra.mxu0 %vm4266_vm2, %v4069_v11  ;;  %v3785_v11 = vld [vmem:[%s5659_s0 + $0x698] sm:$0xff]  ;;  %v3848_v5 = vld [vmem:[%s5659_s0 + $0x7c0] sm:$0x7] }
  0x74   :  { %4081 = vmatpush1.bf16.msk.msra.mxu1 %vm4266_vm2, %v4079_v12  ;;  %4083 = vmatprep.subr.bf16.mxu0 %v4082_v13  ;;  %v3793_v12 = vld [vmem:[%s5659_s0 + $0x6d8] sm:$0x7]  ;;  %v4134_v13 = vpack.c.bf16 %v3776_v7, %v3768_v6  ;;  %v3842_v6 = vld [vmem:[%s5659_s0 + $0x790] sm:$0xff] }
  0x75   :  { %3686 = vmatmul.mubr.msk.f32.gmra.mrb[52].mxu0 %vm52_vm3, %v4384_v59  ;;  %4093 = vmatprep.subr.bf16.mxu1 %v4092_v14  ;;  %v4126_v14 = vpack.c.bf16 %v3791_v9, %v3783_v8  ;;  %v4136_v19 = vpack.c.bf16 %v3793_v12, %v3785_v11  ;;  %v3850_v8 = vld [vmem:[%s5659_s0 + $0x7d0] sm:$0x7]  ;;  %v3829_v9 = vld [vmem:[%s5659_s0 + $0x728] sm:$0xff]  ;;  %v3831_v11 = vld [vmem:[%s5659_s0 + $0x738] sm:$0xff] }
  0x76   :  { %3691 = vmatmul.mubr.msk.f32.gmra.mrb[52].mxu1 %vm52_vm3, %v4384_v59  ;;  %2035 = vmatprep.mubr.f32.mxu0 %v4210_v3  ;;  %v3839_v12 = vld [vmem:[%s5659_s0 + $0x778] sm:$0xff] }
  0x77   :  { %2118 = vmatprep.mubr.f32.mxu1 %v4210_v3 }
  0x79   :  { %3694 = vmatmul.mubr.msk.f32.vlgmr.msra.gmra.mrb[54].mxu0 %vm52_vm3, %v4315_v34 }
  0x7a   :  { %3699 = vmatmul.mubr.msk.f32.vlgmr.msra.gmra.mrb[54].mxu1 %vm52_vm3, %v4315_v34  ;;  %4085 = vmatpush1.bf16.msra.mxu0 %v4084_v22  ;;  %v3779_v22 = vld [vmem:[%s5659_s0 + $0x668] sm:$0xff] }
  0x7b   :  { %4095 = vmatpush1.bf16.msra.mxu1 %v4094_v25  ;;  %2041 = vmatprep.mubr.f32.mxu0 %v4210_v3  ;;  %v4129_v25 = vpack.c.bf16 %v3790_v17, %v3782_v15  ;;  %v4142_v27 = vpack.c.bf16 %v3779_v22, %v3771_v21  ;;  %v4192_v17 = vpack.c.bf16 %v3839_v12, %v3831_v11  ;;  %v3838_v21 = vld [vmem:[%s5659_s0 + $0x770] sm:$0xff]  ;;  %v3845_v22 = vld [vmem:[%s5659_s0 + $0x7a8] sm:$0xff] }
  0x7c   :  { %2124 = vmatprep.mubr.f32.mxu1 %v4210_v3  ;;  %4088 = vmatprep.subr.msk.bf16.mxu0 %vm4266_vm2, %v4086_v26  ;;  %v4139_v26 = vpack.c.bf16 %v3792_v20, %v3784_v18  ;;  %v3828_v18 = vld [vmem:[%s5659_s0 + $0x720] sm:$0xff]  ;;  %v3830_v20 = vld [vmem:[%s5659_s0 + $0x730] sm:$0xff] }
  0x7d   :  { %3695 = vmatmul.mubr.msk.f32.gmra.mrb[56].mxu0 %vm52_vm3, %v4348_v47  ;;  %4098 = vmatprep.subr.msk.bf16.mxu1 %vm4266_vm2, %v4096_v30  ;;  %v3778_v30 = vld [vmem:[%s5659_s0 + $0x660] sm:$0xff] }
  0x7e   :  { %3700 = vmatmul.mubr.msk.f32.gmra.mrb[56].mxu1 %vm52_vm3, %v4348_v47  ;;  %2047 = vmatprep.mubr.f32.mxu0 %v4210_v3 }
  0x7f   :  { %2130 = vmatprep.mubr.f32.mxu1 %v4210_v3  ;;  %4091 = vmatpush1.bf16.msk.msra.mxu0 %vm4266_vm2, %v4089_v37  ;;  %v3789_v37 = vld [vmem:[%s5659_s0 + $0x6b8] sm:$0xff] }
  0x80   :  { %4101 = vmatpush1.bf16.msk.msra.mxu1 %vm4266_vm2, %v4099_v38  ;;  %4103 = vmatprep.subr.bf16.mxu0 %v4102_v39  ;;  %v3797_v38 = vld [vmem:[%s5659_s0 + $0x6f8] sm:$0x7]  ;;  %v4154_v39 = vpack.c.bf16 %v3780_v32, %v3772_v31  ;;  %v3846_v32 = vld [vmem:[%s5659_s0 + $0x7b0] sm:$0xff] }
  0x81   :  { %3696 = vmatmul.mubr.msk.f32.gmra.mrb[58].mxu0 %vm52_vm3, %v4384_v59  ;;  %4113 = vmatprep.subr.bf16.mxu1 %v4112_v40  ;;  %v4146_v40 = vpack.c.bf16 %v3795_v35, %v3787_v33  ;;  %v4156_v43 = vpack.c.bf16 %v3797_v38, %v3789_v37  ;;  %v3854_v33 = vld [vmem:[%s5659_s0 + $0x7f0] sm:$0x7] }
  0x82   :  { %3701 = vmatmul.mubr.msk.f32.gmra.mrb[58].mxu1 %vm52_vm3, %v4384_v59  ;;  %2295 = vmatprep.mubr.f32.mxu0 %v4210_v3 }
  0x83   :  { %2378 = vmatprep.mubr.f32.mxu1 %v4210_v3 }
  0x85   :  { %3742 = vmatmul.mubr.msk.f32.vlgmr.msra.gmra.mrb[60].mxu0 %vm52_vm3, %v4315_v34 }
  0x86   :  { %3747 = vmatmul.mubr.msk.f32.vlgmr.msra.gmra.mrb[60].mxu1 %vm52_vm3, %v4315_v34  ;;  %4105 = vmatpush1.bf16.msra.mxu0 %v4104_v48  ;;  %v3827_v48 = vld [vmem:[%s5659_s0 + $0x718] sm:$0xff] }
  0x87   :  { %4115 = vmatpush1.bf16.msra.mxu1 %v4114_v51  ;;  %2301 = vmatprep.mubr.f32.mxu0 %v4210_v3  ;;  %v4159_v51 = vpack.c.bf16 %v3796_v44, %v3788_v42  ;;  %v4172_v53 = vpack.c.bf16 %v3835_v49, %v3827_v48 }
  0x88   :  { %2384 = vmatprep.mubr.f32.mxu1 %v4210_v3  ;;  %4108 = vmatprep.subr.msk.bf16.mxu0 %vm4266_vm2, %v4106_v52  ;;  %v4162_v52 = vpack.c.bf16 %v3833_v46, %v3825_v45 }
  0x89   :  { %3743 = vmatmul.mubr.msk.f32.gmra.mrb[62].mxu0 %vm52_vm3, %v4348_v47  ;;  %4118 = vmatprep.subr.msk.bf16.mxu1 %vm4266_vm2, %v4116_v56  ;;  %v3826_v56 = vld [vmem:[%s5659_s0 + $0x710] sm:$0xff] }
  0x8a   :  { %3748 = vmatmul.mubr.msk.f32.gmra.mrb[62].mxu1 %vm52_vm3, %v4348_v47  ;;  %2307 = vmatprep.mubr.f32.mxu0 %v4210_v3 }
  0x8b   :  { %2390 = vmatprep.mubr.f32.mxu1 %v4210_v3  ;;  %4111 = vmatpush1.bf16.msk.msra.mxu0 %vm4266_vm2, %v4109_v63  ;;  %v3843_v63 = vld [vmem:[%s5659_s0 + $0x798] sm:$0xff] }
  0x8c   :  { %4121 = vmatpush1.bf16.msk.msra.mxu1 %vm4266_vm2, %v4119_v0  ;;  %4123 = vmatprep.subr.bf16.mxu0 %v4122_v1  ;;  %v3851_v0 = vld [vmem:[%s5659_s0 + $0x7d8] sm:$0x7]  ;;  %v4174_v1 = vpack.c.bf16 %v3834_v57, %v3826_v56 }
  0x8d   :  { %3744 = vmatmul.mubr.msk.f32.gmra.mrb[64].mxu0 %vm52_vm3, %v4384_v59  ;;  %4133 = vmatprep.subr.bf16.mxu1 %v4132_v2  ;;  %v4166_v2 = vpack.c.bf16 %v3849_v61, %v3841_v60  ;;  %v4176_v7 = vpack.c.bf16 %v3851_v0, %v3843_v63 }
  0x8e   :  { %3749 = vmatmul.mubr.msk.f32.gmra.mrb[64].mxu1 %vm52_vm3, %v4384_v59  ;;  %2461 = vmatprep.mubr.f32.mxu0 %v4210_v3 }
  0x8f   :  { %2544 = vmatprep.mubr.f32.mxu1 %v4210_v3 }
  0x91   :  { %3752 = vmatmul.mubr.msk.f32.vlgmr.msra.gmra.mrb[66].mxu0 %vm52_vm3, %v4315_v34  ;;  %v3773_v34 = vld [vmem:[%s5659_s0 + $0x638] sm:$0xff] }
  0x92   :  { %3757 = vmatmul.mubr.msk.f32.vlgmr.msra.gmra.mrb[66].mxu1 %vm52_vm3, %v5193_v23  ;;  %4125 = vmatpush1.bf16.msra.mxu0 %v4124_v10  ;;  %v4152_v28 = vpack.c.bf16 %v3781_v24, %v3773_v34  ;;  %v3837_v10 = vld [vmem:[%s5659_s0 + $0x768] sm:$0xff] }
  0x93   :  { %4135 = vmatpush1.bf16.msra.mxu1 %v4134_v13  ;;  %2467 = vmatprep.mubr.f32.mxu0 %v4210_v3  ;;  %v4169_v13 = vpack.c.bf16 %v3848_v5, %v3840_v4  ;;  %v4182_v15 = vpack.c.bf16 %v3837_v10, %v3829_v9  ;;  %v3853_v34 = vld [vmem:[%s5659_s0 + $0x7e8] sm:$0x7] }
  0x94   :  { %2550 = vmatprep.mubr.f32.mxu1 %v4210_v3  ;;  %4128 = vmatprep.subr.msk.bf16.mxu0 %vm4266_vm2, %v4126_v14  ;;  %v4179_v14 = vpack.c.bf16 %v3850_v8, %v3842_v6 }
  0x95   :  { %3753 = vmatmul.mubr.msk.f32.gmra.mrb[68].mxu0 %vm52_vm3, %v4348_v47  ;;  %4138 = vmatprep.subr.msk.bf16.mxu1 %vm4266_vm2, %v4136_v19  ;;  %v3770_v47 = vld [vmem:[%s5659_s0 + $0x620] sm:$0xff] }
  0x96   :  { %3758 = vmatmul.mubr.msk.f32.gmra.mrb[68].mxu1 %vm52_vm3, %v5214_v29  ;;  %2473 = vmatprep.mubr.f32.mxu0 %v4210_v3  ;;  %v4144_v36 = vpack.c.bf16 %v3778_v30, %v3770_v47  ;;  %v3836_v19 = vld [vmem:[%s5659_s0 + $0x760] sm:$0xff] }
  0x97   :  { %2556 = vmatprep.mubr.f32.mxu1 %v4210_v3  ;;  %4131 = vmatpush1.bf16.msk.msra.mxu0 %vm4266_vm2, %v4129_v25  ;;  %v4184_v24 = vpack.c.bf16 %v3836_v19, %v3828_v18  ;;  %v3847_v25 = vld [vmem:[%s5659_s0 + $0x7b8] sm:$0xff]  ;;  %v3844_v47 = vld [vmem:[%s5659_s0 + $0x7a0] sm:$0xff] }
  0x98   :  { %4141 = vmatpush1.bf16.msk.msra.mxu1 %vm4266_vm2, %v4139_v26  ;;  %4143 = vmatprep.subr.bf16.mxu0 %v4142_v27  ;;  %v3855_v26 = vld [vmem:[%s5659_s0 + $0x7f8] sm:$0x7]  ;;  %v4194_v27 = vpack.c.bf16 %v3838_v21, %v3830_v20  ;;  %v3852_v30 = vld [vmem:[%s5659_s0 + $0x7e0] sm:$0x7] }
  0x99   :  { %3754 = vmatmul.mubr.msk.f32.gmra.mrb[70].mxu0 %vm52_vm3, %v4384_v59  ;;  %4153 = vmatprep.subr.bf16.mxu1 %v4152_v28  ;;  %v4186_v28 = vpack.c.bf16 %v3853_v34, %v3845_v22  ;;  %v4196_v31 = vpack.c.bf16 %v3855_v26, %v3847_v25  ;;  %v4189_v35 = vpack.c.bf16 %v3852_v30, %v3844_v47 }
  0x9a   :  { %3759 = vmatmul.mubr.msk.f32.gmra.mrb[70].mxu1 %vm52_vm3, %v4384_v59  ;;  %2721 = vmatprep.mubr.f32.mxu0 %v4210_v3  ;;  %v3794_v59 = vld [vmem:[%s5659_s0 + $0x6e0] sm:$0x7] }
  0x9b   :  { %2804 = vmatprep.mubr.f32.mxu1 %v4210_v3  ;;  %v4149_v50 = vpack.c.bf16 %v3794_v59, %v3786_v41 }
  0x9d   :  { %3800 = vmatmul.mubr.msk.f32.vlgmr.msra.gmra.mrb[72].mxu0 %vm52_vm3, %v5193_v23 }
  0x9e   :  { %3805 = vmatmul.mubr.msk.f32.vlgmr.msra.gmra.mrb[72].mxu1 %vm52_vm3, %v5193_v23  ;;  %4145 = vmatpush1.bf16.msra.mxu0 %v4144_v36  ;;  %v4199_v36 = vpack.c.bf16 %v3854_v33, %v3846_v32 }
  0x9f   :  { %4155 = vmatpush1.bf16.msra.mxu1 %v4154_v39  ;;  %2727 = vmatprep.mubr.f32.mxu0 %v4210_v3 }
  0xa0   :  { %2810 = vmatprep.mubr.f32.mxu1 %v4210_v3  ;;  %4148 = vmatprep.subr.msk.bf16.mxu0 %vm4266_vm2, %v4146_v40 }
  0xa1   :  { %3801 = vmatmul.mubr.msk.f32.gmra.mrb[74].mxu0 %vm52_vm3, %v5214_v29  ;;  %4158 = vmatprep.subr.msk.bf16.mxu1 %vm4266_vm2, %v4156_v43 }
  0xa2   :  { %3806 = vmatmul.mubr.msk.f32.gmra.mrb[74].mxu1 %vm52_vm3, %v5214_v29  ;;  %2733 = vmatprep.mubr.f32.mxu0 %v4210_v3 }
  0xa3   :  { %2816 = vmatprep.mubr.f32.mxu1 %v4210_v3  ;;  %4151 = vmatpush1.bf16.msk.msra.mxu0 %vm4266_vm2, %v4149_v50  ;;  %v5475_v20 = vpop.permute.xlu1 %449 }
  0xa4   :  { %4161 = vmatpush1.bf16.msk.msra.mxu1 %vm4266_vm2, %v4159_v51  ;;  %4163 = vmatprep.subr.bf16.mxu0 %v4162_v52  ;;  %v5461_v52 = vpop.permute.xlu0 %439 }
  0xa5   :  { %3802 = vmatmul.mubr.msk.f32.gmra.mrb[76].mxu0 %vm52_vm3, %v5313_v58  ;;  %4173 = vmatprep.subr.bf16.mxu1 %v4172_v53 }
  0xa6   :  { %3807 = vmatmul.mubr.msk.f32.gmra.mrb[76].mxu1 %vm52_vm3, %v5313_v58  ;;  %2887 = vmatprep.mubr.f32.mxu0 %v4210_v3 }
  0xa7   :  { %2970 = vmatprep.mubr.f32.mxu1 %v4210_v3 }
  0xa9   :  { %3810 = vmatmul.mubr.msk.f32.vlgmr.msra.gmra.mrb[78].mxu0 %vm52_vm3, %v5193_v23 }
  0xaa   :  { %3815 = vmatmul.mubr.msk.f32.vlgmr.msra.gmra.mrb[78].mxu1 %vm52_vm3, %v5193_v23  ;;  %4165 = vmatpush1.bf16.msra.mxu0 %v4164_v62 }
  0xab   :  { %4175 = vmatpush1.bf16.msra.mxu1 %v4174_v1  ;;  %2893 = vmatprep.mubr.f32.mxu0 %v4210_v3 }
  0xac   :  { %2976 = vmatprep.mubr.f32.mxu1 %v4210_v3  ;;  %4168 = vmatprep.subr.msk.bf16.mxu0 %vm4266_vm2, %v4166_v2 }
  0xad   :  { %3811 = vmatmul.mubr.msk.f32.gmra.mrb[80].mxu0 %vm52_vm3, %v5214_v29  ;;  %4178 = vmatprep.subr.msk.bf16.mxu1 %vm4266_vm2, %v4176_v7 }
  0xae   :  { %3816 = vmatmul.mubr.msk.f32.gmra.mrb[80].mxu1 %vm52_vm3, %v5214_v29  ;;  %2899 = vmatprep.mubr.f32.mxu0 %v4210_v3  ;;  %v5465_v6 = vpop.permute.xlu0 %444 }
  0xaf   :  { %2982 = vmatprep.mubr.f32.mxu1 %v4210_v3  ;;  %4171 = vmatpush1.bf16.msk.msra.mxu0 %vm4266_vm2, %v4169_v13 }
  0xb0   :  { %4181 = vmatpush1.bf16.msk.msra.mxu1 %vm4266_vm2, %v4179_v14  ;;  %4183 = vmatprep.subr.bf16.mxu0 %v4182_v15 }
  0xb1   :  { %3812 = vmatmul.mubr.msk.f32.gmra.mrb[82].mxu0 %vm52_vm3, %v5313_v58  ;;  %4193 = vmatprep.subr.bf16.mxu1 %v4192_v17 }
  0xb2   :  { %3817 = vmatmul.mubr.msk.f32.gmra.mrb[82].mxu1 %vm52_vm3, %v5313_v58  ;;  %3147 = vmatprep.mubr.f32.mxu0 %v4210_v3 }
  0xb3   :  { %3230 = vmatprep.mubr.f32.mxu1 %v4210_v3 }
  0xb5   :  { %3858 = vmatmul.mubr.msk.f32.vlgmr.msra.gmra.mrb[84].mxu0 %vm52_vm3, %v5193_v23 }
  0xb6   :  { %3863 = vmatmul.mubr.msk.f32.vlgmr.msra.gmra.mrb[84].mxu1 %vm52_vm3, %v5193_v23  ;;  %4185 = vmatpush1.bf16.msra.mxu0 %v4184_v24 }
  0xb7   :  { %4195 = vmatpush1.bf16.msra.mxu1 %v4194_v27  ;;  %3153 = vmatprep.mubr.f32.mxu0 %v4210_v3 }
  0xb8   :  { %3236 = vmatprep.mubr.f32.mxu1 %v4210_v3  ;;  %4188 = vmatprep.subr.msk.bf16.mxu0 %vm4266_vm2, %v4186_v28 }
  0xb9   :  { %3859 = vmatmul.mubr.msk.f32.gmra.mrb[86].mxu0 %vm52_vm3, %v5214_v29  ;;  %4198 = vmatprep.subr.msk.bf16.mxu1 %vm4266_vm2, %v4196_v31 }
  0xba   :  { %3864 = vmatmul.mubr.msk.f32.gmra.mrb[86].mxu1 %vm52_vm3, %v5214_v29  ;;  %3159 = vmatprep.mubr.f32.mxu0 %v4210_v3 }
  0xbb   :  { %3242 = vmatprep.mubr.f32.mxu1 %v4210_v3  ;;  %4191 = vmatpush1.bf16.msk.msra.mxu0 %vm4266_vm2, %v4189_v35 }
  0xbc   :  { %4201 = vmatpush1.bf16.msk.msra.mxu1 %vm4266_vm2, %v4199_v36 }
  0xbd   :  { %3860 = vmatmul.mubr.msk.f32.gmra.mrb[88].mxu0 %vm52_vm3, %v5313_v58 }
  0xbe   :  { %3865 = vmatmul.mubr.msk.f32.gmra.mrb[88].mxu1 %vm52_vm3, %v5313_v58  ;;  %3313 = vmatprep.mubr.f32.mxu0 %v4210_v3 }
  0xbf   :  { %3396 = vmatprep.mubr.f32.mxu1 %v4210_v3 }
  0xc1   :  { %3868 = vmatmul.mubr.msk.f32.vlgmr.msra.gmra.mrb[90].mxu0 %vm52_vm3, %v5193_v23 }
  0xc2   :  { %3873 = vmatmul.mubr.msk.f32.vlgmr.msra.gmra.mrb[90].mxu1 %vm52_vm3, %v5193_v23  ;;  %3319 = vmatprep.mubr.f32.mxu0 %v4210_v3 }
  0xc3   :  { %3402 = vmatprep.mubr.f32.mxu1 %v4210_v3 }
  0xc5   :  { %3869 = vmatmul.mubr.msk.f32.gmra.mrb[92].mxu0 %vm52_vm3, %v5214_v29 }
  0xc6   :  { %3874 = vmatmul.mubr.msk.f32.gmra.mrb[92].mxu1 %vm52_vm3, %v5214_v29  ;;  %3325 = vmatprep.mubr.f32.mxu0 %v4210_v3 }
  0xc7   :  { %3408 = vmatprep.mubr.f32.mxu1 %v4210_v3 }
  0xc9   :  { %3870 = vmatmul.mubr.msk.f32.gmra.mrb[94].mxu0 %vm52_vm3, %v5313_v58 }
  0xca   :  { %3875 = vmatmul.mubr.msk.f32.gmra.mrb[94].mxu1 %vm52_vm3, %v5313_v58 }
  0xe0   :  { %v153_v16 = vpop.f32.mrb[0].mxu0 }
  0xe1   :  { %v236_v23 = vpop.f32.mrb[0].mxu1  ;;  %v155_v37 = vpop.f32.mrb[1].mxu0 }
  0xe2   :  { %v419_v38 = vmax.f32 %v153_v16, %v236_v23  ;;  %v238_v39 = vpop.f32.mrb[1].mxu1 }
  0xe3   :  { %v420_v40 = vmax.f32 %v155_v37, %v238_v39 }
  0xe4   :  { %v159_v41 = vpop.f32.mrb[2].mxu0 }
  0xe5   :  { %v242_v59 = vpop.f32.mrb[2].mxu1  ;;  %v161_v42 = vpop.f32.mrb[3].mxu0 }
  0xe6   :  { %v421_v29 = vmax.f32 %v159_v41, %v242_v59  ;;  %v244_v43 = vpop.f32.mrb[3].mxu1 }
  0xe7   :  { %v422_v44 = vmax.f32 %v161_v42, %v244_v43 }
  0xe8   :  { %v165_v45 = vpop.f32.mrb[4].mxu0 }
  0xe9   :  { %v248_v3 = vpop.f32.mrb[4].mxu1  ;;  %v167_v46 = vpop.f32.mrb[5].mxu0 }
  0xea   :  { %v423_v48 = vmax.f32 %v165_v45, %v248_v3  ;;  %v250_v49 = vpop.f32.mrb[5].mxu1 }
  0xeb   :  { %v424_v50 = vmax.f32 %v167_v46, %v250_v49 }
  0xec   :  { %v319_v51 = vpop.f32.mrb[6].mxu0 }
  0xed   :  { %v402_v53 = vpop.f32.mrb[6].mxu1  ;;  %v321_v54 = vpop.f32.mrb[7].mxu0 }
  0xee   :  { %v425_v55 = vmax.f32 %v319_v51, %v402_v53  ;;  %v404_v56 = vpop.f32.mrb[7].mxu1 }
  0xef   :  { %v426_v57 = vmax.f32 %v321_v54, %v404_v56 }
  0xf0   :  { %v431_v58 = vmax.f32 %v419_v38, %v425_v55  ;;  %v325_v60 = vpop.f32.mrb[8].mxu0 }
  0xf1   :  { %v432_v61 = vmax.f32 %v420_v40, %v426_v57  ;;  %v408_v62 = vpop.f32.mrb[8].mxu1  ;;  %v327_v63 = vpop.f32.mrb[9].mxu0 }
  0xf2   :  { %v452_v0 = vadd.f32 %v5461_v52, %v431_v58  ;;  %v427_v1 = vmax.f32 %v325_v60, %v408_v62  ;;  %v410_v2 = vpop.f32.mrb[9].mxu1 }
  0xf3   :  { %v453_v4 = vadd.f32 %v5461_v52, %v432_v61  ;;  %v428_v5 = vmax.f32 %v327_v63, %v410_v2 }
  0xf4   :  { %v458_v7 = vmax.f32 %v452_v0, 0.0  ;;  %v433_v8 = vmax.f32 %v421_v29, %v427_v1  ;;  %v331_v9 = vpop.f32.mrb[10].mxu0 }
  0xf5   :  { %v459_v10 = vmax.f32 %v453_v4, 0.0  ;;  %v434_v11 = vmax.f32 %v422_v44, %v428_v5  ;;  %v414_v12 = vpop.f32.mrb[10].mxu1  ;;  %v333_v13 = vpop.f32.mrb[11].mxu0 }
  0xf6   :  { %464 = vst [vmem:[%s5662_s3] sm:$0xff] %v458_v7  ;;  %v454_v14 = vadd.f32 %v5465_v6, %v433_v8  ;;  %v429_v15 = vmax.f32 %v331_v9, %v414_v12  ;;  %v416_v17 = vpop.f32.mrb[11].mxu1 }
  0xf7   :  { %465 = vst [vmem:[%s5662_s3 + $0x8] sm:$0xff] %v459_v10  ;;  %v455_v18 = vadd.f32 %v5465_v6, %v434_v11  ;;  %v430_v19 = vmax.f32 %v333_v13, %v416_v17 }
  0xf8   :  { %v460_v21 = vmax.f32 %v454_v14, 0.0  ;;  %v435_v22 = vmax.f32 %v423_v48, %v429_v15  ;;  %v593_v34 = vpop.f32.mrb[12].mxu0 }
  0xf9   :  { %v461_v24 = vmax.f32 %v455_v18, 0.0  ;;  %v436_v25 = vmax.f32 %v424_v50, %v430_v19  ;;  %v676_v26 = vpop.f32.mrb[12].mxu1  ;;  %v595_v27 = vpop.f32.mrb[13].mxu0 }
  0xfa   :  { %466 = vst [vmem:[%s5662_s3 + $0x10] sm:$0xff] %v460_v21  ;;  %v456_v28 = vadd.f32 %v5475_v20, %v435_v22  ;;  %v859_v47 = vmax.f32 %v593_v34, %v676_v26  ;;  %v678_v30 = vpop.f32.mrb[13].mxu1 }
  0xfb   :  { %467 = vst [vmem:[%s5662_s3 + $0x18] sm:$0xff] %v461_v24  ;;  %v457_v31 = vadd.f32 %v5475_v20, %v436_v25  ;;  %v860_v32 = vmax.f32 %v595_v27, %v678_v30 }
  0xfc   :  { %v462_v33 = vmax.f32 %v456_v28, 0.0  ;;  %v599_v35 = vpop.f32.mrb[14].mxu0 }
  0xfd   :  { %v463_v36 = vmax.f32 %v457_v31, 0.0  ;;  %v682_v16 = vpop.f32.mrb[14].mxu1  ;;  %v601_v23 = vpop.f32.mrb[15].mxu0 }
  0xfe   :  { %468 = vst [vmem:[%s5662_s3 + $0x20] sm:$0x3] %v462_v33  ;;  %v861_v37 = vmax.f32 %v599_v35, %v682_v16  ;;  %v684_v38 = vpop.f32.mrb[15].mxu1 }
  0xff   :  { %469 = vst [vmem:[%s5662_s3 + $0x28] sm:$0x3] %v463_v36  ;;  %v862_v39 = vmax.f32 %v601_v23, %v684_v38 }
 0x100   :  { %v605_v40 = vpop.f32.mrb[16].mxu0 }
 0x101   :  { %v688_v41 = vpop.f32.mrb[16].mxu1  ;;  %v607_v59 = vpop.f32.mrb[17].mxu0 }
 0x102   :  { %v863_v42 = vmax.f32 %v605_v40, %v688_v41  ;;  %v690_v29 = vpop.f32.mrb[17].mxu1 }
 0x103   :  { %v864_v43 = vmax.f32 %v607_v59, %v690_v29 }
 0x104   :  { %v759_v44 = vpop.f32.mrb[18].mxu0 }
 0x105   :  { %v842_v45 = vpop.f32.mrb[18].mxu1  ;;  %v761_v3 = vpop.f32.mrb[19].mxu0 }
 0x106   :  { %v865_v46 = vmax.f32 %v759_v44, %v842_v45  ;;  %v844_v48 = vpop.f32.mrb[19].mxu1 }
 0x107   :  { %v866_v49 = vmax.f32 %v761_v3, %v844_v48 }
 0x108   :  { %v871_v50 = vmax.f32 %v859_v47, %v865_v46  ;;  %v765_v51 = vpop.f32.mrb[20].mxu0 }
 0x109   :  { %v872_v53 = vmax.f32 %v860_v32, %v866_v49  ;;  %v848_v54 = vpop.f32.mrb[20].mxu1  ;;  %v767_v55 = vpop.f32.mrb[21].mxu0 }
 0x10a   :  { %v877_v56 = vadd.f32 %v871_v50, %v5461_v52  ;;  %v867_v57 = vmax.f32 %v765_v51, %v848_v54  ;;  %v850_v58 = vpop.f32.mrb[21].mxu1 }
 0x10b   :  { %v878_v60 = vadd.f32 %v872_v53, %v5461_v52  ;;  %v868_v61 = vmax.f32 %v767_v55, %v850_v58 }
 0x10c   :  { %v883_v62 = vmax.f32 %v877_v56, 0.0  ;;  %v873_v63 = vmax.f32 %v861_v37, %v867_v57  ;;  %v771_v0 = vpop.f32.mrb[22].mxu0 }
 0x10d   :  { %v884_v1 = vmax.f32 %v878_v60, 0.0  ;;  %v874_v2 = vmax.f32 %v862_v39, %v868_v61  ;;  %v854_v4 = vpop.f32.mrb[22].mxu1  ;;  %v773_v5 = vpop.f32.mrb[23].mxu0 }
 0x10e   :  { %3528 = vst [vmem:[%s5662_s3 + $0x30] sm:$0xff] %v883_v62  ;;  %v879_v7 = vadd.f32 %v873_v63, %v5465_v6  ;;  %v869_v8 = vmax.f32 %v771_v0, %v854_v4  ;;  %v856_v9 = vpop.f32.mrb[23].mxu1 }
 0x10f   :  { %3529 = vst [vmem:[%s5662_s3 + $0x38] sm:$0xff] %v884_v1  ;;  %v880_v10 = vadd.f32 %v874_v2, %v5465_v6  ;;  %v870_v11 = vmax.f32 %v773_v5, %v856_v9 }
 0x110   :  { %v885_v12 = vmax.f32 %v879_v7, 0.0  ;;  %v875_v13 = vmax.f32 %v863_v42, %v869_v8  ;;  %v1019_v14 = vpop.f32.mrb[24].mxu0 }
 0x111   :  { %v886_v15 = vmax.f32 %v880_v10, 0.0  ;;  %v876_v17 = vmax.f32 %v864_v43, %v870_v11  ;;  %v1102_v18 = vpop.f32.mrb[24].mxu1  ;;  %v1021_v19 = vpop.f32.mrb[25].mxu0 }
 0x112   :  { %3530 = vst [vmem:[%s5662_s3 + $0x40] sm:$0xff] %v885_v12  ;;  %v881_v21 = vadd.f32 %v875_v13, %v5475_v20  ;;  %v1285_v22 = vmax.f32 %v1019_v14, %v1102_v18  ;;  %v1104_v34 = vpop.f32.mrb[25].mxu1 }
 0x113   :  { %3531 = vst [vmem:[%s5662_s3 + $0x48] sm:$0xff] %v886_v15  ;;  %v882_v24 = vadd.f32 %v876_v17, %v5475_v20  ;;  %v1286_v25 = vmax.f32 %v1021_v19, %v1104_v34 }
 0x114   :  { %v887_v26 = vmax.f32 %v881_v21, 0.0  ;;  %v1025_v27 = vpop.f32.mrb[26].mxu0 }
 0x115   :  { %v888_v28 = vmax.f32 %v882_v24, 0.0  ;;  %v1108_v47 = vpop.f32.mrb[26].mxu1  ;;  %v1027_v30 = vpop.f32.mrb[27].mxu0 }
 0x116   :  { %3532 = vst [vmem:[%s5662_s3 + $0x50] sm:$0x3] %v887_v26  ;;  %v1287_v31 = vmax.f32 %v1025_v27, %v1108_v47  ;;  %v1110_v32 = vpop.f32.mrb[27].mxu1 }
 0x117   :  { %3533 = vst [vmem:[%s5662_s3 + $0x58] sm:$0x3] %v888_v28  ;;  %v1288_v33 = vmax.f32 %v1027_v30, %v1110_v32 }
 0x118   :  { %v1031_v35 = vpop.f32.mrb[28].mxu0 }
 0x119   :  { %v1114_v36 = vpop.f32.mrb[28].mxu1  ;;  %v1033_v16 = vpop.f32.mrb[29].mxu0 }
 0x11a   :  { %v1289_v23 = vmax.f32 %v1031_v35, %v1114_v36  ;;  %v1116_v37 = vpop.f32.mrb[29].mxu1 }
 0x11b   :  { %v1290_v38 = vmax.f32 %v1033_v16, %v1116_v37 }
 0x11c   :  { %v1185_v39 = vpop.f32.mrb[30].mxu0 }
 0x11d   :  { %v1268_v40 = vpop.f32.mrb[30].mxu1  ;;  %v1187_v41 = vpop.f32.mrb[31].mxu0 }
 0x11e   :  { %v1291_v59 = vmax.f32 %v1185_v39, %v1268_v40  ;;  %v1270_v42 = vpop.f32.mrb[31].mxu1 }
 0x11f   :  { %v1292_v29 = vmax.f32 %v1187_v41, %v1270_v42 }
 0x120   :  { %v1297_v43 = vmax.f32 %v1285_v22, %v1291_v59  ;;  %v1191_v44 = vpop.f32.mrb[32].mxu0 }
 0x121   :  { %v1298_v45 = vmax.f32 %v1286_v25, %v1292_v29  ;;  %v1274_v3 = vpop.f32.mrb[32].mxu1  ;;  %v1193_v46 = vpop.f32.mrb[33].mxu0 }
 0x122   :  { %v1303_v48 = vadd.f32 %v1297_v43, %v5461_v52  ;;  %v1293_v49 = vmax.f32 %v1191_v44, %v1274_v3  ;;  %v1276_v50 = vpop.f32.mrb[33].mxu1 }
 0x123   :  { %v1304_v51 = vadd.f32 %v1298_v45, %v5461_v52  ;;  %v1294_v53 = vmax.f32 %v1193_v46, %v1276_v50 }
 0x124   :  { %v1309_v54 = vmax.f32 %v1303_v48, 0.0  ;;  %v1299_v55 = vmax.f32 %v1287_v31, %v1293_v49  ;;  %v1197_v56 = vpop.f32.mrb[34].mxu0 }
 0x125   :  { %v1310_v57 = vmax.f32 %v1304_v51, 0.0  ;;  %v1300_v58 = vmax.f32 %v1288_v33, %v1294_v53  ;;  %v1280_v60 = vpop.f32.mrb[34].mxu1  ;;  %v1199_v61 = vpop.f32.mrb[35].mxu0 }
 0x126   :  { %3586 = vst [vmem:[%s5662_s3 + $0x60] sm:$0xff] %v1309_v54  ;;  %v1305_v62 = vadd.f32 %v1299_v55, %v5465_v6  ;;  %v1295_v63 = vmax.f32 %v1197_v56, %v1280_v60  ;;  %v1282_v0 = vpop.f32.mrb[35].mxu1 }
 0x127   :  { %3587 = vst [vmem:[%s5662_s3 + $0x68] sm:$0xff] %v1310_v57  ;;  %v1306_v1 = vadd.f32 %v1300_v58, %v5465_v6  ;;  %v1296_v2 = vmax.f32 %v1199_v61, %v1282_v0 }
 0x128   :  { %v1311_v4 = vmax.f32 %v1305_v62, 0.0  ;;  %v1301_v5 = vmax.f32 %v1289_v23, %v1295_v63  ;;  %v1445_v7 = vpop.f32.mrb[36].mxu0 }
 0x129   :  { %v1312_v8 = vmax.f32 %v1306_v1, 0.0  ;;  %v1302_v9 = vmax.f32 %v1290_v38, %v1296_v2  ;;  %v1528_v10 = vpop.f32.mrb[36].mxu1  ;;  %v1447_v11 = vpop.f32.mrb[37].mxu0 }
 0x12a   :  { %3588 = vst [vmem:[%s5662_s3 + $0x70] sm:$0xff] %v1311_v4  ;;  %v1307_v12 = vadd.f32 %v1301_v5, %v5475_v20  ;;  %v1711_v13 = vmax.f32 %v1445_v7, %v1528_v10  ;;  %v1530_v14 = vpop.f32.mrb[37].mxu1 }
 0x12b   :  { %3589 = vst [vmem:[%s5662_s3 + $0x78] sm:$0xff] %v1312_v8  ;;  %v1308_v15 = vadd.f32 %v1302_v9, %v5475_v20  ;;  %v1712_v17 = vmax.f32 %v1447_v11, %v1530_v14 }
 0x12c   :  { %v1313_v18 = vmax.f32 %v1307_v12, 0.0  ;;  %v1451_v19 = vpop.f32.mrb[38].mxu0 }
 0x12d   :  { %v1314_v21 = vmax.f32 %v1308_v15, 0.0  ;;  %v1534_v22 = vpop.f32.mrb[38].mxu1  ;;  %v1453_v34 = vpop.f32.mrb[39].mxu0 }
 0x12e   :  { %3590 = vst [vmem:[%s5662_s3 + $0x80] sm:$0x3] %v1313_v18  ;;  %v1713_v24 = vmax.f32 %v1451_v19, %v1534_v22  ;;  %v1536_v25 = vpop.f32.mrb[39].mxu1 }
 0x12f   :  { %3591 = vst [vmem:[%s5662_s3 + $0x88] sm:$0x3] %v1314_v21  ;;  %v1714_v26 = vmax.f32 %v1453_v34, %v1536_v25 }
 0x130   :  { %v1457_v27 = vpop.f32.mrb[40].mxu0 }
 0x131   :  { %v1540_v28 = vpop.f32.mrb[40].mxu1  ;;  %v1459_v47 = vpop.f32.mrb[41].mxu0 }
 0x132   :  { %v1715_v30 = vmax.f32 %v1457_v27, %v1540_v28  ;;  %v1542_v31 = vpop.f32.mrb[41].mxu1 }
 0x133   :  { %v1716_v32 = vmax.f32 %v1459_v47, %v1542_v31 }
 0x134   :  { %v1611_v33 = vpop.f32.mrb[42].mxu0 }
 0x135   :  { %v1694_v35 = vpop.f32.mrb[42].mxu1  ;;  %v1613_v36 = vpop.f32.mrb[43].mxu0 }
 0x136   :  { %v1717_v16 = vmax.f32 %v1611_v33, %v1694_v35  ;;  %v1696_v23 = vpop.f32.mrb[43].mxu1 }
 0x137   :  { %v1718_v37 = vmax.f32 %v1613_v36, %v1696_v23 }
 0x138   :  { %v1723_v38 = vmax.f32 %v1711_v13, %v1717_v16  ;;  %v1617_v39 = vpop.f32.mrb[44].mxu0 }
 0x139   :  { %v1724_v40 = vmax.f32 %v1712_v17, %v1718_v37  ;;  %v1700_v41 = vpop.f32.mrb[44].mxu1  ;;  %v1619_v59 = vpop.f32.mrb[45].mxu0 }
 0x13a   :  { %v1729_v42 = vadd.f32 %v1723_v38, %v5461_v52  ;;  %v1719_v29 = vmax.f32 %v1617_v39, %v1700_v41  ;;  %v1702_v43 = vpop.f32.mrb[45].mxu1 }
 0x13b   :  { %v1730_v44 = vadd.f32 %v1724_v40, %v5461_v52  ;;  %v1720_v45 = vmax.f32 %v1619_v59, %v1702_v43 }
 0x13c   :  { %v1735_v3 = vmax.f32 %v1729_v42, 0.0  ;;  %v1725_v46 = vmax.f32 %v1713_v24, %v1719_v29  ;;  %v1623_v48 = vpop.f32.mrb[46].mxu0 }
 0x13d   :  { %v1736_v49 = vmax.f32 %v1730_v44, 0.0  ;;  %v1726_v50 = vmax.f32 %v1714_v26, %v1720_v45  ;;  %v1706_v51 = vpop.f32.mrb[46].mxu1  ;;  %v1625_v53 = vpop.f32.mrb[47].mxu0 }
 0x13e   :  { %3644 = vst [vmem:[%s5662_s3 + $0x90] sm:$0xff] %v1735_v3  ;;  %v1731_v54 = vadd.f32 %v1725_v46, %v5465_v6  ;;  %v1721_v55 = vmax.f32 %v1623_v48, %v1706_v51  ;;  %v1708_v56 = vpop.f32.mrb[47].mxu1 }
 0x13f   :  { %3645 = vst [vmem:[%s5662_s3 + $0x98] sm:$0xff] %v1736_v49  ;;  %v1732_v57 = vadd.f32 %v1726_v50, %v5465_v6  ;;  %v1722_v58 = vmax.f32 %v1625_v53, %v1708_v56 }
 0x140   :  { %v1737_v60 = vmax.f32 %v1731_v54, 0.0  ;;  %v1727_v61 = vmax.f32 %v1715_v30, %v1721_v55  ;;  %v1871_v62 = vpop.f32.mrb[48].mxu0 }
 0x141   :  { %v1738_v63 = vmax.f32 %v1732_v57, 0.0  ;;  %v1728_v0 = vmax.f32 %v1716_v32, %v1722_v58  ;;  %v1954_v1 = vpop.f32.mrb[48].mxu1  ;;  %v1873_v2 = vpop.f32.mrb[49].mxu0 }
 0x142   :  { %3646 = vst [vmem:[%s5662_s3 + $0xa0] sm:$0xff] %v1737_v60  ;;  %v1733_v4 = vadd.f32 %v1727_v61, %v5475_v20  ;;  %v2137_v5 = vmax.f32 %v1871_v62, %v1954_v1  ;;  %v1956_v7 = vpop.f32.mrb[49].mxu1 }
 0x143   :  { %3647 = vst [vmem:[%s5662_s3 + $0xa8] sm:$0xff] %v1738_v63  ;;  %v1734_v8 = vadd.f32 %v1728_v0, %v5475_v20  ;;  %v2138_v9 = vmax.f32 %v1873_v2, %v1956_v7 }
 0x144   :  { %v1739_v10 = vmax.f32 %v1733_v4, 0.0  ;;  %v1877_v11 = vpop.f32.mrb[50].mxu0 }
 0x145   :  { %v1740_v12 = vmax.f32 %v1734_v8, 0.0  ;;  %v1960_v13 = vpop.f32.mrb[50].mxu1  ;;  %v1879_v14 = vpop.f32.mrb[51].mxu0 }
 0x146   :  { %3648 = vst [vmem:[%s5662_s3 + $0xb0] sm:$0x3] %v1739_v10  ;;  %v2139_v15 = vmax.f32 %v1877_v11, %v1960_v13  ;;  %v1962_v17 = vpop.f32.mrb[51].mxu1 }
 0x147   :  { %3649 = vst [vmem:[%s5662_s3 + $0xb8] sm:$0x3] %v1740_v12  ;;  %v2140_v18 = vmax.f32 %v1879_v14, %v1962_v17 }
 0x148   :  { %v1883_v19 = vpop.f32.mrb[52].mxu0 }
 0x149   :  { %v1966_v21 = vpop.f32.mrb[52].mxu1  ;;  %v1885_v22 = vpop.f32.mrb[53].mxu0 }
 0x14a   :  { %v2141_v34 = vmax.f32 %v1883_v19, %v1966_v21  ;;  %v1968_v24 = vpop.f32.mrb[53].mxu1 }
 0x14b   :  { %v2142_v25 = vmax.f32 %v1885_v22, %v1968_v24 }
 0x14c   :  { %v2037_v26 = vpop.f32.mrb[54].mxu0 }
 0x14d   :  { %v2120_v27 = vpop.f32.mrb[54].mxu1  ;;  %v2039_v28 = vpop.f32.mrb[55].mxu0 }
 0x14e   :  { %v2143_v47 = vmax.f32 %v2037_v26, %v2120_v27  ;;  %v2122_v30 = vpop.f32.mrb[55].mxu1 }
 0x14f   :  { %v2144_v31 = vmax.f32 %v2039_v28, %v2122_v30 }
 0x150   :  { %v2149_v32 = vmax.f32 %v2137_v5, %v2143_v47  ;;  %v2043_v33 = vpop.f32.mrb[56].mxu0 }
 0x151   :  { %v2150_v35 = vmax.f32 %v2138_v9, %v2144_v31  ;;  %v2126_v36 = vpop.f32.mrb[56].mxu1  ;;  %v2045_v16 = vpop.f32.mrb[57].mxu0 }
 0x152   :  { %v2155_v23 = vadd.f32 %v2149_v32, %v5461_v52  ;;  %v2145_v37 = vmax.f32 %v2043_v33, %v2126_v36  ;;  %v2128_v38 = vpop.f32.mrb[57].mxu1 }
 0x153   :  { %v2156_v39 = vadd.f32 %v2150_v35, %v5461_v52  ;;  %v2146_v40 = vmax.f32 %v2045_v16, %v2128_v38 }
 0x154   :  { %v2161_v41 = vmax.f32 %v2155_v23, 0.0  ;;  %v2151_v59 = vmax.f32 %v2139_v15, %v2145_v37  ;;  %v2049_v42 = vpop.f32.mrb[58].mxu0 }
 0x155   :  { %v2162_v29 = vmax.f32 %v2156_v39, 0.0  ;;  %v2152_v43 = vmax.f32 %v2140_v18, %v2146_v40  ;;  %v2132_v44 = vpop.f32.mrb[58].mxu1  ;;  %v2051_v45 = vpop.f32.mrb[59].mxu0 }
 0x156   :  { %3702 = vst [vmem:[%s5662_s3 + $0xc0] sm:$0xff] %v2161_v41  ;;  %v2157_v3 = vadd.f32 %v2151_v59, %v5465_v6  ;;  %v2147_v46 = vmax.f32 %v2049_v42, %v2132_v44  ;;  %v2134_v48 = vpop.f32.mrb[59].mxu1 }
 0x157   :  { %3703 = vst [vmem:[%s5662_s3 + $0xc8] sm:$0xff] %v2162_v29  ;;  %v2158_v49 = vadd.f32 %v2152_v43, %v5465_v6  ;;  %v2148_v50 = vmax.f32 %v2051_v45, %v2134_v48 }
 0x158   :  { %v2163_v51 = vmax.f32 %v2157_v3, 0.0  ;;  %v2153_v53 = vmax.f32 %v2141_v34, %v2147_v46  ;;  %v2297_v54 = vpop.f32.mrb[60].mxu0 }
 0x159   :  { %v2164_v55 = vmax.f32 %v2158_v49, 0.0  ;;  %v2154_v56 = vmax.f32 %v2142_v25, %v2148_v50  ;;  %v2380_v57 = vpop.f32.mrb[60].mxu1  ;;  %v2299_v58 = vpop.f32.mrb[61].mxu0 }
 0x15a   :  { %3704 = vst [vmem:[%s5662_s3 + $0xd0] sm:$0xff] %v2163_v51  ;;  %v2159_v60 = vadd.f32 %v2153_v53, %v5475_v20  ;;  %v2563_v61 = vmax.f32 %v2297_v54, %v2380_v57  ;;  %v2382_v62 = vpop.f32.mrb[61].mxu1 }
 0x15b   :  { %3705 = vst [vmem:[%s5662_s3 + $0xd8] sm:$0xff] %v2164_v55  ;;  %v2160_v63 = vadd.f32 %v2154_v56, %v5475_v20  ;;  %v2564_v0 = vmax.f32 %v2299_v58, %v2382_v62 }
 0x15c   :  { %v2165_v1 = vmax.f32 %v2159_v60, 0.0  ;;  %v2303_v2 = vpop.f32.mrb[62].mxu0 }
 0x15d   :  { %v2166_v4 = vmax.f32 %v2160_v63, 0.0  ;;  %v2386_v5 = vpop.f32.mrb[62].mxu1  ;;  %v2305_v7 = vpop.f32.mrb[63].mxu0 }
 0x15e   :  { %3706 = vst [vmem:[%s5662_s3 + $0xe0] sm:$0x3] %v2165_v1  ;;  %v2565_v8 = vmax.f32 %v2303_v2, %v2386_v5  ;;  %v2388_v9 = vpop.f32.mrb[63].mxu1 }
 0x15f   :  { %3707 = vst [vmem:[%s5662_s3 + $0xe8] sm:$0x3] %v2166_v4  ;;  %v2566_v10 = vmax.f32 %v2305_v7, %v2388_v9 }
 0x160   :  { %v2309_v11 = vpop.f32.mrb[64].mxu0 }
 0x161   :  { %v2392_v12 = vpop.f32.mrb[64].mxu1  ;;  %v2311_v13 = vpop.f32.mrb[65].mxu0 }
 0x162   :  { %v2567_v14 = vmax.f32 %v2309_v11, %v2392_v12  ;;  %v2394_v15 = vpop.f32.mrb[65].mxu1 }
 0x163   :  { %v2568_v17 = vmax.f32 %v2311_v13, %v2394_v15 }
 0x164   :  { %v2463_v18 = vpop.f32.mrb[66].mxu0 }
 0x165   :  { %v2546_v19 = vpop.f32.mrb[66].mxu1  ;;  %v2465_v21 = vpop.f32.mrb[67].mxu0 }
 0x166   :  { %v2569_v22 = vmax.f32 %v2463_v18, %v2546_v19  ;;  %v2548_v34 = vpop.f32.mrb[67].mxu1 }
 0x167   :  { %v2570_v24 = vmax.f32 %v2465_v21, %v2548_v34 }
 0x168   :  { %v2575_v25 = vmax.f32 %v2563_v61, %v2569_v22  ;;  %v2469_v26 = vpop.f32.mrb[68].mxu0 }
 0x169   :  { %v2576_v27 = vmax.f32 %v2564_v0, %v2570_v24  ;;  %v2552_v28 = vpop.f32.mrb[68].mxu1  ;;  %v2471_v47 = vpop.f32.mrb[69].mxu0 }
 0x16a   :  { %v2581_v30 = vadd.f32 %v2575_v25, %v5461_v52  ;;  %v2571_v31 = vmax.f32 %v2469_v26, %v2552_v28  ;;  %v2554_v32 = vpop.f32.mrb[69].mxu1 }
 0x16b   :  { %v2582_v33 = vadd.f32 %v2576_v27, %v5461_v52  ;;  %v2572_v35 = vmax.f32 %v2471_v47, %v2554_v32 }
 0x16c   :  { %v2587_v36 = vmax.f32 %v2581_v30, 0.0  ;;  %v2577_v16 = vmax.f32 %v2565_v8, %v2571_v31  ;;  %v2475_v23 = vpop.f32.mrb[70].mxu0 }
 0x16d   :  { %v2588_v37 = vmax.f32 %v2582_v33, 0.0  ;;  %v2578_v38 = vmax.f32 %v2566_v10, %v2572_v35  ;;  %v2558_v39 = vpop.f32.mrb[70].mxu1  ;;  %v2477_v40 = vpop.f32.mrb[71].mxu0 }
 0x16e   :  { %3760 = vst [vmem:[%s5662_s3 + $0xf0] sm:$0xff] %v2587_v36  ;;  %v2583_v41 = vadd.f32 %v2577_v16, %v5465_v6  ;;  %v2573_v59 = vmax.f32 %v2475_v23, %v2558_v39  ;;  %v2560_v42 = vpop.f32.mrb[71].mxu1 }
 0x16f   :  { %3761 = vst [vmem:[%s5662_s3 + $0xf8] sm:$0xff] %v2588_v37  ;;  %v2584_v29 = vadd.f32 %v2578_v38, %v5465_v6  ;;  %v2574_v43 = vmax.f32 %v2477_v40, %v2560_v42 }
 0x170   :  { %v2589_v44 = vmax.f32 %v2583_v41, 0.0  ;;  %v2579_v45 = vmax.f32 %v2567_v14, %v2573_v59  ;;  %v2723_v3 = vpop.f32.mrb[72].mxu0 }
 0x171   :  { %v2590_v46 = vmax.f32 %v2584_v29, 0.0  ;;  %v2580_v48 = vmax.f32 %v2568_v17, %v2574_v43  ;;  %v2806_v49 = vpop.f32.mrb[72].mxu1  ;;  %v2725_v50 = vpop.f32.mrb[73].mxu0 }
 0x172   :  { %3762 = vst [vmem:[%s5662_s3 + $0x100] sm:$0xff] %v2589_v44  ;;  %v2585_v51 = vadd.f32 %v2579_v45, %v5475_v20  ;;  %v2989_v53 = vmax.f32 %v2723_v3, %v2806_v49  ;;  %v2808_v54 = vpop.f32.mrb[73].mxu1 }
 0x173   :  { %3763 = vst [vmem:[%s5662_s3 + $0x108] sm:$0xff] %v2590_v46  ;;  %v2586_v55 = vadd.f32 %v2580_v48, %v5475_v20  ;;  %v2990_v56 = vmax.f32 %v2725_v50, %v2808_v54 }
 0x174   :  { %v2591_v57 = vmax.f32 %v2585_v51, 0.0  ;;  %v2729_v58 = vpop.f32.mrb[74].mxu0 }
 0x175   :  { %v2592_v60 = vmax.f32 %v2586_v55, 0.0  ;;  %v2812_v61 = vpop.f32.mrb[74].mxu1  ;;  %v2731_v62 = vpop.f32.mrb[75].mxu0 }
 0x176   :  { %3764 = vst [vmem:[%s5662_s3 + $0x110] sm:$0x3] %v2591_v57  ;;  %v2991_v63 = vmax.f32 %v2729_v58, %v2812_v61  ;;  %v2814_v0 = vpop.f32.mrb[75].mxu1 }
 0x177   :  { %3765 = vst [vmem:[%s5662_s3 + $0x118] sm:$0x3] %v2592_v60  ;;  %v2992_v1 = vmax.f32 %v2731_v62, %v2814_v0 }
 0x178   :  { %v2735_v2 = vpop.f32.mrb[76].mxu0 }
 0x179   :  { %v2818_v4 = vpop.f32.mrb[76].mxu1  ;;  %v2737_v5 = vpop.f32.mrb[77].mxu0 }
 0x17a   :  { %v2993_v7 = vmax.f32 %v2735_v2, %v2818_v4  ;;  %v2820_v8 = vpop.f32.mrb[77].mxu1 }
 0x17b   :  { %v2994_v9 = vmax.f32 %v2737_v5, %v2820_v8 }
 0x17c   :  { %v2889_v10 = vpop.f32.mrb[78].mxu0 }
 0x17d   :  { %v2972_v11 = vpop.f32.mrb[78].mxu1  ;;  %v2891_v12 = vpop.f32.mrb[79].mxu0 }
 0x17e   :  { %v2995_v13 = vmax.f32 %v2889_v10, %v2972_v11  ;;  %v2974_v14 = vpop.f32.mrb[79].mxu1 }
 0x17f   :  { %v2996_v15 = vmax.f32 %v2891_v12, %v2974_v14 }
 0x180   :  { %v3001_v17 = vmax.f32 %v2989_v53, %v2995_v13  ;;  %v2895_v18 = vpop.f32.mrb[80].mxu0 }
 0x181   :  { %v3002_v19 = vmax.f32 %v2990_v56, %v2996_v15  ;;  %v2978_v21 = vpop.f32.mrb[80].mxu1  ;;  %v2897_v22 = vpop.f32.mrb[81].mxu0 }
 0x182   :  { %v3007_v34 = vadd.f32 %v3001_v17, %v5461_v52  ;;  %v2997_v24 = vmax.f32 %v2895_v18, %v2978_v21  ;;  %v2980_v25 = vpop.f32.mrb[81].mxu1 }
 0x183   :  { %v3008_v26 = vadd.f32 %v3002_v19, %v5461_v52  ;;  %v2998_v27 = vmax.f32 %v2897_v22, %v2980_v25 }
 0x184   :  { %v3013_v28 = vmax.f32 %v3007_v34, 0.0  ;;  %v3003_v47 = vmax.f32 %v2991_v63, %v2997_v24  ;;  %v2901_v30 = vpop.f32.mrb[82].mxu0 }
 0x185   :  { %v3014_v31 = vmax.f32 %v3008_v26, 0.0  ;;  %v3004_v32 = vmax.f32 %v2992_v1, %v2998_v27  ;;  %v2984_v33 = vpop.f32.mrb[82].mxu1  ;;  %v2903_v35 = vpop.f32.mrb[83].mxu0 }
 0x186   :  { %3818 = vst [vmem:[%s5662_s3 + $0x120] sm:$0xff] %v3013_v28  ;;  %v3009_v36 = vadd.f32 %v3003_v47, %v5465_v6  ;;  %v2999_v16 = vmax.f32 %v2901_v30, %v2984_v33  ;;  %v2986_v23 = vpop.f32.mrb[83].mxu1 }
 0x187   :  { %3819 = vst [vmem:[%s5662_s3 + $0x128] sm:$0xff] %v3014_v31  ;;  %v3010_v37 = vadd.f32 %v3004_v32, %v5465_v6  ;;  %v3000_v38 = vmax.f32 %v2903_v35, %v2986_v23 }
 0x188   :  { %v3015_v39 = vmax.f32 %v3009_v36, 0.0  ;;  %v3005_v40 = vmax.f32 %v2993_v7, %v2999_v16  ;;  %v3149_v41 = vpop.f32.mrb[84].mxu0 }
 0x189   :  { %v3016_v59 = vmax.f32 %v3010_v37, 0.0  ;;  %v3006_v42 = vmax.f32 %v2994_v9, %v3000_v38  ;;  %v3232_v29 = vpop.f32.mrb[84].mxu1  ;;  %v3151_v43 = vpop.f32.mrb[85].mxu0 }
 0x18a   :  { %3820 = vst [vmem:[%s5662_s3 + $0x130] sm:$0xff] %v3015_v39  ;;  %v3011_v44 = vadd.f32 %v3005_v40, %v5475_v20  ;;  %v3415_v45 = vmax.f32 %v3149_v41, %v3232_v29  ;;  %v3234_v3 = vpop.f32.mrb[85].mxu1 }
 0x18b   :  { %3821 = vst [vmem:[%s5662_s3 + $0x138] sm:$0xff] %v3016_v59  ;;  %v3012_v46 = vadd.f32 %v3006_v42, %v5475_v20  ;;  %v3416_v48 = vmax.f32 %v3151_v43, %v3234_v3 }
 0x18c   :  { %v3017_v49 = vmax.f32 %v3011_v44, 0.0  ;;  %v3155_v50 = vpop.f32.mrb[86].mxu0 }
 0x18d   :  { %v3018_v51 = vmax.f32 %v3012_v46, 0.0  ;;  %v3238_v53 = vpop.f32.mrb[86].mxu1  ;;  %v3157_v54 = vpop.f32.mrb[87].mxu0 }
 0x18e   :  { %3822 = vst [vmem:[%s5662_s3 + $0x140] sm:$0x3] %v3017_v49  ;;  %v3417_v55 = vmax.f32 %v3155_v50, %v3238_v53  ;;  %v3240_v56 = vpop.f32.mrb[87].mxu1 }
 0x18f   :  { %3823 = vst [vmem:[%s5662_s3 + $0x148] sm:$0x3] %v3018_v51  ;;  %v3418_v57 = vmax.f32 %v3157_v54, %v3240_v56 }
 0x190   :  { %v3161_v58 = vpop.f32.mrb[88].mxu0 }
 0x191   :  { %v3244_v60 = vpop.f32.mrb[88].mxu1  ;;  %v3163_v61 = vpop.f32.mrb[89].mxu0 }
 0x192   :  { %v3419_v62 = vmax.f32 %v3161_v58, %v3244_v60  ;;  %v3246_v63 = vpop.f32.mrb[89].mxu1 }
 0x193   :  { %v3420_v0 = vmax.f32 %v3163_v61, %v3246_v63 }
 0x194   :  { %v3315_v1 = vpop.f32.mrb[90].mxu0 }
 0x195   :  { %v3398_v2 = vpop.f32.mrb[90].mxu1  ;;  %v3317_v4 = vpop.f32.mrb[91].mxu0 }
 0x196   :  { %v3421_v5 = vmax.f32 %v3315_v1, %v3398_v2  ;;  %v3400_v7 = vpop.f32.mrb[91].mxu1 }
 0x197   :  { %v3422_v8 = vmax.f32 %v3317_v4, %v3400_v7 }
 0x198   :  { %v3427_v9 = vmax.f32 %v3415_v45, %v3421_v5  ;;  %v3321_v10 = vpop.f32.mrb[92].mxu0 }
 0x199   :  { %v3428_v11 = vmax.f32 %v3416_v48, %v3422_v8  ;;  %v3404_v12 = vpop.f32.mrb[92].mxu1  ;;  %v3323_v13 = vpop.f32.mrb[93].mxu0 }
 0x19a   :  { %v3433_v14 = vadd.f32 %v3427_v9, %v5461_v52  ;;  %v3423_v15 = vmax.f32 %v3321_v10, %v3404_v12  ;;  %v3406_v17 = vpop.f32.mrb[93].mxu1 }
 0x19b   :  { %v3434_v18 = vadd.f32 %v3428_v11, %v5461_v52  ;;  %v3424_v19 = vmax.f32 %v3323_v13, %v3406_v17 }
 0x19c   :  { %v3439_v21 = vmax.f32 %v3433_v14, 0.0  ;;  %v3429_v22 = vmax.f32 %v3417_v55, %v3423_v15  ;;  %v3327_v34 = vpop.f32.mrb[94].mxu0 }
 0x19d   :  { %v3440_v24 = vmax.f32 %v3434_v18, 0.0  ;;  %v3430_v25 = vmax.f32 %v3418_v57, %v3424_v19  ;;  %v3410_v26 = vpop.f32.mrb[94].mxu1  ;;  %v3329_v27 = vpop.f32.mrb[95].mxu0 }
 0x19e   :  { %3876 = vst [vmem:[%s5662_s3 + $0x150] sm:$0xff] %v3439_v21  ;;  %v3435_v28 = vadd.f32 %v3429_v22, %v5465_v6  ;;  %v3425_v47 = vmax.f32 %v3327_v34, %v3410_v26  ;;  %v3412_v30 = vpop.f32.mrb[95].mxu1 }
 0x19f   :  { %3877 = vst [vmem:[%s5662_s3 + $0x158] sm:$0xff] %v3440_v24  ;;  %v3436_v52 = vadd.f32 %v3430_v25, %v5465_v6  ;;  %v3426_v31 = vmax.f32 %v3329_v27, %v3412_v30 }
 0x1a0   :  { %v3441_v32 = vmax.f32 %v3435_v28, 0.0  ;;  %v3431_v33 = vmax.f32 %v3419_v62, %v3425_v47 }
 0x1a1   :  { %v3442_v35 = vmax.f32 %v3436_v52, 0.0  ;;  %v3432_v36 = vmax.f32 %v3420_v0, %v3426_v31 }
 0x1a2   :  { %3878 = vst [vmem:[%s5662_s3 + $0x160] sm:$0xff] %v3441_v32  ;;  %v3437_v16 = vadd.f32 %v3431_v33, %v5475_v20 }
 0x1a3   :  { %3879 = vst [vmem:[%s5662_s3 + $0x168] sm:$0xff] %v3442_v35  ;;  %v3438_v23 = vadd.f32 %v3432_v36, %v5475_v20 }
 0x1a4   :  { %v3443_v37 = vmax.f32 %v3437_v16, 0.0 }
 0x1a5   :  { %v3444_v38 = vmax.f32 %v3438_v23, 0.0 }
 0x1a6   :  { %3880 = vst [vmem:[%s5662_s3 + $0x170] sm:$0x3] %v3443_v37 }
 0x1a7   :  { %3881 = vst [vmem:[%s5662_s3 + $0x178] sm:$0x3] %v3444_v38 }

// kernel: forward.3
= control target key start
LH: loop header
LB: loop body
LE: loop exit
PB: predicated region body
PF: predicated region fallthrough
CT: control target
= control target key end

     0   :  { %vm3248_vm0 = vmmov 0   ;;  %vm1915_vm1 = vcmask 523264   ;;  %vm1989_vm2 = vcmask 80896   ;;  %s5152_s1 = inlined_call_operand.vmem [shape: f32[4608,64], index: 1, kind: input, shape index: {}]   ;;  %s5153_s0 = inlined_call_operand.vmem [shape: f32[8,4608], index: 0, kind: input, shape index: {}]   ;;  %s5154_s2 = inlined_call_operand.vmem [shape: f32[1,64], index: 2, kind: input, shape index: {}]   ;;  %s5155_s3 = inlined_call_operand.vmem [shape: f32[64,10], index: 3, kind: input, shape index: {}]   ;;  %s5156_s4 = inlined_call_operand.vmem [shape: f32[1,10], index: 4, kind: input, shape index: {}]   ;;  %s5157_s5 = inlined_call_operand.vmem [shape: f32[8,10], index: 5, kind: output, shape index: {}]  }
   0x1   :  { %v72_v0 = vld [vmem:[%s5152_s1 + $0x80] sm:$0xff]  ;;  %v73_v1 = vld [vmem:[%s5152_s1 + $0x88] sm:$0xff]  ;;  %v74_v11 = vld [vmem:[%s5152_s1 + $0x90] sm:$0xff] }
   0x2   :  { %v56_v2 = vld [vmem:[%s5152_s1] sm:$0xff]  ;;  %v2656_v3 = vpack.c.bf16 %v73_v1, %v72_v0  ;;  %v57_v4 = vld [vmem:[%s5152_s1 + $0x8] sm:$0xff]  ;;  %v75_v13 = vld [vmem:[%s5152_s1 + $0x98] sm:$0xff] }
   0x3   :  { %v104_v5 = vld [vmem:[%s5152_s1 + $0x180] sm:$0xff]  ;;  %v105_v6 = vld [vmem:[%s5152_s1 + $0x188] sm:$0xff]  ;;  %v2658_v7 = vpack.c.bf16 %v57_v4, %v56_v2  ;;  %v58_v14 = vld [vmem:[%s5152_s1 + $0x10] sm:$0xff]  ;;  %v2660_v16 = vpack.c.bf16 %v75_v13, %v74_v11 }
   0x4   :  { %v2688_v8 = vpack.c.bf16 %v105_v6, %v104_v5  ;;  %v88_v9 = vld [vmem:[%s5152_s1 + $0x100] sm:$0xff]  ;;  %v89_v10 = vld [vmem:[%s5152_s1 + $0x108] sm:$0xff]  ;;  %2657 = vmatprep.subr.bf16.mxu0 %v2656_v3  ;;  %v59_v15 = vld [vmem:[%s5152_s1 + $0x18] sm:$0xff] }
   0x5   :  { %v2690_v12 = vpack.c.bf16 %v89_v10, %v88_v9  ;;  %2659 = vmatpush3.bf16.msra.mxu0 %v2658_v7  ;;  %v2662_v17 = vpack.c.bf16 %v59_v15, %v58_v14  ;;  %v106_v18 = vld [vmem:[%s5152_s1 + $0x190] sm:$0xff]  ;;  %v107_v19 = vld [vmem:[%s5152_s1 + $0x198] sm:$0xff]  ;;  %v76_v23 = vld [vmem:[%s5152_s1 + $0xa0] sm:$0xff] }
   0x6   :  { %2689 = vmatprep.subr.bf16.mxu1 %v2688_v8  ;;  %v90_v20 = vld [vmem:[%s5152_s1 + $0x110] sm:$0xff]  ;;  %v2692_v21 = vpack.c.bf16 %v107_v19, %v106_v18  ;;  %v91_v22 = vld [vmem:[%s5152_s1 + $0x118] sm:$0xff]  ;;  %v77_v24 = vld [vmem:[%s5152_s1 + $0xa8] sm:$0xff]  ;;  %2661 = vmatprep.subr.bf16.mxu0 %v2660_v16 }
   0x7   :  { %2691 = vmatpush3.bf16.msra.mxu1 %v2690_v12  ;;  %v2694_v25 = vpack.c.bf16 %v91_v22, %v90_v20  ;;  %v2664_v26 = vpack.c.bf16 %v77_v24, %v76_v23  ;;  %v60_v27 = vld [vmem:[%s5152_s1 + $0x20] sm:$0xff]  ;;  %v61_v28 = vld [vmem:[%s5152_s1 + $0x28] sm:$0xff]  ;;  %v78_v35 = vld [vmem:[%s5152_s1 + $0xb0] sm:$0xff] }
   0x8   :  { %v108_v29 = vld [vmem:[%s5152_s1 + $0x1a0] sm:$0xff]  ;;  %2693 = vmatprep.subr.bf16.mxu1 %v2692_v21  ;;  %v109_v30 = vld [vmem:[%s5152_s1 + $0x1a8] sm:$0xff]  ;;  %v2666_v33 = vpack.c.bf16 %v61_v28, %v60_v27  ;;  %v79_v36 = vld [vmem:[%s5152_s1 + $0xb8] sm:$0xff] }
   0x9   :  { %v92_v31 = vld [vmem:[%s5152_s1 + $0x120] sm:$0xff]  ;;  %v93_v32 = vld [vmem:[%s5152_s1 + $0x128] sm:$0xff]  ;;  %2663 = vmatpush3.bf16.msra.mxu0 %v2662_v17  ;;  %v2696_v34 = vpack.c.bf16 %v109_v30, %v108_v29  ;;  %v62_v37 = vld [vmem:[%s5152_s1 + $0x30] sm:$0xff]  ;;  %v2668_v39 = vpack.c.bf16 %v79_v36, %v78_v35 }
   0xa   :  { %2665 = vmatprep.subr.bf16.mxu0 %v2664_v26  ;;  %v2698_v38 = vpack.c.bf16 %v93_v32, %v92_v31  ;;  %v63_v40 = vld [vmem:[%s5152_s1 + $0x38] sm:$0xff]  ;;  %v110_v41 = vld [vmem:[%s5152_s1 + $0x1b0] sm:$0xff]  ;;  %v80_v46 = vld [vmem:[%s5152_s1 + $0xc0] sm:$0xff] }
   0xb   :  { %2695 = vmatpush3.bf16.msra.mxu1 %v2694_v25  ;;  %v111_v42 = vld [vmem:[%s5152_s1 + $0x1b8] sm:$0xff]  ;;  %v94_v44 = vld [vmem:[%s5152_s1 + $0x130] sm:$0xff]  ;;  %v81_v47 = vld [vmem:[%s5152_s1 + $0xc8] sm:$0xff]  ;;  %v2670_v48 = vpack.c.bf16 %v63_v40, %v62_v37 }
   0xc   :  { %2697 = vmatprep.subr.bf16.mxu1 %v2696_v34  ;;  %v2700_v43 = vpack.c.bf16 %v111_v42, %v110_v41  ;;  %v95_v45 = vld [vmem:[%s5152_s1 + $0x138] sm:$0xff]  ;;  %v112_v49 = vld [vmem:[%s5152_s1 + $0x1c0] sm:$0xff]  ;;  %v113_v50 = vld [vmem:[%s5152_s1 + $0x1c8] sm:$0xff]  ;;  %v2672_v52 = vpack.c.bf16 %v81_v47, %v80_v46 }
   0xd   :  { %2667 = vmatpush3.bf16.msra.mxu0 %v2666_v33  ;;  %v2702_v51 = vpack.c.bf16 %v95_v45, %v94_v44  ;;  %v64_v53 = vld [vmem:[%s5152_s1 + $0x40] sm:$0xff]  ;;  %v65_v54 = vld [vmem:[%s5152_s1 + $0x48] sm:$0xff]  ;;  %v2704_v56 = vpack.c.bf16 %v113_v50, %v112_v49  ;;  %v82_v58 = vld [vmem:[%s5152_s1 + $0xd0] sm:$0xff] }
   0xe   :  { %2669 = vmatprep.subr.bf16.mxu0 %v2668_v39  ;;  %v96_v55 = vld [vmem:[%s5152_s1 + $0x140] sm:$0xff]  ;;  %v97_v57 = vld [vmem:[%s5152_s1 + $0x148] sm:$0xff]  ;;  %v83_v59 = vld [vmem:[%s5152_s1 + $0xd8] sm:$0xff]  ;;  %v2674_v62 = vpack.c.bf16 %v65_v54, %v64_v53 }
   0xf   :  { %2699 = vmatpush3.bf16.msra.mxu1 %v2698_v38  ;;  %v114_v60 = vld [vmem:[%s5152_s1 + $0x1d0] sm:$0xff]  ;;  %v115_v61 = vld [vmem:[%s5152_s1 + $0x1d8] sm:$0xff]  ;;  %v2706_v63 = vpack.c.bf16 %v97_v57, %v96_v55  ;;  %v2676_v0 = vpack.c.bf16 %v83_v59, %v82_v58  ;;  %v84_v6 = vld [vmem:[%s5152_s1 + $0xe0] sm:$0xff] }
  0x10   :  { %2701 = vmatprep.subr.bf16.mxu1 %v2700_v43  ;;  %v66_v1 = vld [vmem:[%s5152_s1 + $0x50] sm:$0xff]  ;;  %v67_v2 = vld [vmem:[%s5152_s1 + $0x58] sm:$0xff]  ;;  %v2708_v4 = vpack.c.bf16 %v115_v61, %v114_v60  ;;  %v85_v7 = vld [vmem:[%s5152_s1 + $0xe8] sm:$0xff] }
  0x11   :  { %2671 = vmatpush3.bf16.msra.mxu0 %v2670_v48  ;;  %v98_v3 = vld [vmem:[%s5152_s1 + $0x150] sm:$0xff]  ;;  %v99_v5 = vld [vmem:[%s5152_s1 + $0x158] sm:$0xff]  ;;  %v116_v8 = vld [vmem:[%s5152_s1 + $0x1e0] sm:$0xff]  ;;  %v2678_v10 = vpack.c.bf16 %v67_v2, %v66_v1  ;;  %v2680_v14 = vpack.c.bf16 %v85_v7, %v84_v6 }
  0x12   :  { %2673 = vmatprep.subr.bf16.mxu0 %v2672_v52  ;;  %v117_v9 = vld [vmem:[%s5152_s1 + $0x1e8] sm:$0xff]  ;;  %v68_v11 = vld [vmem:[%s5152_s1 + $0x60] sm:$0xff]  ;;  %v2710_v13 = vpack.c.bf16 %v99_v5, %v98_v3  ;;  %v86_v19 = vld [vmem:[%s5152_s1 + $0xf0] sm:$0xff] }
  0x13   :  { %2703 = vmatpush3.bf16.msra.mxu1 %v2702_v51  ;;  %v69_v12 = vld [vmem:[%s5152_s1 + $0x68] sm:$0xff]  ;;  %v100_v15 = vld [vmem:[%s5152_s1 + $0x160] sm:$0xff]  ;;  %v2712_v18 = vpack.c.bf16 %v117_v9, %v116_v8  ;;  %v87_v20 = vld [vmem:[%s5152_s1 + $0xf8] sm:$0xff] }
  0x14   :  { %2705 = vmatprep.subr.bf16.mxu1 %v2704_v56  ;;  %v101_v16 = vld [vmem:[%s5152_s1 + $0x168] sm:$0xff]  ;;  %v23_v21 = vld [vmem:[%s5153_s0 + $0x18] sm:$0xff]  ;;  %v118_v22 = vld [vmem:[%s5152_s1 + $0x1f0] sm:$0xff]  ;;  %v2682_v24 = vpack.c.bf16 %v69_v12, %v68_v11  ;;  %v2684_v26 = vpack.c.bf16 %v87_v20, %v86_v19 }
  0x15   :  { %2675 = vmatpush3.bf16.msra.mxu0 %v2674_v62  ;;  %v21_v17 = vld [vmem:[%s5153_s0 + $0x8] sm:$0xff]  ;;  %v119_v23 = vld [vmem:[%s5152_s1 + $0x1f8] sm:$0xff]  ;;  %773 = vmatprep.mubr.f32.mxu1 %v23_v21  ;;  %v2714_v25 = vpack.c.bf16 %v101_v16, %v100_v15  ;;  %v70_v27 = vld [vmem:[%s5152_s1 + $0x70] sm:$0xff] }
  0x16   :  { %2677 = vmatprep.subr.bf16.mxu0 %v2676_v0  ;;  %703 = vmatprep.mubr.f32.mxu0 %v21_v17  ;;  %v71_v28 = vld [vmem:[%s5152_s1 + $0x78] sm:$0xff]  ;;  %v102_v29 = vld [vmem:[%s5152_s1 + $0x170] sm:$0xff]  ;;  %v2716_v30 = vpack.c.bf16 %v119_v23, %v118_v22  ;;  %v136_v32 = vld [vmem:[%s5152_s1 + $0x280] sm:$0xff] }
  0x17   :  { %2707 = vmatpush3.bf16.msra.mxu1 %v2706_v63  ;;  %v103_v31 = vld [vmem:[%s5152_s1 + $0x178] sm:$0xff]  ;;  %v137_v33 = vld [vmem:[%s5152_s1 + $0x288] sm:$0xff]  ;;  %v168_v34 = vld [vmem:[%s5152_s1 + $0x380] sm:$0xff]  ;;  %v2686_v36 = vpack.c.bf16 %v71_v28, %v70_v27 }
  0x18   :  { %2709 = vmatprep.subr.bf16.mxu1 %v2708_v4  ;;  %v169_v35 = vld [vmem:[%s5152_s1 + $0x388] sm:$0xff]  ;;  %v2718_v37 = vpack.c.bf16 %v103_v31, %v102_v29  ;;  %v2720_v38 = vpack.c.bf16 %v137_v33, %v136_v32  ;;  %v120_v39 = vld [vmem:[%s5152_s1 + $0x200] sm:$0xff]  ;;  %v138_v44 = vld [vmem:[%s5152_s1 + $0x290] sm:$0xff] }
  0x19   :  { %2679 = vmatpush3.bf16.msra.mxu0 %v2678_v10  ;;  %v121_v40 = vld [vmem:[%s5152_s1 + $0x208] sm:$0xff]  ;;  %v152_v41 = vld [vmem:[%s5152_s1 + $0x300] sm:$0xff]  ;;  %v2752_v42 = vpack.c.bf16 %v169_v35, %v168_v34  ;;  %v139_v45 = vld [vmem:[%s5152_s1 + $0x298] sm:$0xff] }
  0x1a   :  { %2681 = vmatprep.subr.bf16.mxu0 %v2680_v14  ;;  %v153_v43 = vld [vmem:[%s5152_s1 + $0x308] sm:$0xff]  ;;  %v170_v46 = vld [vmem:[%s5152_s1 + $0x390] sm:$0xff]  ;;  %v171_v47 = vld [vmem:[%s5152_s1 + $0x398] sm:$0xff]  ;;  %v2722_v49 = vpack.c.bf16 %v121_v40, %v120_v39  ;;  %v2724_v52 = vpack.c.bf16 %v139_v45, %v138_v44 }
  0x1b   :  { %2711 = vmatpush3.bf16.msra.mxu1 %v2710_v13  ;;  %v20_v48 = vld [vmem:[%s5153_s0] sm:$0xff]  ;;  %v22_v50 = vld [vmem:[%s5153_s0 + $0x10] sm:$0xff]  ;;  %v2754_v51 = vpack.c.bf16 %v153_v43, %v152_v41  ;;  %v123_v54 = vld [vmem:[%s5152_s1 + $0x218] sm:$0xff]  ;;  %v2756_v56 = vpack.c.bf16 %v171_v47, %v170_v46 }
  0x1c   :  { %2713 = vmatprep.subr.bf16.mxu1 %v2712_v18  ;;  %v122_v53 = vld [vmem:[%s5152_s1 + $0x210] sm:$0xff]  ;;  %v155_v57 = vld [vmem:[%s5152_s1 + $0x318] sm:$0xff]  ;;  %v140_v58 = vld [vmem:[%s5152_s1 + $0x2a0] sm:$0xff] }
  0x1d   :  { %2683 = vmatpush3.bf16.msra.mxu0 %v2682_v24  ;;  %v154_v55 = vld [vmem:[%s5152_s1 + $0x310] sm:$0xff]  ;;  %v141_v59 = vld [vmem:[%s5152_s1 + $0x2a8] sm:$0xff]  ;;  %v172_v60 = vld [vmem:[%s5152_s1 + $0x3a0] sm:$0xff]  ;;  %v2726_v62 = vpack.c.bf16 %v123_v54, %v122_v53 }
  0x1e   :  { %2685 = vmatprep.subr.bf16.mxu0 %v2684_v26  ;;  %v173_v61 = vld [vmem:[%s5152_s1 + $0x3a8] sm:$0xff]  ;;  %v2758_v63 = vpack.c.bf16 %v155_v57, %v154_v55  ;;  %v2728_v0 = vpack.c.bf16 %v141_v59, %v140_v58  ;;  %v124_v1 = vld [vmem:[%s5152_s1 + $0x220] sm:$0xff]  ;;  %v142_v6 = vld [vmem:[%s5152_s1 + $0x2b0] sm:$0xff] }
  0x1f   :  { %2715 = vmatpush3.bf16.msra.mxu1 %v2714_v25  ;;  %v125_v2 = vld [vmem:[%s5152_s1 + $0x228] sm:$0xff]  ;;  %v156_v3 = vld [vmem:[%s5152_s1 + $0x320] sm:$0xff]  ;;  %v2760_v4 = vpack.c.bf16 %v173_v61, %v172_v60  ;;  %v143_v7 = vld [vmem:[%s5152_s1 + $0x2b8] sm:$0xff] }
  0x20   :  { %2717 = vmatprep.subr.bf16.mxu1 %v2716_v30  ;;  %v157_v5 = vld [vmem:[%s5152_s1 + $0x328] sm:$0xff]  ;;  %v174_v8 = vld [vmem:[%s5152_s1 + $0x3b0] sm:$0xff]  ;;  %v175_v9 = vld [vmem:[%s5152_s1 + $0x3b8] sm:$0xff]  ;;  %v2730_v10 = vpack.c.bf16 %v125_v2, %v124_v1  ;;  %v2732_v12 = vpack.c.bf16 %v143_v7, %v142_v6 }
  0x21   :  { %2687 = vmatpush3.bf16.msra.mxu0 %v2686_v36  ;;  %v2762_v11 = vpack.c.bf16 %v157_v5, %v156_v3  ;;  %v126_v13 = vld [vmem:[%s5152_s1 + $0x230] sm:$0xff]  ;;  %v127_v14 = vld [vmem:[%s5152_s1 + $0x238] sm:$0xff]  ;;  %v2764_v16 = vpack.c.bf16 %v175_v9, %v174_v8  ;;  %v144_v18 = vld [vmem:[%s5152_s1 + $0x2c0] sm:$0xff] }
  0x22   :  { %2721 = vmatprep.subr.bf16.mxu0 %v2720_v38  ;;  %v158_v15 = vld [vmem:[%s5152_s1 + $0x330] sm:$0xff]  ;;  %v159_v17 = vld [vmem:[%s5152_s1 + $0x338] sm:$0xff]  ;;  %v145_v19 = vld [vmem:[%s5152_s1 + $0x2c8] sm:$0xff]  ;;  %v2734_v22 = vpack.c.bf16 %v127_v14, %v126_v13 }
  0x23   :  { %2719 = vmatpush3.bf16.msra.mxu1 %v2718_v37  ;;  %v176_v20 = vld [vmem:[%s5152_s1 + $0x3c0] sm:$0xff]  ;;  %v177_v21 = vld [vmem:[%s5152_s1 + $0x3c8] sm:$0xff]  ;;  %v2766_v25 = vpack.c.bf16 %v159_v17, %v158_v15  ;;  %v2736_v26 = vpack.c.bf16 %v145_v19, %v144_v18  ;;  %v27_v29 = vld [vmem:[%s5153_s0 + $0x38] sm:$0xff] }
  0x24   :  { %2753 = vmatprep.subr.bf16.mxu1 %v2752_v42  ;;  %704 = vmatmul.mubr.f32.vlgmr.msra.gmra.mrb[0].mxu0 %v20_v48  ;;  %v128_v23 = vld [vmem:[%s5152_s1 + $0x240] sm:$0xff]  ;;  %v25_v24 = vld [vmem:[%s5153_s0 + $0x28] sm:$0xff]  ;;  %v2768_v30 = vpack.c.bf16 %v177_v21, %v176_v20  ;;  %v146_v32 = vld [vmem:[%s5152_s1 + $0x2d0] sm:$0xff] }
  0x25   :  { %2723 = vmatpush3.bf16.msra.mxu0 %v2722_v49  ;;  %v129_v27 = vld [vmem:[%s5152_s1 + $0x248] sm:$0xff]  ;;  %v160_v28 = vld [vmem:[%s5152_s1 + $0x340] sm:$0xff]  ;;  %v147_v33 = vld [vmem:[%s5152_s1 + $0x2d8] sm:$0xff]  ;;  %843 = vmatprep.mubr.f32.mxu0 %v25_v24 }
  0x26   :  { %774 = vmatmul.mubr.f32.vlgmr.msra.gmra.mrb[0].mxu1 %v22_v50  ;;  %2725 = vmatprep.subr.bf16.mxu0 %v2724_v52  ;;  %v161_v31 = vld [vmem:[%s5152_s1 + $0x348] sm:$0xff]  ;;  %v178_v34 = vld [vmem:[%s5152_s1 + $0x3d0] sm:$0xff]  ;;  %v179_v35 = vld [vmem:[%s5152_s1 + $0x3d8] sm:$0xff]  ;;  %v2738_v36 = vpack.c.bf16 %v129_v27, %v128_v23  ;;  %v2740_v38 = vpack.c.bf16 %v147_v33, %v146_v32 }
  0x27   :  { %2755 = vmatpush3.bf16.msra.mxu1 %v2754_v51  ;;  %913 = vmatprep.mubr.f32.mxu1 %v27_v29  ;;  %v2770_v37 = vpack.c.bf16 %v161_v31, %v160_v28  ;;  %v130_v39 = vld [vmem:[%s5152_s1 + $0x250] sm:$0xff]  ;;  %v131_v40 = vld [vmem:[%s5152_s1 + $0x258] sm:$0xff]  ;;  %v2772_v42 = vpack.c.bf16 %v179_v35, %v178_v34  ;;  %v148_v44 = vld [vmem:[%s5152_s1 + $0x2e0] sm:$0xff] }
  0x28   :  { %2757 = vmatprep.subr.bf16.mxu1 %v2756_v56  ;;  %v162_v41 = vld [vmem:[%s5152_s1 + $0x350] sm:$0xff]  ;;  %v163_v43 = vld [vmem:[%s5152_s1 + $0x358] sm:$0xff]  ;;  %v149_v45 = vld [vmem:[%s5152_s1 + $0x2e8] sm:$0xff]  ;;  %v2742_v48 = vpack.c.bf16 %v131_v40, %v130_v39 }
  0x29   :  { %2727 = vmatpush3.bf16.msra.mxu0 %v2726_v62  ;;  %v180_v46 = vld [vmem:[%s5152_s1 + $0x3e0] sm:$0xff]  ;;  %v181_v47 = vld [vmem:[%s5152_s1 + $0x3e8] sm:$0xff]  ;;  %v2774_v49 = vpack.c.bf16 %v163_v43, %v162_v41  ;;  %v2744_v50 = vpack.c.bf16 %v149_v45, %v148_v44  ;;  %v150_v56 = vld [vmem:[%s5152_s1 + $0x2f0] sm:$0xff] }
  0x2a   :  { %2729 = vmatprep.subr.bf16.mxu0 %v2728_v0  ;;  %v132_v51 = vld [vmem:[%s5152_s1 + $0x260] sm:$0xff]  ;;  %v133_v52 = vld [vmem:[%s5152_s1 + $0x268] sm:$0xff]  ;;  %v2776_v54 = vpack.c.bf16 %v181_v47, %v180_v46  ;;  %v151_v57 = vld [vmem:[%s5152_s1 + $0x2f8] sm:$0xff] }
  0x2b   :  { %2759 = vmatpush3.bf16.msra.mxu1 %v2758_v63  ;;  %v164_v53 = vld [vmem:[%s5152_s1 + $0x360] sm:$0xff]  ;;  %v165_v55 = vld [vmem:[%s5152_s1 + $0x368] sm:$0xff]  ;;  %v182_v58 = vld [vmem:[%s5152_s1 + $0x3f0] sm:$0xff]  ;;  %v2746_v60 = vpack.c.bf16 %v133_v52, %v132_v51  ;;  %v2748_v62 = vpack.c.bf16 %v151_v57, %v150_v56 }
  0x2c   :  { %2761 = vmatprep.subr.bf16.mxu1 %v2760_v4  ;;  %v183_v59 = vld [vmem:[%s5152_s1 + $0x3f8] sm:$0xff]  ;;  %v2778_v61 = vpack.c.bf16 %v165_v55, %v164_v53  ;;  %v134_v63 = vld [vmem:[%s5152_s1 + $0x270] sm:$0xff]  ;;  %v200_v4 = vld [vmem:[%s5152_s1 + $0x480] sm:$0xff] }
  0x2d   :  { %2731 = vmatpush3.bf16.msra.mxu0 %v2730_v10  ;;  %v135_v0 = vld [vmem:[%s5152_s1 + $0x278] sm:$0xff]  ;;  %v166_v1 = vld [vmem:[%s5152_s1 + $0x370] sm:$0xff]  ;;  %v2780_v2 = vpack.c.bf16 %v183_v59, %v182_v58  ;;  %v201_v5 = vld [vmem:[%s5152_s1 + $0x488] sm:$0xff] }
  0x2e   :  { %2733 = vmatprep.subr.bf16.mxu0 %v2732_v12  ;;  %v167_v3 = vld [vmem:[%s5152_s1 + $0x378] sm:$0xff]  ;;  %v232_v6 = vld [vmem:[%s5152_s1 + $0x580] sm:$0xff]  ;;  %v233_v7 = vld [vmem:[%s5152_s1 + $0x588] sm:$0xff]  ;;  %v2750_v8 = vpack.c.bf16 %v135_v0, %v134_v63  ;;  %v2784_v10 = vpack.c.bf16 %v201_v5, %v200_v4 }
  0x2f   :  { %2763 = vmatpush3.bf16.msra.mxu1 %v2762_v11  ;;  %v2782_v9 = vpack.c.bf16 %v167_v3, %v166_v1  ;;  %v184_v11 = vld [vmem:[%s5152_s1 + $0x400] sm:$0xff]  ;;  %v185_v12 = vld [vmem:[%s5152_s1 + $0x408] sm:$0xff]  ;;  %v2816_v14 = vpack.c.bf16 %v233_v7, %v232_v6  ;;  %v203_v17 = vld [vmem:[%s5152_s1 + $0x498] sm:$0xff] }
  0x30   :  { %2765 = vmatprep.subr.bf16.mxu1 %v2764_v16  ;;  %v216_v13 = vld [vmem:[%s5152_s1 + $0x500] sm:$0xff]  ;;  %v217_v15 = vld [vmem:[%s5152_s1 + $0x508] sm:$0xff]  ;;  %v202_v16 = vld [vmem:[%s5152_s1 + $0x490] sm:$0xff]  ;;  %v2786_v21 = vpack.c.bf16 %v185_v12, %v184_v11 }
  0x31   :  { %2735 = vmatpush3.bf16.msra.mxu0 %v2734_v22  ;;  %v234_v18 = vld [vmem:[%s5152_s1 + $0x590] sm:$0xff]  ;;  %v235_v19 = vld [vmem:[%s5152_s1 + $0x598] sm:$0xff]  ;;  %v24_v20 = vld [vmem:[%s5153_s0 + $0x20] sm:$0xff]  ;;  %v2818_v23 = vpack.c.bf16 %v217_v15, %v216_v13  ;;  %v2788_v24 = vpack.c.bf16 %v203_v17, %v202_v16 }
  0x32   :  { %2737 = vmatprep.subr.bf16.mxu0 %v2736_v26  ;;  %v26_v22 = vld [vmem:[%s5153_s0 + $0x30] sm:$0xff]  ;;  %v187_v26 = vld [vmem:[%s5152_s1 + $0x418] sm:$0xff]  ;;  %v2820_v28 = vpack.c.bf16 %v235_v19, %v234_v18  ;;  %v205_v31 = vld [vmem:[%s5152_s1 + $0x4a8] sm:$0xff] }
  0x33   :  { %2767 = vmatpush3.bf16.msra.mxu1 %v2766_v25  ;;  %v186_v25 = vld [vmem:[%s5152_s1 + $0x410] sm:$0xff]  ;;  %v219_v29 = vld [vmem:[%s5152_s1 + $0x518] sm:$0xff]  ;;  %v236_v32 = vld [vmem:[%s5152_s1 + $0x5a0] sm:$0xff] }
  0x34   :  { %2769 = vmatprep.subr.bf16.mxu1 %v2768_v30  ;;  %v218_v27 = vld [vmem:[%s5152_s1 + $0x510] sm:$0xff]  ;;  %v204_v30 = vld [vmem:[%s5152_s1 + $0x4a0] sm:$0xff]  ;;  %v237_v33 = vld [vmem:[%s5152_s1 + $0x5a8] sm:$0xff]  ;;  %v2790_v35 = vpack.c.bf16 %v187_v26, %v186_v25 }
  0x35   :  { %2739 = vmatpush3.bf16.msra.mxu0 %v2738_v36  ;;  %v29_v34 = vld [vmem:[%s5153_s0 + $0x48] sm:$0xff]  ;;  %v31_v36 = vld [vmem:[%s5153_s0 + $0x58] sm:$0xff]  ;;  %v188_v39 = vld [vmem:[%s5152_s1 + $0x420] sm:$0xff] }
  0x36   :  { %2741 = vmatprep.subr.bf16.mxu0 %v2740_v38  ;;  %v2792_v38 = vpack.c.bf16 %v205_v31, %v204_v30  ;;  %v189_v40 = vld [vmem:[%s5152_s1 + $0x428] sm:$0xff]  ;;  %v220_v41 = vld [vmem:[%s5152_s1 + $0x520] sm:$0xff]  ;;  %v206_v44 = vld [vmem:[%s5152_s1 + $0x4b0] sm:$0xff] }
  0x37   :  { %2771 = vmatpush3.bf16.msra.mxu1 %v2770_v37  ;;  %v2822_v37 = vpack.c.bf16 %v219_v29, %v218_v27  ;;  %v221_v43 = vld [vmem:[%s5152_s1 + $0x528] sm:$0xff]  ;;  %v207_v45 = vld [vmem:[%s5152_s1 + $0x4b8] sm:$0xff]  ;;  %v238_v46 = vld [vmem:[%s5152_s1 + $0x5b0] sm:$0xff] }
  0x38   :  { %2773 = vmatprep.subr.bf16.mxu1 %v2772_v42  ;;  %v2824_v42 = vpack.c.bf16 %v237_v33, %v236_v32  ;;  %v239_v47 = vld [vmem:[%s5152_s1 + $0x5b8] sm:$0xff]  ;;  %v190_v51 = vld [vmem:[%s5152_s1 + $0x430] sm:$0xff]  ;;  %v208_v56 = vld [vmem:[%s5152_s1 + $0x4c0] sm:$0xff] }
  0x39   :  { %2743 = vmatpush3.bf16.msra.mxu0 %v2742_v48  ;;  %v2794_v48 = vpack.c.bf16 %v189_v40, %v188_v39  ;;  %v191_v52 = vld [vmem:[%s5152_s1 + $0x438] sm:$0xff]  ;;  %v222_v53 = vld [vmem:[%s5152_s1 + $0x530] sm:$0xff]  ;;  %v209_v57 = vld [vmem:[%s5152_s1 + $0x4c8] sm:$0xff] }
  0x3a   :  { %2745 = vmatprep.subr.bf16.mxu0 %v2744_v50  ;;  %v2796_v50 = vpack.c.bf16 %v207_v45, %v206_v44  ;;  %v223_v55 = vld [vmem:[%s5152_s1 + $0x538] sm:$0xff]  ;;  %v240_v58 = vld [vmem:[%s5152_s1 + $0x5c0] sm:$0xff]  ;;  %v241_v59 = vld [vmem:[%s5152_s1 + $0x5c8] sm:$0xff] }
  0x3b   :  { %2775 = vmatpush3.bf16.msra.mxu1 %v2774_v49  ;;  %v2826_v49 = vpack.c.bf16 %v221_v43, %v220_v41  ;;  %v192_v63 = vld [vmem:[%s5152_s1 + $0x440] sm:$0xff]  ;;  %v193_v0 = vld [vmem:[%s5152_s1 + $0x448] sm:$0xff]  ;;  %v210_v4 = vld [vmem:[%s5152_s1 + $0x4d0] sm:$0xff] }
  0x3c   :  { %2777 = vmatprep.subr.bf16.mxu1 %v2776_v54  ;;  %v2828_v54 = vpack.c.bf16 %v239_v47, %v238_v46  ;;  %v224_v1 = vld [vmem:[%s5152_s1 + $0x540] sm:$0xff]  ;;  %v225_v3 = vld [vmem:[%s5152_s1 + $0x548] sm:$0xff]  ;;  %v211_v5 = vld [vmem:[%s5152_s1 + $0x4d8] sm:$0xff] }
  0x3d   :  { %2747 = vmatpush3.bf16.msra.mxu0 %v2746_v60  ;;  %v2798_v60 = vpack.c.bf16 %v191_v52, %v190_v51  ;;  %v242_v6 = vld [vmem:[%s5152_s1 + $0x5d0] sm:$0xff]  ;;  %v243_v7 = vld [vmem:[%s5152_s1 + $0x5d8] sm:$0xff]  ;;  %v212_v16 = vld [vmem:[%s5152_s1 + $0x4e0] sm:$0xff] }
  0x3e   :  { %2749 = vmatprep.subr.bf16.mxu0 %v2748_v62  ;;  %v2800_v62 = vpack.c.bf16 %v209_v57, %v208_v56  ;;  %v194_v11 = vld [vmem:[%s5152_s1 + $0x450] sm:$0xff]  ;;  %v195_v12 = vld [vmem:[%s5152_s1 + $0x458] sm:$0xff]  ;;  %v213_v17 = vld [vmem:[%s5152_s1 + $0x4e8] sm:$0xff] }
  0x3f   :  { %2779 = vmatpush3.bf16.msra.mxu1 %v2778_v61  ;;  %v2830_v61 = vpack.c.bf16 %v223_v55, %v222_v53  ;;  %v226_v13 = vld [vmem:[%s5152_s1 + $0x550] sm:$0xff]  ;;  %v227_v15 = vld [vmem:[%s5152_s1 + $0x558] sm:$0xff]  ;;  %v244_v18 = vld [vmem:[%s5152_s1 + $0x5e0] sm:$0xff] }
  0x40   :  { %2781 = vmatprep.subr.bf16.mxu1 %v2780_v2  ;;  %v2832_v2 = vpack.c.bf16 %v241_v59, %v240_v58  ;;  %v245_v19 = vld [vmem:[%s5152_s1 + $0x5e8] sm:$0xff]  ;;  %v228_v25 = vld [vmem:[%s5152_s1 + $0x560] sm:$0xff]  ;;  %v215_v29 = vld [vmem:[%s5152_s1 + $0x4f8] sm:$0xff] }
  0x41   :  { %2751 = vmatpush3.bf16.msra.mxu0 %v2750_v8  ;;  %v2802_v8 = vpack.c.bf16 %v193_v0, %v192_v63  ;;  %v2840_v26 = vpack.c.bf16 %v245_v19, %v244_v18  ;;  %v229_v27 = vld [vmem:[%s5152_s1 + $0x568] sm:$0xff]  ;;  %v246_v30 = vld [vmem:[%s5152_s1 + $0x5f0] sm:$0xff]  ;;  %v247_v31 = vld [vmem:[%s5152_s1 + $0x5f8] sm:$0xff] }
  0x42   :  { %2785 = vmatprep.subr.bf16.mxu0 %v2784_v10  ;;  %v2804_v10 = vpack.c.bf16 %v211_v5, %v210_v4  ;;  %v2842_v33 = vpack.c.bf16 %v229_v27, %v228_v25  ;;  %v231_v39 = vld [vmem:[%s5152_s1 + $0x578] sm:$0xff]  ;;  %v264_v40 = vld [vmem:[%s5152_s1 + $0x680] sm:$0xff]  ;;  %v265_v41 = vld [vmem:[%s5152_s1 + $0x688] sm:$0xff] }
  0x43   :  { %2783 = vmatpush3.bf16.msra.mxu1 %v2782_v9  ;;  %v2834_v9 = vpack.c.bf16 %v225_v3, %v224_v1  ;;  %v297_v43 = vld [vmem:[%s5152_s1 + $0x788] sm:$0xff]  ;;  %v2848_v46 = vpack.c.bf16 %v265_v41, %v264_v40  ;;  %v248_v47 = vld [vmem:[%s5152_s1 + $0x600] sm:$0xff]  ;;  %v266_v52 = vld [vmem:[%s5152_s1 + $0x690] sm:$0xff] }
  0x44   :  { %2817 = vmatprep.subr.bf16.mxu1 %v2816_v14  ;;  %844 = vmatmul.mubr.f32.vlgmr.msra.gmra.mrb[2].mxu0 %v24_v20  ;;  %v2836_v14 = vpack.c.bf16 %v243_v7, %v242_v6  ;;  %v2806_v20 = vpack.c.bf16 %v195_v12, %v194_v11  ;;  %v281_v51 = vld [vmem:[%s5152_s1 + $0x708] sm:$0xff]  ;;  %v267_v53 = vld [vmem:[%s5152_s1 + $0x698] sm:$0xff]  ;;  %v28_v56 = vld [vmem:[%s5153_s0 + $0x40] sm:$0xff] }
  0x45   :  { %2787 = vmatpush3.bf16.msra.mxu0 %v2786_v21  ;;  %983 = vmatprep.mubr.f32.mxu0 %v29_v34  ;;  %v2838_v21 = vpack.c.bf16 %v227_v15, %v226_v13  ;;  %v299_v55 = vld [vmem:[%s5152_s1 + $0x798] sm:$0xff]  ;;  %v30_v58 = vld [vmem:[%s5153_s0 + $0x50] sm:$0xff]  ;;  %v269_v3 = vld [vmem:[%s5152_s1 + $0x6a8] sm:$0xff] }
  0x46   :  { %914 = vmatmul.mubr.f32.vlgmr.msra.gmra.mrb[2].mxu1 %v26_v22  ;;  %2789 = vmatprep.subr.bf16.mxu0 %v2788_v24  ;;  %v2808_v22 = vpack.c.bf16 %v213_v17, %v212_v16  ;;  %v197_v24 = vld [vmem:[%s5152_s1 + $0x468] sm:$0xff]  ;;  %v282_v63 = vld [vmem:[%s5152_s1 + $0x710] sm:$0xff]  ;;  %v283_v1 = vld [vmem:[%s5152_s1 + $0x718] sm:$0xff] }
  0x47   :  { %2819 = vmatpush3.bf16.msra.mxu1 %v2818_v23  ;;  %1053 = vmatprep.mubr.f32.mxu1 %v31_v36  ;;  %v196_v23 = vld [vmem:[%s5152_s1 + $0x460] sm:$0xff]  ;;  %v199_v36 = vld [vmem:[%s5152_s1 + $0x478] sm:$0xff]  ;;  %v301_v5 = vld [vmem:[%s5152_s1 + $0x7a8] sm:$0xff] }
  0x48   :  { %2821 = vmatprep.subr.bf16.mxu1 %v2820_v28  ;;  %v214_v28 = vld [vmem:[%s5152_s1 + $0x4f0] sm:$0xff]  ;;  %v2810_v32 = vpack.c.bf16 %v197_v24, %v196_v23  ;;  %v300_v4 = vld [vmem:[%s5152_s1 + $0x7a0] sm:$0xff]  ;;  %v33_v6 = vld [vmem:[%s5153_s0 + $0x68] sm:$0xff] }
  0x49   :  { %2791 = vmatpush3.bf16.msra.mxu0 %v2790_v35  ;;  %v2812_v34 = vpack.c.bf16 %v215_v29, %v214_v28  ;;  %v198_v35 = vld [vmem:[%s5152_s1 + $0x470] sm:$0xff]  ;;  %v252_v11 = vld [vmem:[%s5152_s1 + $0x620] sm:$0xff]  ;;  %v253_v12 = vld [vmem:[%s5152_s1 + $0x628] sm:$0xff] }
  0x4a   :  { %2793 = vmatprep.subr.bf16.mxu0 %v2792_v38  ;;  %v2844_v38 = vpack.c.bf16 %v247_v31, %v246_v30  ;;  %v2814_v44 = vpack.c.bf16 %v199_v36, %v198_v35  ;;  %v284_v13 = vld [vmem:[%s5152_s1 + $0x720] sm:$0xff]  ;;  %v285_v15 = vld [vmem:[%s5152_s1 + $0x728] sm:$0xff]  ;;  %v270_v16 = vld [vmem:[%s5152_s1 + $0x6b0] sm:$0xff] }
  0x4b   :  { %2823 = vmatpush3.bf16.msra.mxu1 %v2822_v37  ;;  %v230_v37 = vld [vmem:[%s5152_s1 + $0x570] sm:$0xff]  ;;  %v271_v17 = vld [vmem:[%s5152_s1 + $0x6b8] sm:$0xff]  ;;  %v272_v28 = vld [vmem:[%s5152_s1 + $0x6c0] sm:$0xff] }
  0x4c   :  { %2825 = vmatprep.subr.bf16.mxu1 %v2824_v42  ;;  %v296_v42 = vld [vmem:[%s5152_s1 + $0x780] sm:$0xff]  ;;  %v2846_v45 = vpack.c.bf16 %v231_v39, %v230_v37  ;;  %v302_v18 = vld [vmem:[%s5152_s1 + $0x7b0] sm:$0xff]  ;;  %v303_v19 = vld [vmem:[%s5152_s1 + $0x7b8] sm:$0xff] }
  0x4d   :  { %2795 = vmatpush3.bf16.msra.mxu0 %v2794_v48  ;;  %v249_v48 = vld [vmem:[%s5152_s1 + $0x608] sm:$0xff]  ;;  %v254_v23 = vld [vmem:[%s5152_s1 + $0x630] sm:$0xff]  ;;  %v255_v24 = vld [vmem:[%s5152_s1 + $0x638] sm:$0xff] }
  0x4e   :  { %2797 = vmatprep.subr.bf16.mxu0 %v2796_v50  ;;  %v2880_v50 = vpack.c.bf16 %v297_v43, %v296_v42  ;;  %v2850_v57 = vpack.c.bf16 %v249_v48, %v248_v47  ;;  %v286_v25 = vld [vmem:[%s5152_s1 + $0x730] sm:$0xff]  ;;  %v287_v27 = vld [vmem:[%s5152_s1 + $0x738] sm:$0xff]  ;;  %v273_v29 = vld [vmem:[%s5152_s1 + $0x6c8] sm:$0xff] }
  0x4f   :  { %2827 = vmatpush3.bf16.msra.mxu1 %v2826_v49  ;;  %v280_v49 = vld [vmem:[%s5152_s1 + $0x700] sm:$0xff]  ;;  %v305_v31 = vld [vmem:[%s5152_s1 + $0x7c8] sm:$0xff]  ;;  %v274_v40 = vld [vmem:[%s5152_s1 + $0x6d0] sm:$0xff] }
  0x50   :  { %2829 = vmatprep.subr.bf16.mxu1 %v2828_v54  ;;  %v298_v54 = vld [vmem:[%s5152_s1 + $0x790] sm:$0xff]  ;;  %v2882_v59 = vpack.c.bf16 %v281_v51, %v280_v49  ;;  %v304_v30 = vld [vmem:[%s5152_s1 + $0x7c0] sm:$0xff]  ;;  %v257_v36 = vld [vmem:[%s5152_s1 + $0x648] sm:$0xff] }
  0x51   :  { %2799 = vmatpush3.bf16.msra.mxu0 %v2798_v60  ;;  %v2852_v60 = vpack.c.bf16 %v267_v53, %v266_v52  ;;  %v2884_v0 = vpack.c.bf16 %v299_v55, %v298_v54  ;;  %v256_v35 = vld [vmem:[%s5152_s1 + $0x640] sm:$0xff]  ;;  %v289_v39 = vld [vmem:[%s5152_s1 + $0x748] sm:$0xff]  ;;  %v275_v41 = vld [vmem:[%s5152_s1 + $0x6d8] sm:$0xff] }
  0x52   :  { %2801 = vmatprep.subr.bf16.mxu0 %v2800_v62  ;;  %v251_v62 = vld [vmem:[%s5152_s1 + $0x618] sm:$0xff]  ;;  %v288_v37 = vld [vmem:[%s5152_s1 + $0x740] sm:$0xff]  ;;  %v306_v42 = vld [vmem:[%s5152_s1 + $0x7d0] sm:$0xff] }
  0x53   :  { %2831 = vmatpush3.bf16.msra.mxu1 %v2830_v61  ;;  %v250_v61 = vld [vmem:[%s5152_s1 + $0x610] sm:$0xff]  ;;  %v307_v43 = vld [vmem:[%s5152_s1 + $0x7d8] sm:$0xff]  ;;  %v276_v52 = vld [vmem:[%s5152_s1 + $0x6e0] sm:$0xff] }
  0x54   :  { %2833 = vmatprep.subr.bf16.mxu1 %v2832_v2  ;;  %v268_v2 = vld [vmem:[%s5152_s1 + $0x6a0] sm:$0xff]  ;;  %v2854_v7 = vpack.c.bf16 %v251_v62, %v250_v61  ;;  %v258_v47 = vld [vmem:[%s5152_s1 + $0x650] sm:$0xff]  ;;  %v259_v48 = vld [vmem:[%s5152_s1 + $0x658] sm:$0xff] }
  0x55   :  { %2803 = vmatpush3.bf16.msra.mxu0 %v2802_v8  ;;  %v35_v8 = vld [vmem:[%s5153_s0 + $0x78] sm:$0xff]  ;;  %v290_v49 = vld [vmem:[%s5152_s1 + $0x750] sm:$0xff]  ;;  %v277_v53 = vld [vmem:[%s5152_s1 + $0x6e8] sm:$0xff] }
  0x56   :  { %2805 = vmatprep.subr.bf16.mxu0 %v2804_v10  ;;  %v2856_v10 = vpack.c.bf16 %v269_v3, %v268_v2  ;;  %v291_v51 = vld [vmem:[%s5152_s1 + $0x758] sm:$0xff]  ;;  %v308_v54 = vld [vmem:[%s5152_s1 + $0x7e0] sm:$0xff]  ;;  %v309_v55 = vld [vmem:[%s5152_s1 + $0x7e8] sm:$0xff] }
  0x57   :  { %2835 = vmatpush3.bf16.msra.mxu1 %v2834_v9  ;;  %v2886_v9 = vpack.c.bf16 %v283_v1, %v282_v63  ;;  %v292_v61 = vld [vmem:[%s5152_s1 + $0x760] sm:$0xff]  ;;  %v2904_v62 = vpack.c.bf16 %v309_v55, %v308_v54  ;;  %v293_v63 = vld [vmem:[%s5152_s1 + $0x768] sm:$0xff]  ;;  %v279_v1 = vld [vmem:[%s5152_s1 + $0x6f8] sm:$0xff] }
  0x58   :  { %2837 = vmatprep.subr.bf16.mxu1 %v2836_v14  ;;  %v2888_v14 = vpack.c.bf16 %v301_v5, %v300_v4  ;;  %v310_v2 = vld [vmem:[%s5152_s1 + $0x7f0] sm:$0xff]  ;;  %v311_v3 = vld [vmem:[%s5152_s1 + $0x7f8] sm:$0xff]  ;;  %v2906_v5 = vpack.c.bf16 %v293_v63, %v292_v61 }
  0x59   :  { %2807 = vmatpush3.bf16.msra.mxu0 %v2806_v20  ;;  %v2858_v20 = vpack.c.bf16 %v253_v12, %v252_v11  ;;  %v295_v11 = vld [vmem:[%s5152_s1 + $0x778] sm:$0xff]  ;;  %v328_v12 = vld [vmem:[%s5152_s1 + $0x880] sm:$0xff]  ;;  %v366_v54 = vld [vmem:[%s5152_s1 + $0x9b0] sm:$0xff] }
  0x5a   :  { %2809 = vmatprep.subr.bf16.mxu0 %v2808_v22  ;;  %v2860_v22 = vpack.c.bf16 %v271_v17, %v270_v16  ;;  %v367_v55 = vld [vmem:[%s5152_s1 + $0x9b8] sm:$0xff]  ;;  %v350_v61 = vld [vmem:[%s5152_s1 + $0x930] sm:$0xff] }
  0x5b   :  { %2839 = vmatpush3.bf16.msra.mxu1 %v2838_v21  ;;  %v2890_v21 = vpack.c.bf16 %v285_v15, %v284_v13  ;;  %v329_v13 = vld [vmem:[%s5152_s1 + $0x888] sm:$0xff]  ;;  %v351_v63 = vld [vmem:[%s5152_s1 + $0x938] sm:$0xff] }
  0x5c   :  { %2841 = vmatprep.subr.bf16.mxu1 %v2840_v26  ;;  %v2892_v26 = vpack.c.bf16 %v303_v19, %v302_v18  ;;  %v361_v15 = vld [vmem:[%s5152_s1 + $0x988] sm:$0xff]  ;;  %v2912_v18 = vpack.c.bf16 %v329_v13, %v328_v12  ;;  %v312_v19 = vld [vmem:[%s5152_s1 + $0x800] sm:$0xff]  ;;  %v338_v12 = vld [vmem:[%s5152_s1 + $0x8d0] sm:$0xff] }
  0x5d   :  { %2811 = vmatpush3.bf16.msra.mxu0 %v2810_v32  ;;  %v2862_v32 = vpack.c.bf16 %v255_v24, %v254_v23  ;;  %v345_v23 = vld [vmem:[%s5152_s1 + $0x908] sm:$0xff]  ;;  %v330_v24 = vld [vmem:[%s5152_s1 + $0x890] sm:$0xff]  ;;  %v339_v13 = vld [vmem:[%s5152_s1 + $0x8d8] sm:$0xff] }
  0x5e   :  { %2813 = vmatprep.subr.bf16.mxu0 %v2812_v34  ;;  %v2864_v34 = vpack.c.bf16 %v273_v29, %v272_v28  ;;  %v32_v28 = vld [vmem:[%s5153_s0 + $0x60] sm:$0xff] }
  0x5f   :  { %2843 = vmatpush3.bf16.msra.mxu1 %v2842_v33  ;;  %v2894_v33 = vpack.c.bf16 %v287_v27, %v286_v25  ;;  %v331_v25 = vld [vmem:[%s5152_s1 + $0x898] sm:$0xff] }
  0x60   :  { %2845 = vmatprep.subr.bf16.mxu1 %v2844_v38  ;;  %v2896_v38 = vpack.c.bf16 %v305_v31, %v304_v30  ;;  %v363_v27 = vld [vmem:[%s5152_s1 + $0x998] sm:$0xff]  ;;  %v34_v30 = vld [vmem:[%s5153_s0 + $0x70] sm:$0xff] }
  0x61   :  { %2815 = vmatpush3.bf16.msra.mxu0 %v2814_v44  ;;  %v2866_v44 = vpack.c.bf16 %v257_v36, %v256_v35  ;;  %v346_v35 = vld [vmem:[%s5152_s1 + $0x910] sm:$0xff] }
  0x62   :  { %2849 = vmatprep.subr.bf16.mxu0 %v2848_v46  ;;  %v2868_v46 = vpack.c.bf16 %v275_v41, %v274_v40  ;;  %v364_v40 = vld [vmem:[%s5152_s1 + $0x9a0] sm:$0xff]  ;;  %v365_v41 = vld [vmem:[%s5152_s1 + $0x9a8] sm:$0xff] }
  0x63   :  { %2847 = vmatpush3.bf16.msra.mxu1 %v2846_v45  ;;  %v2898_v45 = vpack.c.bf16 %v289_v39, %v288_v37  ;;  %v347_v37 = vld [vmem:[%s5152_s1 + $0x918] sm:$0xff]  ;;  %v333_v39 = vld [vmem:[%s5152_s1 + $0x8a8] sm:$0xff] }
  0x64   :  { %2881 = vmatprep.subr.bf16.mxu1 %v2880_v50  ;;  %984 = vmatmul.mubr.f32.vlgmr.msra.gmra.mrb[4].mxu0 %v28_v56  ;;  %v2900_v50 = vpack.c.bf16 %v307_v43, %v306_v42  ;;  %v2870_v56 = vpack.c.bf16 %v259_v48, %v258_v47  ;;  %v37_v42 = vld [vmem:[%s5153_s0 + $0x88] sm:$0xff]  ;;  %v316_v47 = vld [vmem:[%s5152_s1 + $0x820] sm:$0xff] }
  0x65   :  { %2851 = vmatpush3.bf16.msra.mxu0 %v2850_v57  ;;  %1123 = vmatprep.mubr.f32.mxu0 %v33_v6  ;;  %v2902_v57 = vpack.c.bf16 %v291_v51, %v290_v49  ;;  %v317_v48 = vld [vmem:[%s5152_s1 + $0x828] sm:$0xff]  ;;  %v348_v49 = vld [vmem:[%s5152_s1 + $0x920] sm:$0xff] }
  0x66   :  { %1054 = vmatmul.mubr.f32.vlgmr.msra.gmra.mrb[4].mxu1 %v30_v58  ;;  %2853 = vmatprep.subr.bf16.mxu0 %v2852_v60  ;;  %v2872_v58 = vpack.c.bf16 %v277_v53, %v276_v52  ;;  %v261_v60 = vld [vmem:[%s5152_s1 + $0x668] sm:$0xff]  ;;  %v334_v52 = vld [vmem:[%s5152_s1 + $0x8b0] sm:$0xff]  ;;  %v335_v53 = vld [vmem:[%s5152_s1 + $0x8b8] sm:$0xff] }
  0x67   :  { %2883 = vmatpush3.bf16.msra.mxu1 %v2882_v59  ;;  %1193 = vmatprep.mubr.f32.mxu1 %v35_v8  ;;  %v260_v59 = vld [vmem:[%s5152_s1 + $0x660] sm:$0xff]  ;;  %v263_v8 = vld [vmem:[%s5152_s1 + $0x678] sm:$0xff]  ;;  %v349_v51 = vld [vmem:[%s5152_s1 + $0x928] sm:$0xff] }
  0x68   :  { %2885 = vmatprep.subr.bf16.mxu1 %v2884_v0  ;;  %v278_v0 = vld [vmem:[%s5152_s1 + $0x6f0] sm:$0xff]  ;;  %v2874_v4 = vpack.c.bf16 %v261_v60, %v260_v59  ;;  %v319_v60 = vld [vmem:[%s5152_s1 + $0x838] sm:$0xff] }
  0x69   :  { %2855 = vmatpush3.bf16.msra.mxu0 %v2854_v7  ;;  %v2876_v6 = vpack.c.bf16 %v279_v1, %v278_v0  ;;  %v262_v7 = vld [vmem:[%s5152_s1 + $0x670] sm:$0xff]  ;;  %v336_v0 = vld [vmem:[%s5152_s1 + $0x8c0] sm:$0xff]  ;;  %v337_v1 = vld [vmem:[%s5152_s1 + $0x8c8] sm:$0xff] }
  0x6a   :  { %2857 = vmatprep.subr.bf16.mxu0 %v2856_v10  ;;  %v2908_v10 = vpack.c.bf16 %v311_v3, %v310_v2  ;;  %v2878_v16 = vpack.c.bf16 %v263_v8, %v262_v7  ;;  %v318_v59 = vld [vmem:[%s5152_s1 + $0x830] sm:$0xff]  ;;  %v368_v2 = vld [vmem:[%s5152_s1 + $0x9c0] sm:$0xff]  ;;  %v369_v3 = vld [vmem:[%s5152_s1 + $0x9c8] sm:$0xff] }
  0x6b   :  { %2887 = vmatpush3.bf16.msra.mxu1 %v2886_v9  ;;  %v294_v9 = vld [vmem:[%s5152_s1 + $0x770] sm:$0xff]  ;;  %v320_v7 = vld [vmem:[%s5152_s1 + $0x840] sm:$0xff]  ;;  %v321_v8 = vld [vmem:[%s5152_s1 + $0x848] sm:$0xff] }
  0x6c   :  { %2889 = vmatprep.subr.bf16.mxu1 %v2888_v14  ;;  %v360_v14 = vld [vmem:[%s5152_s1 + $0x980] sm:$0xff]  ;;  %v2910_v17 = vpack.c.bf16 %v295_v11, %v294_v9  ;;  %v353_v11 = vld [vmem:[%s5152_s1 + $0x948] sm:$0xff] }
  0x6d   :  { %2859 = vmatpush3.bf16.msra.mxu0 %v2858_v20  ;;  %v313_v20 = vld [vmem:[%s5152_s1 + $0x808] sm:$0xff]  ;;  %v352_v9 = vld [vmem:[%s5152_s1 + $0x940] sm:$0xff] }
  0x6e   :  { %2861 = vmatprep.subr.bf16.mxu0 %v2860_v22  ;;  %v2944_v22 = vpack.c.bf16 %v361_v15, %v360_v14  ;;  %v2914_v29 = vpack.c.bf16 %v313_v20, %v312_v19  ;;  %v370_v14 = vld [vmem:[%s5152_s1 + $0x9d0] sm:$0xff]  ;;  %v371_v15 = vld [vmem:[%s5152_s1 + $0x9d8] sm:$0xff] }
  0x6f   :  { %2891 = vmatpush3.bf16.msra.mxu1 %v2890_v21  ;;  %v344_v21 = vld [vmem:[%s5152_s1 + $0x900] sm:$0xff]  ;;  %v322_v19 = vld [vmem:[%s5152_s1 + $0x850] sm:$0xff]  ;;  %v323_v20 = vld [vmem:[%s5152_s1 + $0x858] sm:$0xff] }
  0x70   :  { %2893 = vmatprep.subr.bf16.mxu1 %v2892_v26  ;;  %v362_v26 = vld [vmem:[%s5152_s1 + $0x990] sm:$0xff]  ;;  %v2946_v31 = vpack.c.bf16 %v345_v23, %v344_v21  ;;  %v355_v23 = vld [vmem:[%s5152_s1 + $0x958] sm:$0xff] }
  0x71   :  { %2863 = vmatpush3.bf16.msra.mxu0 %v2862_v32  ;;  %v2916_v32 = vpack.c.bf16 %v331_v25, %v330_v24  ;;  %v2948_v36 = vpack.c.bf16 %v363_v27, %v362_v26  ;;  %v354_v21 = vld [vmem:[%s5152_s1 + $0x950] sm:$0xff]  ;;  %v340_v24 = vld [vmem:[%s5152_s1 + $0x8e0] sm:$0xff]  ;;  %v341_v25 = vld [vmem:[%s5152_s1 + $0x8e8] sm:$0xff] }
  0x72   :  { %2865 = vmatprep.subr.bf16.mxu0 %v2864_v34  ;;  %v315_v34 = vld [vmem:[%s5152_s1 + $0x818] sm:$0xff]  ;;  %v372_v26 = vld [vmem:[%s5152_s1 + $0x9e0] sm:$0xff]  ;;  %v373_v27 = vld [vmem:[%s5152_s1 + $0x9e8] sm:$0xff] }
  0x73   :  { %2895 = vmatpush3.bf16.msra.mxu1 %v2894_v33  ;;  %v314_v33 = vld [vmem:[%s5152_s1 + $0x810] sm:$0xff] }
  0x74   :  { %2897 = vmatprep.subr.bf16.mxu1 %v2896_v38  ;;  %v332_v38 = vld [vmem:[%s5152_s1 + $0x8a0] sm:$0xff]  ;;  %v2918_v43 = vpack.c.bf16 %v315_v34, %v314_v33  ;;  %v2968_v34 = vpack.c.bf16 %v373_v27, %v372_v26  ;;  %v430_v26 = vld [vmem:[%s5152_s1 + $0xbb0] sm:$0xff]  ;;  %v431_v27 = vld [vmem:[%s5152_s1 + $0xbb8] sm:$0xff] }
  0x75   :  { %2867 = vmatpush3.bf16.msra.mxu0 %v2866_v44  ;;  %v39_v44 = vld [vmem:[%s5153_s0 + $0x98] sm:$0xff]  ;;  %v356_v33 = vld [vmem:[%s5152_s1 + $0x960] sm:$0xff] }
  0x76   :  { %2869 = vmatprep.subr.bf16.mxu0 %v2868_v46  ;;  %v2920_v46 = vpack.c.bf16 %v333_v39, %v332_v38  ;;  %v374_v38 = vld [vmem:[%s5152_s1 + $0x9f0] sm:$0xff]  ;;  %v375_v39 = vld [vmem:[%s5152_s1 + $0x9f8] sm:$0xff] }
  0x77   :  { %2899 = vmatpush3.bf16.msra.mxu1 %v2898_v45  ;;  %v2950_v45 = vpack.c.bf16 %v347_v37, %v346_v35  ;;  %v357_v35 = vld [vmem:[%s5152_s1 + $0x968] sm:$0xff]  ;;  %v343_v37 = vld [vmem:[%s5152_s1 + $0x8f8] sm:$0xff] }
  0x78   :  { %2901 = vmatprep.subr.bf16.mxu1 %v2900_v50  ;;  %v2952_v50 = vpack.c.bf16 %v365_v41, %v364_v40  ;;  %v2970_v41 = vpack.c.bf16 %v357_v35, %v356_v33  ;;  %v414_v33 = vld [vmem:[%s5152_s1 + $0xb30] sm:$0xff]  ;;  %v415_v35 = vld [vmem:[%s5152_s1 + $0xb38] sm:$0xff] }
  0x79   :  { %2871 = vmatpush3.bf16.msra.mxu0 %v2870_v56  ;;  %v2922_v56 = vpack.c.bf16 %v317_v48, %v316_v47  ;;  %v359_v47 = vld [vmem:[%s5152_s1 + $0x978] sm:$0xff]  ;;  %v392_v48 = vld [vmem:[%s5152_s1 + $0xa80] sm:$0xff] }
  0x7a   :  { %2873 = vmatprep.subr.bf16.mxu0 %v2872_v58  ;;  %v2924_v58 = vpack.c.bf16 %v335_v53, %v334_v52 }
  0x7b   :  { %2903 = vmatpush3.bf16.msra.mxu1 %v2902_v57  ;;  %v2954_v57 = vpack.c.bf16 %v349_v51, %v348_v49  ;;  %v393_v49 = vld [vmem:[%s5152_s1 + $0xa88] sm:$0xff] }
  0x7c   :  { %2905 = vmatprep.subr.bf16.mxu1 %v2904_v62  ;;  %v2956_v62 = vpack.c.bf16 %v367_v55, %v366_v54  ;;  %v425_v51 = vld [vmem:[%s5152_s1 + $0xb88] sm:$0xff]  ;;  %v2976_v54 = vpack.c.bf16 %v393_v49, %v392_v48  ;;  %v376_v55 = vld [vmem:[%s5152_s1 + $0xa00] sm:$0xff]  ;;  %v402_v48 = vld [vmem:[%s5152_s1 + $0xad0] sm:$0xff] }
  0x7d   :  { %2875 = vmatpush3.bf16.msra.mxu0 %v2874_v4  ;;  %v2926_v4 = vpack.c.bf16 %v319_v60, %v318_v59  ;;  %v409_v59 = vld [vmem:[%s5152_s1 + $0xb08] sm:$0xff]  ;;  %v394_v60 = vld [vmem:[%s5152_s1 + $0xa90] sm:$0xff]  ;;  %v403_v49 = vld [vmem:[%s5152_s1 + $0xad8] sm:$0xff] }
  0x7e   :  { %2877 = vmatprep.subr.bf16.mxu0 %v2876_v6  ;;  %v2928_v6 = vpack.c.bf16 %v337_v1, %v336_v0  ;;  %v36_v0 = vld [vmem:[%s5153_s0 + $0x80] sm:$0xff] }
  0x7f   :  { %2907 = vmatpush3.bf16.msra.mxu1 %v2906_v5  ;;  %v2958_v5 = vpack.c.bf16 %v351_v63, %v350_v61  ;;  %v395_v61 = vld [vmem:[%s5152_s1 + $0xa98] sm:$0xff] }
  0x80   :  { %2909 = vmatprep.subr.bf16.mxu1 %v2908_v10  ;;  %v2960_v10 = vpack.c.bf16 %v369_v3, %v368_v2  ;;  %v427_v63 = vld [vmem:[%s5152_s1 + $0xb98] sm:$0xff]  ;;  %v38_v2 = vld [vmem:[%s5153_s0 + $0x90] sm:$0xff] }
  0x81   :  { %2879 = vmatpush3.bf16.msra.mxu0 %v2878_v16  ;;  %v2930_v16 = vpack.c.bf16 %v321_v8, %v320_v7  ;;  %v410_v7 = vld [vmem:[%s5152_s1 + $0xb10] sm:$0xff] }
  0x82   :  { %2913 = vmatprep.subr.bf16.mxu0 %v2912_v18  ;;  %v2932_v18 = vpack.c.bf16 %v339_v13, %v338_v12  ;;  %v428_v12 = vld [vmem:[%s5152_s1 + $0xba0] sm:$0xff]  ;;  %v429_v13 = vld [vmem:[%s5152_s1 + $0xba8] sm:$0xff] }
  0x83   :  { %2911 = vmatpush3.bf16.msra.mxu1 %v2910_v17  ;;  %v2962_v17 = vpack.c.bf16 %v353_v11, %v352_v9  ;;  %v411_v9 = vld [vmem:[%s5152_s1 + $0xb18] sm:$0xff]  ;;  %v397_v11 = vld [vmem:[%s5152_s1 + $0xaa8] sm:$0xff] }
  0x84   :  { %2945 = vmatprep.subr.bf16.mxu1 %v2944_v22  ;;  %1124 = vmatmul.mubr.f32.vlgmr.msra.gmra.mrb[6].mxu0 %v32_v28  ;;  %v2964_v22 = vpack.c.bf16 %v371_v15, %v370_v14  ;;  %v2934_v28 = vpack.c.bf16 %v323_v20, %v322_v19  ;;  %v41_v14 = vld [vmem:[%s5153_s0 + $0xa8] sm:$0xff]  ;;  %v380_v19 = vld [vmem:[%s5152_s1 + $0xa20] sm:$0xff] }
  0x85   :  { %2915 = vmatpush3.bf16.msra.mxu0 %v2914_v29  ;;  %1263 = vmatprep.mubr.f32.mxu0 %v37_v42  ;;  %v2966_v29 = vpack.c.bf16 %v355_v23, %v354_v21  ;;  %v381_v20 = vld [vmem:[%s5152_s1 + $0xa28] sm:$0xff]  ;;  %v412_v21 = vld [vmem:[%s5152_s1 + $0xb20] sm:$0xff] }
  0x86   :  { %1194 = vmatmul.mubr.f32.vlgmr.msra.gmra.mrb[6].mxu1 %v34_v30  ;;  %2917 = vmatprep.subr.bf16.mxu0 %v2916_v32  ;;  %v2936_v30 = vpack.c.bf16 %v341_v25, %v340_v24  ;;  %v325_v32 = vld [vmem:[%s5152_s1 + $0x868] sm:$0xff]  ;;  %v398_v24 = vld [vmem:[%s5152_s1 + $0xab0] sm:$0xff]  ;;  %v399_v25 = vld [vmem:[%s5152_s1 + $0xab8] sm:$0xff] }
  0x87   :  { %2947 = vmatpush3.bf16.msra.mxu1 %v2946_v31  ;;  %1333 = vmatprep.mubr.f32.mxu1 %v39_v44  ;;  %v324_v31 = vld [vmem:[%s5152_s1 + $0x860] sm:$0xff]  ;;  %v327_v44 = vld [vmem:[%s5152_s1 + $0x878] sm:$0xff]  ;;  %v413_v23 = vld [vmem:[%s5152_s1 + $0xb28] sm:$0xff] }
  0x88   :  { %2949 = vmatprep.subr.bf16.mxu1 %v2948_v36  ;;  %v342_v36 = vld [vmem:[%s5152_s1 + $0x8f0] sm:$0xff]  ;;  %v2938_v40 = vpack.c.bf16 %v325_v32, %v324_v31  ;;  %v383_v32 = vld [vmem:[%s5152_s1 + $0xa38] sm:$0xff] }
  0x89   :  { %2919 = vmatpush3.bf16.msra.mxu0 %v2918_v43  ;;  %v2940_v42 = vpack.c.bf16 %v343_v37, %v342_v36  ;;  %v326_v43 = vld [vmem:[%s5152_s1 + $0x870] sm:$0xff]  ;;  %v400_v36 = vld [vmem:[%s5152_s1 + $0xac0] sm:$0xff]  ;;  %v401_v37 = vld [vmem:[%s5152_s1 + $0xac8] sm:$0xff] }
  0x8a   :  { %2921 = vmatprep.subr.bf16.mxu0 %v2920_v46  ;;  %v2972_v46 = vpack.c.bf16 %v375_v39, %v374_v38  ;;  %v2942_v52 = vpack.c.bf16 %v327_v44, %v326_v43  ;;  %v382_v31 = vld [vmem:[%s5152_s1 + $0xa30] sm:$0xff]  ;;  %v432_v38 = vld [vmem:[%s5152_s1 + $0xbc0] sm:$0xff]  ;;  %v433_v39 = vld [vmem:[%s5152_s1 + $0xbc8] sm:$0xff] }
  0x8b   :  { %2951 = vmatpush3.bf16.msra.mxu1 %v2950_v45  ;;  %v358_v45 = vld [vmem:[%s5152_s1 + $0x970] sm:$0xff]  ;;  %v384_v43 = vld [vmem:[%s5152_s1 + $0xa40] sm:$0xff]  ;;  %v385_v44 = vld [vmem:[%s5152_s1 + $0xa48] sm:$0xff] }
  0x8c   :  { %2953 = vmatprep.subr.bf16.mxu1 %v2952_v50  ;;  %v424_v50 = vld [vmem:[%s5152_s1 + $0xb80] sm:$0xff]  ;;  %v2974_v53 = vpack.c.bf16 %v359_v47, %v358_v45  ;;  %v417_v47 = vld [vmem:[%s5152_s1 + $0xb48] sm:$0xff] }
  0x8d   :  { %2923 = vmatpush3.bf16.msra.mxu0 %v2922_v56  ;;  %v377_v56 = vld [vmem:[%s5152_s1 + $0xa08] sm:$0xff]  ;;  %v416_v45 = vld [vmem:[%s5152_s1 + $0xb40] sm:$0xff] }
  0x8e   :  { %2925 = vmatprep.subr.bf16.mxu0 %v2924_v58  ;;  %v3008_v58 = vpack.c.bf16 %v425_v51, %v424_v50  ;;  %v2978_v1 = vpack.c.bf16 %v377_v56, %v376_v55  ;;  %v434_v50 = vld [vmem:[%s5152_s1 + $0xbd0] sm:$0xff]  ;;  %v435_v51 = vld [vmem:[%s5152_s1 + $0xbd8] sm:$0xff] }
  0x8f   :  { %2955 = vmatpush3.bf16.msra.mxu1 %v2954_v57  ;;  %v408_v57 = vld [vmem:[%s5152_s1 + $0xb00] sm:$0xff]  ;;  %v386_v55 = vld [vmem:[%s5152_s1 + $0xa50] sm:$0xff]  ;;  %v387_v56 = vld [vmem:[%s5152_s1 + $0xa58] sm:$0xff] }
  0x90   :  { %2957 = vmatprep.subr.bf16.mxu1 %v2956_v62  ;;  %v426_v62 = vld [vmem:[%s5152_s1 + $0xb90] sm:$0xff]  ;;  %v3010_v3 = vpack.c.bf16 %v409_v59, %v408_v57  ;;  %v419_v59 = vld [vmem:[%s5152_s1 + $0xb58] sm:$0xff] }
  0x91   :  { %2927 = vmatpush3.bf16.msra.mxu0 %v2926_v4  ;;  %v2980_v4 = vpack.c.bf16 %v395_v61, %v394_v60  ;;  %v3012_v8 = vpack.c.bf16 %v427_v63, %v426_v62  ;;  %v418_v57 = vld [vmem:[%s5152_s1 + $0xb50] sm:$0xff]  ;;  %v404_v60 = vld [vmem:[%s5152_s1 + $0xae0] sm:$0xff]  ;;  %v405_v61 = vld [vmem:[%s5152_s1 + $0xae8] sm:$0xff] }
  0x92   :  { %2929 = vmatprep.subr.bf16.mxu0 %v2928_v6  ;;  %v379_v6 = vld [vmem:[%s5152_s1 + $0xa18] sm:$0xff]  ;;  %v436_v62 = vld [vmem:[%s5152_s1 + $0xbe0] sm:$0xff]  ;;  %v437_v63 = vld [vmem:[%s5152_s1 + $0xbe8] sm:$0xff] }
  0x93   :  { %2959 = vmatpush3.bf16.msra.mxu1 %v2958_v5  ;;  %v378_v5 = vld [vmem:[%s5152_s1 + $0xa10] sm:$0xff] }
  0x94   :  { %2961 = vmatprep.subr.bf16.mxu1 %v2960_v10  ;;  %v396_v10 = vld [vmem:[%s5152_s1 + $0xaa0] sm:$0xff]  ;;  %v2982_v15 = vpack.c.bf16 %v379_v6, %v378_v5  ;;  %v3032_v6 = vpack.c.bf16 %v437_v63, %v436_v62  ;;  %v494_v62 = vld [vmem:[%s5152_s1 + $0xdb0] sm:$0xff]  ;;  %v495_v63 = vld [vmem:[%s5152_s1 + $0xdb8] sm:$0xff] }
  0x95   :  { %2931 = vmatpush3.bf16.msra.mxu0 %v2930_v16  ;;  %v43_v16 = vld [vmem:[%s5153_s0 + $0xb8] sm:$0xff]  ;;  %v420_v5 = vld [vmem:[%s5152_s1 + $0xb60] sm:$0xff] }
  0x96   :  { %2933 = vmatprep.subr.bf16.mxu0 %v2932_v18  ;;  %v2984_v18 = vpack.c.bf16 %v397_v11, %v396_v10  ;;  %v438_v10 = vld [vmem:[%s5152_s1 + $0xbf0] sm:$0xff]  ;;  %v439_v11 = vld [vmem:[%s5152_s1 + $0xbf8] sm:$0xff] }
  0x97   :  { %2963 = vmatpush3.bf16.msra.mxu1 %v2962_v17  ;;  %v3014_v17 = vpack.c.bf16 %v411_v9, %v410_v7  ;;  %v421_v7 = vld [vmem:[%s5152_s1 + $0xb68] sm:$0xff]  ;;  %v407_v9 = vld [vmem:[%s5152_s1 + $0xaf8] sm:$0xff] }
  0x98   :  { %2965 = vmatprep.subr.bf16.mxu1 %v2964_v22  ;;  %v3016_v22 = vpack.c.bf16 %v429_v13, %v428_v12  ;;  %v3034_v13 = vpack.c.bf16 %v421_v7, %v420_v5  ;;  %v478_v5 = vld [vmem:[%s5152_s1 + $0xd30] sm:$0xff]  ;;  %v479_v7 = vld [vmem:[%s5152_s1 + $0xd38] sm:$0xff] }
  0x99   :  { %2935 = vmatpush3.bf16.msra.mxu0 %v2934_v28  ;;  %v2986_v28 = vpack.c.bf16 %v381_v20, %v380_v19  ;;  %v423_v19 = vld [vmem:[%s5152_s1 + $0xb78] sm:$0xff]  ;;  %v456_v20 = vld [vmem:[%s5152_s1 + $0xc80] sm:$0xff] }
  0x9a   :  { %2937 = vmatprep.subr.bf16.mxu0 %v2936_v30  ;;  %v2988_v30 = vpack.c.bf16 %v399_v25, %v398_v24 }
  0x9b   :  { %2967 = vmatpush3.bf16.msra.mxu1 %v2966_v29  ;;  %v3018_v29 = vpack.c.bf16 %v413_v23, %v412_v21  ;;  %v457_v21 = vld [vmem:[%s5152_s1 + $0xc88] sm:$0xff] }
  0x9c   :  { %2969 = vmatprep.subr.bf16.mxu1 %v2968_v34  ;;  %v3020_v34 = vpack.c.bf16 %v431_v27, %v430_v26  ;;  %v489_v23 = vld [vmem:[%s5152_s1 + $0xd88] sm:$0xff]  ;;  %v3040_v26 = vpack.c.bf16 %v457_v21, %v456_v20  ;;  %v440_v27 = vld [vmem:[%s5152_s1 + $0xc00] sm:$0xff]  ;;  %v466_v20 = vld [vmem:[%s5152_s1 + $0xcd0] sm:$0xff] }
  0x9d   :  { %2939 = vmatpush3.bf16.msra.mxu0 %v2938_v40  ;;  %v2990_v40 = vpack.c.bf16 %v383_v32, %v382_v31  ;;  %v473_v31 = vld [vmem:[%s5152_s1 + $0xd08] sm:$0xff]  ;;  %v458_v32 = vld [vmem:[%s5152_s1 + $0xc90] sm:$0xff]  ;;  %v467_v21 = vld [vmem:[%s5152_s1 + $0xcd8] sm:$0xff] }
  0x9e   :  { %2941 = vmatprep.subr.bf16.mxu0 %v2940_v42  ;;  %v2992_v42 = vpack.c.bf16 %v401_v37, %v400_v36  ;;  %v40_v36 = vld [vmem:[%s5153_s0 + $0xa0] sm:$0xff] }
  0x9f   :  { %2971 = vmatpush3.bf16.msra.mxu1 %v2970_v41  ;;  %v3022_v41 = vpack.c.bf16 %v415_v35, %v414_v33  ;;  %v459_v33 = vld [vmem:[%s5152_s1 + $0xc98] sm:$0xff] }
  0xa0   :  { %2973 = vmatprep.subr.bf16.mxu1 %v2972_v46  ;;  %v3024_v46 = vpack.c.bf16 %v433_v39, %v432_v38  ;;  %v491_v35 = vld [vmem:[%s5152_s1 + $0xd98] sm:$0xff]  ;;  %v42_v38 = vld [vmem:[%s5153_s0 + $0xb0] sm:$0xff] }
  0xa1   :  { %2943 = vmatpush3.bf16.msra.mxu0 %v2942_v52  ;;  %v2994_v52 = vpack.c.bf16 %v385_v44, %v384_v43  ;;  %v474_v43 = vld [vmem:[%s5152_s1 + $0xd10] sm:$0xff] }
  0xa2   :  { %2977 = vmatprep.subr.bf16.mxu0 %v2976_v54  ;;  %v2996_v54 = vpack.c.bf16 %v403_v49, %v402_v48  ;;  %v492_v48 = vld [vmem:[%s5152_s1 + $0xda0] sm:$0xff]  ;;  %v493_v49 = vld [vmem:[%s5152_s1 + $0xda8] sm:$0xff] }
  0xa3   :  { %2975 = vmatpush3.bf16.msra.mxu1 %v2974_v53  ;;  %v3026_v53 = vpack.c.bf16 %v417_v47, %v416_v45  ;;  %v475_v45 = vld [vmem:[%s5152_s1 + $0xd18] sm:$0xff]  ;;  %v461_v47 = vld [vmem:[%s5152_s1 + $0xca8] sm:$0xff] }
  0xa4   :  { %3009 = vmatprep.subr.bf16.mxu1 %v3008_v58  ;;  %1264 = vmatmul.mubr.f32.vlgmr.msra.gmra.mrb[8].mxu0 %v36_v0  ;;  %v3028_v58 = vpack.c.bf16 %v435_v51, %v434_v50  ;;  %v2998_v0 = vpack.c.bf16 %v387_v56, %v386_v55  ;;  %v45_v50 = vld [vmem:[%s5153_s0 + $0xc8] sm:$0xff]  ;;  %v444_v55 = vld [vmem:[%s5152_s1 + $0xc20] sm:$0xff] }
  0xa5   :  { %2979 = vmatpush3.bf16.msra.mxu0 %v2978_v1  ;;  %1403 = vmatprep.mubr.f32.mxu0 %v41_v14  ;;  %v3030_v1 = vpack.c.bf16 %v419_v59, %v418_v57  ;;  %v445_v56 = vld [vmem:[%s5152_s1 + $0xc28] sm:$0xff]  ;;  %v476_v57 = vld [vmem:[%s5152_s1 + $0xd20] sm:$0xff] }
  0xa6   :  { %1334 = vmatmul.mubr.f32.vlgmr.msra.gmra.mrb[8].mxu1 %v38_v2  ;;  %2981 = vmatprep.subr.bf16.mxu0 %v2980_v4  ;;  %v3000_v2 = vpack.c.bf16 %v405_v61, %v404_v60  ;;  %v389_v4 = vld [vmem:[%s5152_s1 + $0xa68] sm:$0xff]  ;;  %v462_v60 = vld [vmem:[%s5152_s1 + $0xcb0] sm:$0xff]  ;;  %v463_v61 = vld [vmem:[%s5152_s1 + $0xcb8] sm:$0xff] }
  0xa7   :  { %3011 = vmatpush3.bf16.msra.mxu1 %v3010_v3  ;;  %1473 = vmatprep.mubr.f32.mxu1 %v43_v16  ;;  %v388_v3 = vld [vmem:[%s5152_s1 + $0xa60] sm:$0xff]  ;;  %v391_v16 = vld [vmem:[%s5152_s1 + $0xa78] sm:$0xff]  ;;  %v477_v59 = vld [vmem:[%s5152_s1 + $0xd28] sm:$0xff] }
  0xa8   :  { %3013 = vmatprep.subr.bf16.mxu1 %v3012_v8  ;;  %v406_v8 = vld [vmem:[%s5152_s1 + $0xaf0] sm:$0xff]  ;;  %v3002_v12 = vpack.c.bf16 %v389_v4, %v388_v3  ;;  %v447_v4 = vld [vmem:[%s5152_s1 + $0xc38] sm:$0xff] }
  0xa9   :  { %2983 = vmatpush3.bf16.msra.mxu0 %v2982_v15  ;;  %v3004_v14 = vpack.c.bf16 %v407_v9, %v406_v8  ;;  %v390_v15 = vld [vmem:[%s5152_s1 + $0xa70] sm:$0xff]  ;;  %v464_v8 = vld [vmem:[%s5152_s1 + $0xcc0] sm:$0xff]  ;;  %v465_v9 = vld [vmem:[%s5152_s1 + $0xcc8] sm:$0xff] }
  0xaa   :  { %2985 = vmatprep.subr.bf16.mxu0 %v2984_v18  ;;  %v3036_v18 = vpack.c.bf16 %v439_v11, %v438_v10  ;;  %v3006_v24 = vpack.c.bf16 %v391_v16, %v390_v15  ;;  %v446_v3 = vld [vmem:[%s5152_s1 + $0xc30] sm:$0xff]  ;;  %v496_v10 = vld [vmem:[%s5152_s1 + $0xdc0] sm:$0xff]  ;;  %v497_v11 = vld [vmem:[%s5152_s1 + $0xdc8] sm:$0xff] }
  0xab   :  { %3015 = vmatpush3.bf16.msra.mxu1 %v3014_v17  ;;  %v422_v17 = vld [vmem:[%s5152_s1 + $0xb70] sm:$0xff]  ;;  %v448_v15 = vld [vmem:[%s5152_s1 + $0xc40] sm:$0xff]  ;;  %v449_v16 = vld [vmem:[%s5152_s1 + $0xc48] sm:$0xff] }
  0xac   :  { %3017 = vmatprep.subr.bf16.mxu1 %v3016_v22  ;;  %v488_v22 = vld [vmem:[%s5152_s1 + $0xd80] sm:$0xff]  ;;  %v3038_v25 = vpack.c.bf16 %v423_v19, %v422_v17  ;;  %v481_v19 = vld [vmem:[%s5152_s1 + $0xd48] sm:$0xff] }
  0xad   :  { %2987 = vmatpush3.bf16.msra.mxu0 %v2986_v28  ;;  %v441_v28 = vld [vmem:[%s5152_s1 + $0xc08] sm:$0xff]  ;;  %v480_v17 = vld [vmem:[%s5152_s1 + $0xd40] sm:$0xff] }
  0xae   :  { %2989 = vmatprep.subr.bf16.mxu0 %v2988_v30  ;;  %v3072_v30 = vpack.c.bf16 %v489_v23, %v488_v22  ;;  %v3042_v37 = vpack.c.bf16 %v441_v28, %v440_v27  ;;  %v498_v22 = vld [vmem:[%s5152_s1 + $0xdd0] sm:$0xff]  ;;  %v499_v23 = vld [vmem:[%s5152_s1 + $0xdd8] sm:$0xff] }
  0xaf   :  { %3019 = vmatpush3.bf16.msra.mxu1 %v3018_v29  ;;  %v472_v29 = vld [vmem:[%s5152_s1 + $0xd00] sm:$0xff]  ;;  %v450_v27 = vld [vmem:[%s5152_s1 + $0xc50] sm:$0xff]  ;;  %v451_v28 = vld [vmem:[%s5152_s1 + $0xc58] sm:$0xff] }
  0xb0   :  { %3021 = vmatprep.subr.bf16.mxu1 %v3020_v34  ;;  %v490_v34 = vld [vmem:[%s5152_s1 + $0xd90] sm:$0xff]  ;;  %v3074_v39 = vpack.c.bf16 %v473_v31, %v472_v29  ;;  %v483_v31 = vld [vmem:[%s5152_s1 + $0xd58] sm:$0xff] }
  0xb1   :  { %2991 = vmatpush3.bf16.msra.mxu0 %v2990_v40  ;;  %v3044_v40 = vpack.c.bf16 %v459_v33, %v458_v32  ;;  %v3076_v44 = vpack.c.bf16 %v491_v35, %v490_v34  ;;  %v482_v29 = vld [vmem:[%s5152_s1 + $0xd50] sm:$0xff]  ;;  %v468_v32 = vld [vmem:[%s5152_s1 + $0xce0] sm:$0xff]  ;;  %v469_v33 = vld [vmem:[%s5152_s1 + $0xce8] sm:$0xff] }
  0xb2   :  { %2993 = vmatprep.subr.bf16.mxu0 %v2992_v42  ;;  %v443_v42 = vld [vmem:[%s5152_s1 + $0xc18] sm:$0xff]  ;;  %v500_v34 = vld [vmem:[%s5152_s1 + $0xde0] sm:$0xff]  ;;  %v501_v35 = vld [vmem:[%s5152_s1 + $0xde8] sm:$0xff] }
  0xb3   :  { %3023 = vmatpush3.bf16.msra.mxu1 %v3022_v41  ;;  %v442_v41 = vld [vmem:[%s5152_s1 + $0xc10] sm:$0xff] }
  0xb4   :  { %3025 = vmatprep.subr.bf16.mxu1 %v3024_v46  ;;  %v460_v46 = vld [vmem:[%s5152_s1 + $0xca0] sm:$0xff]  ;;  %v3046_v51 = vpack.c.bf16 %v443_v42, %v442_v41  ;;  %v3096_v42 = vpack.c.bf16 %v501_v35, %v500_v34  ;;  %v558_v34 = vld [vmem:[%s5152_s1 + $0xfb0] sm:$0xff]  ;;  %v559_v35 = vld [vmem:[%s5152_s1 + $0xfb8] sm:$0xff] }
  0xb5   :  { %2995 = vmatpush3.bf16.msra.mxu0 %v2994_v52  ;;  %v47_v52 = vld [vmem:[%s5153_s0 + $0xd8] sm:$0xff]  ;;  %v484_v41 = vld [vmem:[%s5152_s1 + $0xd60] sm:$0xff] }
  0xb6   :  { %2997 = vmatprep.subr.bf16.mxu0 %v2996_v54  ;;  %v3048_v54 = vpack.c.bf16 %v461_v47, %v460_v46  ;;  %v502_v46 = vld [vmem:[%s5152_s1 + $0xdf0] sm:$0xff]  ;;  %v503_v47 = vld [vmem:[%s5152_s1 + $0xdf8] sm:$0xff] }
  0xb7   :  { %3027 = vmatpush3.bf16.msra.mxu1 %v3026_v53  ;;  %v3078_v53 = vpack.c.bf16 %v475_v45, %v474_v43  ;;  %v485_v43 = vld [vmem:[%s5152_s1 + $0xd68] sm:$0xff]  ;;  %v471_v45 = vld [vmem:[%s5152_s1 + $0xcf8] sm:$0xff] }
  0xb8   :  { %3029 = vmatprep.subr.bf16.mxu1 %v3028_v58  ;;  %v3080_v58 = vpack.c.bf16 %v493_v49, %v492_v48  ;;  %v3098_v49 = vpack.c.bf16 %v485_v43, %v484_v41  ;;  %v542_v41 = vld [vmem:[%s5152_s1 + $0xf30] sm:$0xff]  ;;  %v543_v43 = vld [vmem:[%s5152_s1 + $0xf38] sm:$0xff] }
  0xb9   :  { %2999 = vmatpush3.bf16.msra.mxu0 %v2998_v0  ;;  %v3050_v0 = vpack.c.bf16 %v445_v56, %v444_v55  ;;  %v487_v55 = vld [vmem:[%s5152_s1 + $0xd78] sm:$0xff]  ;;  %v520_v56 = vld [vmem:[%s5152_s1 + $0xe80] sm:$0xff] }
  0xba   :  { %3001 = vmatprep.subr.bf16.mxu0 %v3000_v2  ;;  %v3052_v2 = vpack.c.bf16 %v463_v61, %v462_v60 }
  0xbb   :  { %3031 = vmatpush3.bf16.msra.mxu1 %v3030_v1  ;;  %v3082_v1 = vpack.c.bf16 %v477_v59, %v476_v57  ;;  %v521_v57 = vld [vmem:[%s5152_s1 + $0xe88] sm:$0xff] }
  0xbc   :  { %3033 = vmatprep.subr.bf16.mxu1 %v3032_v6  ;;  %v3084_v6 = vpack.c.bf16 %v495_v63, %v494_v62  ;;  %v553_v59 = vld [vmem:[%s5152_s1 + $0xf88] sm:$0xff]  ;;  %v3104_v62 = vpack.c.bf16 %v521_v57, %v520_v56  ;;  %v504_v63 = vld [vmem:[%s5152_s1 + $0xe00] sm:$0xff]  ;;  %v530_v56 = vld [vmem:[%s5152_s1 + $0xed0] sm:$0xff] }
  0xbd   :  { %3003 = vmatpush3.bf16.msra.mxu0 %v3002_v12  ;;  %v3054_v12 = vpack.c.bf16 %v447_v4, %v446_v3  ;;  %v537_v3 = vld [vmem:[%s5152_s1 + $0xf08] sm:$0xff]  ;;  %v522_v4 = vld [vmem:[%s5152_s1 + $0xe90] sm:$0xff]  ;;  %v531_v57 = vld [vmem:[%s5152_s1 + $0xed8] sm:$0xff] }
  0xbe   :  { %3005 = vmatprep.subr.bf16.mxu0 %v3004_v14  ;;  %v3056_v14 = vpack.c.bf16 %v465_v9, %v464_v8  ;;  %v44_v8 = vld [vmem:[%s5153_s0 + $0xc0] sm:$0xff] }
  0xbf   :  { %3035 = vmatpush3.bf16.msra.mxu1 %v3034_v13  ;;  %v3086_v13 = vpack.c.bf16 %v479_v7, %v478_v5  ;;  %v523_v5 = vld [vmem:[%s5152_s1 + $0xe98] sm:$0xff] }
  0xc0   :  { %3037 = vmatprep.subr.bf16.mxu1 %v3036_v18  ;;  %v3088_v18 = vpack.c.bf16 %v497_v11, %v496_v10  ;;  %v555_v7 = vld [vmem:[%s5152_s1 + $0xf98] sm:$0xff]  ;;  %v46_v10 = vld [vmem:[%s5153_s0 + $0xd0] sm:$0xff] }
  0xc1   :  { %3007 = vmatpush3.bf16.msra.mxu0 %v3006_v24  ;;  %v3058_v24 = vpack.c.bf16 %v449_v16, %v448_v15  ;;  %v538_v15 = vld [vmem:[%s5152_s1 + $0xf10] sm:$0xff] }
  0xc2   :  { %3041 = vmatprep.subr.bf16.mxu0 %v3040_v26  ;;  %v3060_v26 = vpack.c.bf16 %v467_v21, %v466_v20  ;;  %v556_v20 = vld [vmem:[%s5152_s1 + $0xfa0] sm:$0xff]  ;;  %v557_v21 = vld [vmem:[%s5152_s1 + $0xfa8] sm:$0xff] }
  0xc3   :  { %3039 = vmatpush3.bf16.msra.mxu1 %v3038_v25  ;;  %v3090_v25 = vpack.c.bf16 %v481_v19, %v480_v17  ;;  %v539_v17 = vld [vmem:[%s5152_s1 + $0xf18] sm:$0xff]  ;;  %v525_v19 = vld [vmem:[%s5152_s1 + $0xea8] sm:$0xff] }
  0xc4   :  { %3073 = vmatprep.subr.bf16.mxu1 %v3072_v30  ;;  %1404 = vmatmul.mubr.f32.vlgmr.msra.gmra.mrb[10].mxu0 %v40_v36  ;;  %v3092_v30 = vpack.c.bf16 %v499_v23, %v498_v22  ;;  %v3062_v36 = vpack.c.bf16 %v451_v28, %v450_v27  ;;  %v49_v22 = vld [vmem:[%s5153_s0 + $0xe8] sm:$0xff]  ;;  %v508_v27 = vld [vmem:[%s5152_s1 + $0xe20] sm:$0xff] }
  0xc5   :  { %3043 = vmatpush3.bf16.msra.mxu0 %v3042_v37  ;;  %1543 = vmatprep.mubr.f32.mxu0 %v45_v50  ;;  %v3094_v37 = vpack.c.bf16 %v483_v31, %v482_v29  ;;  %v509_v28 = vld [vmem:[%s5152_s1 + $0xe28] sm:$0xff]  ;;  %v540_v29 = vld [vmem:[%s5152_s1 + $0xf20] sm:$0xff] }
  0xc6   :  { %1474 = vmatmul.mubr.f32.vlgmr.msra.gmra.mrb[10].mxu1 %v42_v38  ;;  %3045 = vmatprep.subr.bf16.mxu0 %v3044_v40  ;;  %v3064_v38 = vpack.c.bf16 %v469_v33, %v468_v32  ;;  %v453_v40 = vld [vmem:[%s5152_s1 + $0xc68] sm:$0xff]  ;;  %v526_v32 = vld [vmem:[%s5152_s1 + $0xeb0] sm:$0xff]  ;;  %v527_v33 = vld [vmem:[%s5152_s1 + $0xeb8] sm:$0xff] }
  0xc7   :  { %3075 = vmatpush3.bf16.msra.mxu1 %v3074_v39  ;;  %1613 = vmatprep.mubr.f32.mxu1 %v47_v52  ;;  %v452_v39 = vld [vmem:[%s5152_s1 + $0xc60] sm:$0xff]  ;;  %v455_v52 = vld [vmem:[%s5152_s1 + $0xc78] sm:$0xff]  ;;  %v541_v31 = vld [vmem:[%s5152_s1 + $0xf28] sm:$0xff] }
  0xc8   :  { %3077 = vmatprep.subr.bf16.mxu1 %v3076_v44  ;;  %v470_v44 = vld [vmem:[%s5152_s1 + $0xcf0] sm:$0xff]  ;;  %v3066_v48 = vpack.c.bf16 %v453_v40, %v452_v39  ;;  %v511_v40 = vld [vmem:[%s5152_s1 + $0xe38] sm:$0xff] }
  0xc9   :  { %3047 = vmatpush3.bf16.msra.mxu0 %v3046_v51  ;;  %v3068_v50 = vpack.c.bf16 %v471_v45, %v470_v44  ;;  %v454_v51 = vld [vmem:[%s5152_s1 + $0xc70] sm:$0xff]  ;;  %v528_v44 = vld [vmem:[%s5152_s1 + $0xec0] sm:$0xff]  ;;  %v529_v45 = vld [vmem:[%s5152_s1 + $0xec8] sm:$0xff] }
  0xca   :  { %3049 = vmatprep.subr.bf16.mxu0 %v3048_v54  ;;  %v3100_v54 = vpack.c.bf16 %v503_v47, %v502_v46  ;;  %v3070_v60 = vpack.c.bf16 %v455_v52, %v454_v51  ;;  %v510_v39 = vld [vmem:[%s5152_s1 + $0xe30] sm:$0xff]  ;;  %v560_v46 = vld [vmem:[%s5152_s1 + $0xfc0] sm:$0xff]  ;;  %v561_v47 = vld [vmem:[%s5152_s1 + $0xfc8] sm:$0xff] }
  0xcb   :  { %3079 = vmatpush3.bf16.msra.mxu1 %v3078_v53  ;;  %v486_v53 = vld [vmem:[%s5152_s1 + $0xd70] sm:$0xff]  ;;  %v512_v51 = vld [vmem:[%s5152_s1 + $0xe40] sm:$0xff]  ;;  %v513_v52 = vld [vmem:[%s5152_s1 + $0xe48] sm:$0xff] }
  0xcc   :  { %3081 = vmatprep.subr.bf16.mxu1 %v3080_v58  ;;  %v552_v58 = vld [vmem:[%s5152_s1 + $0xf80] sm:$0xff]  ;;  %v3102_v61 = vpack.c.bf16 %v487_v55, %v486_v53  ;;  %v545_v55 = vld [vmem:[%s5152_s1 + $0xf48] sm:$0xff] }
  0xcd   :  { %3051 = vmatpush3.bf16.msra.mxu0 %v3050_v0  ;;  %v505_v0 = vld [vmem:[%s5152_s1 + $0xe08] sm:$0xff]  ;;  %v544_v53 = vld [vmem:[%s5152_s1 + $0xf40] sm:$0xff] }
  0xce   :  { %3053 = vmatprep.subr.bf16.mxu0 %v3052_v2  ;;  %v3136_v2 = vpack.c.bf16 %v553_v59, %v552_v58  ;;  %v3106_v9 = vpack.c.bf16 %v505_v0, %v504_v63  ;;  %v562_v58 = vld [vmem:[%s5152_s1 + $0xfd0] sm:$0xff]  ;;  %v563_v59 = vld [vmem:[%s5152_s1 + $0xfd8] sm:$0xff] }
  0xcf   :  { %3083 = vmatpush3.bf16.msra.mxu1 %v3082_v1  ;;  %v536_v1 = vld [vmem:[%s5152_s1 + $0xf00] sm:$0xff]  ;;  %v514_v63 = vld [vmem:[%s5152_s1 + $0xe50] sm:$0xff]  ;;  %v515_v0 = vld [vmem:[%s5152_s1 + $0xe58] sm:$0xff] }
  0xd0   :  { %3085 = vmatprep.subr.bf16.mxu1 %v3084_v6  ;;  %v554_v6 = vld [vmem:[%s5152_s1 + $0xf90] sm:$0xff]  ;;  %v3138_v11 = vpack.c.bf16 %v537_v3, %v536_v1  ;;  %v547_v3 = vld [vmem:[%s5152_s1 + $0xf58] sm:$0xff] }
  0xd1   :  { %3055 = vmatpush3.bf16.msra.mxu0 %v3054_v12  ;;  %v3108_v12 = vpack.c.bf16 %v523_v5, %v522_v4  ;;  %v3140_v16 = vpack.c.bf16 %v555_v7, %v554_v6  ;;  %v546_v1 = vld [vmem:[%s5152_s1 + $0xf50] sm:$0xff]  ;;  %v532_v4 = vld [vmem:[%s5152_s1 + $0xee0] sm:$0xff]  ;;  %v533_v5 = vld [vmem:[%s5152_s1 + $0xee8] sm:$0xff] }
  0xd2   :  { %3057 = vmatprep.subr.bf16.mxu0 %v3056_v14  ;;  %v507_v14 = vld [vmem:[%s5152_s1 + $0xe18] sm:$0xff]  ;;  %v564_v6 = vld [vmem:[%s5152_s1 + $0xfe0] sm:$0xff]  ;;  %v565_v7 = vld [vmem:[%s5152_s1 + $0xfe8] sm:$0xff] }
  0xd3   :  { %3087 = vmatpush3.bf16.msra.mxu1 %v3086_v13  ;;  %v506_v13 = vld [vmem:[%s5152_s1 + $0xe10] sm:$0xff] }
  0xd4   :  { %3089 = vmatprep.subr.bf16.mxu1 %v3088_v18  ;;  %v524_v18 = vld [vmem:[%s5152_s1 + $0xea0] sm:$0xff]  ;;  %v3110_v23 = vpack.c.bf16 %v507_v14, %v506_v13 }
  0xd5   :  { %3059 = vmatpush3.bf16.msra.mxu0 %v3058_v24  ;;  %v51_v24 = vld [vmem:[%s5153_s0 + $0xf8] sm:$0xff]  ;;  %v548_v13 = vld [vmem:[%s5152_s1 + $0xf60] sm:$0xff] }
  0xd6   :  { %3061 = vmatprep.subr.bf16.mxu0 %v3060_v26  ;;  %v3112_v26 = vpack.c.bf16 %v525_v19, %v524_v18  ;;  %v535_v18 = vld [vmem:[%s5152_s1 + $0xef8] sm:$0xff]  ;;  %v1995_v19 = vld [vmem:[%s5154_s2] ss:$0 sm:$0xff] }
  0xd7   :  { %3091 = vmatpush3.bf16.msra.mxu1 %v3090_v25  ;;  %v3142_v25 = vpack.c.bf16 %v539_v17, %v538_v15  ;;  %v3160_v15 = vpack.c.bf16 %v565_v7, %v564_v6  ;;  %v534_v17 = vld [vmem:[%s5152_s1 + $0xef0] sm:$0xff] }
  0xd8   :  { %3093 = vmatprep.subr.bf16.mxu1 %v3092_v30  ;;  %v3144_v30 = vpack.c.bf16 %v557_v21, %v556_v20 }
  0xd9   :  { %3063 = vmatpush3.bf16.msra.mxu0 %v3062_v36  ;;  %v3114_v36 = vpack.c.bf16 %v509_v28, %v508_v27 }
  0xda   :  { %3065 = vmatprep.subr.bf16.mxu0 %v3064_v38  ;;  %v3116_v38 = vpack.c.bf16 %v527_v33, %v526_v32  ;;  %v550_v32 = vld [vmem:[%s5152_s1 + $0xf70] sm:$0xff] }
  0xdb   :  { %3095 = vmatpush3.bf16.msra.mxu1 %v3094_v37  ;;  %v3146_v37 = vpack.c.bf16 %v541_v31, %v540_v29  ;;  %v3132_v29 = vpack.c.bf16 %v535_v18, %v534_v17  ;;  %v519_v31 = vld [vmem:[%s5152_s1 + $0xe78] sm:$0xff] }
  0xdc   :  { %3097 = vmatprep.subr.bf16.mxu1 %v3096_v42  ;;  %v3148_v42 = vpack.c.bf16 %v559_v35, %v558_v34  ;;  %v551_v35 = vld [vmem:[%s5152_s1 + $0xf78] sm:$0xff] }
  0xdd   :  { %3067 = vmatpush3.bf16.msra.mxu0 %v3066_v48  ;;  %v3118_v48 = vpack.c.bf16 %v511_v40, %v510_v39  ;;  %v617_v39 = vld [vmem:[%s5152_s1 + $0x1188] sm:$0xff] }
  0xde   :  { %3069 = vmatprep.subr.bf16.mxu0 %v3068_v50  ;;  %v3120_v50 = vpack.c.bf16 %v529_v45, %v528_v44  ;;  %v568_v44 = vld [vmem:[%s5152_s1 + $0x1000] sm:$0xff]  ;;  %v569_v45 = vld [vmem:[%s5152_s1 + $0x1008] sm:$0xff] }
  0xdf   :  { %3099 = vmatpush3.bf16.msra.mxu1 %v3098_v49  ;;  %v3150_v49 = vpack.c.bf16 %v543_v43, %v542_v41 }
  0xe0   :  { %3101 = vmatprep.subr.bf16.mxu1 %v3100_v54  ;;  %v3152_v54 = vpack.c.bf16 %v561_v47, %v560_v46  ;;  %v600_v46 = vld [vmem:[%s5152_s1 + $0x1100] sm:$0xff] }
  0xe1   :  { %3071 = vmatpush3.bf16.msra.mxu0 %v3070_v60  ;;  %v3122_v60 = vpack.c.bf16 %v513_v52, %v512_v51  ;;  %v618_v51 = vld [vmem:[%s5152_s1 + $0x1190] sm:$0xff]  ;;  %v619_v52 = vld [vmem:[%s5152_s1 + $0x1198] sm:$0xff] }
  0xe2   :  { %3105 = vmatprep.subr.bf16.mxu0 %v3104_v62  ;;  %v3124_v62 = vpack.c.bf16 %v531_v57, %v530_v56 }
  0xe3   :  { %3103 = vmatpush3.bf16.msra.mxu1 %v3102_v61  ;;  %v3154_v61 = vpack.c.bf16 %v545_v55, %v544_v53  ;;  %v48_v53 = vld [vmem:[%s5153_s0 + $0xe0] sm:$0xff]  ;;  %v50_v55 = vld [vmem:[%s5153_s0 + $0xf0] sm:$0xff] }
  0xe4   :  { %3137 = vmatprep.subr.bf16.mxu1 %v3136_v2  ;;  %1544 = vmatmul.mubr.f32.vlgmr.msra.gmra.mrb[12].mxu0 %v44_v8  ;;  %v3156_v2 = vpack.c.bf16 %v563_v59, %v562_v58  ;;  %v3126_v8 = vpack.c.bf16 %v515_v0, %v514_v63  ;;  %v570_v58 = vld [vmem:[%s5152_s1 + $0x1010] sm:$0xff]  ;;  %v571_v59 = vld [vmem:[%s5152_s1 + $0x1018] sm:$0xff]  ;;  %v588_v63 = vld [vmem:[%s5152_s1 + $0x10a0] sm:$0xff] }
  0xe5   :  { %3107 = vmatpush3.bf16.msra.mxu0 %v3106_v9  ;;  %1683 = vmatprep.mubr.f32.mxu0 %v49_v22  ;;  %v3158_v9 = vpack.c.bf16 %v547_v3, %v546_v1  ;;  %v566_v22 = vld [vmem:[%s5152_s1 + $0xff0] sm:$0xff]  ;;  %v589_v0 = vld [vmem:[%s5152_s1 + $0x10a8] sm:$0xff]  ;;  %v620_v1 = vld [vmem:[%s5152_s1 + $0x11a0] sm:$0xff] }
  0xe6   :  { %1614 = vmatmul.mubr.f32.vlgmr.msra.gmra.mrb[12].mxu1 %v46_v10  ;;  %3109 = vmatprep.subr.bf16.mxu0 %v3108_v12  ;;  %v3128_v10 = vpack.c.bf16 %v533_v5, %v532_v4  ;;  %v517_v12 = vld [vmem:[%s5152_s1 + $0xe68] sm:$0xff]  ;;  %v3174_v4 = vpack.c.bf16 %v571_v59, %v570_v58  ;;  %v55_v5 = vld [vmem:[%s5153_s0 + $0x118] sm:$0xff]  ;;  %v3176_v7 = vpack.c.bf16 %v589_v0, %v588_v63  ;;  %v612_v59 = vld [vmem:[%s5152_s1 + $0x1160] sm:$0xff] }
  0xe7   :  { %3139 = vmatpush3.bf16.msra.mxu1 %v3138_v11  ;;  %1753 = vmatprep.mubr.f32.mxu1 %v51_v24  ;;  %v516_v11 = vld [vmem:[%s5152_s1 + $0xe60] sm:$0xff]  ;;  %v53_v3 = vld [vmem:[%s5153_s0 + $0x108] sm:$0xff]  ;;  %v598_v63 = vld [vmem:[%s5152_s1 + $0x10f0] sm:$0xff] }
  0xe8   :  { %3141 = vmatprep.subr.bf16.mxu1 %v3140_v16  ;;  %v549_v16 = vld [vmem:[%s5152_s1 + $0xf68] sm:$0xff]  ;;  %v599_v0 = vld [vmem:[%s5152_s1 + $0x10f8] sm:$0xff] }
  0xe9   :  { %3111 = vmatpush3.bf16.msra.mxu0 %v3110_v23  ;;  %v567_v23 = vld [vmem:[%s5152_s1 + $0xff8] sm:$0xff]  ;;  %v3162_v28 = vpack.c.bf16 %v549_v16, %v548_v13  ;;  %v590_v13 = vld [vmem:[%s5152_s1 + $0x10b0] sm:$0xff]  ;;  %v581_v58 = vld [vmem:[%s5152_s1 + $0x1068] sm:$0xff] }
  0xea   :  { %3113 = vmatprep.subr.bf16.mxu0 %v3112_v26  ;;  %v3130_v26 = vpack.c.bf16 %v517_v12, %v516_v11  ;;  %v3164_v34 = vpack.c.bf16 %v567_v23, %v566_v22  ;;  %v605_v12 = vld [vmem:[%s5152_s1 + $0x1128] sm:$0xff]  ;;  %v623_v16 = vld [vmem:[%s5152_s1 + $0x11b8] sm:$0xff]  ;;  %v606_v22 = vld [vmem:[%s5152_s1 + $0x1130] sm:$0xff] }
  0xeb   :  { %3143 = vmatpush3.bf16.msra.mxu1 %v3142_v25 }
  0xec   :  { %3145 = vmatprep.subr.bf16.mxu1 %v3144_v30  ;;  %v518_v30 = vld [vmem:[%s5152_s1 + $0xe70] sm:$0xff] }
  0xed   :  { %3115 = vmatpush3.bf16.msra.mxu0 %v3114_v36  ;;  %v584_v36 = vld [vmem:[%s5152_s1 + $0x1080] sm:$0xff]  ;;  %v3134_v41 = vpack.c.bf16 %v519_v31, %v518_v30 }
  0xee   :  { %3117 = vmatprep.subr.bf16.mxu0 %v3116_v38  ;;  %v616_v38 = vld [vmem:[%s5152_s1 + $0x1180] sm:$0xff] }
  0xef   :  { %3147 = vmatpush3.bf16.msra.mxu1 %v3146_v37  ;;  %v585_v37 = vld [vmem:[%s5152_s1 + $0x1088] sm:$0xff]  ;;  %v3200_v47 = vpack.c.bf16 %v617_v39, %v616_v38  ;;  %v595_v38 = vld [vmem:[%s5152_s1 + $0x10d8] sm:$0xff]  ;;  %v626_v39 = vld [vmem:[%s5152_s1 + $0x11d0] sm:$0xff] }
  0xf0   :  { %3149 = vmatprep.subr.bf16.mxu1 %v3148_v42  ;;  %v3166_v42 = vpack.c.bf16 %v551_v35, %v550_v32  ;;  %v3168_v43 = vpack.c.bf16 %v585_v37, %v584_v36  ;;  %v576_v32 = vld [vmem:[%s5152_s1 + $0x1040] sm:$0xff]  ;;  %v609_v36 = vld [vmem:[%s5152_s1 + $0x1148] sm:$0xff]  ;;  %v594_v37 = vld [vmem:[%s5152_s1 + $0x10d0] sm:$0xff] }
  0xf1   :  { %3119 = vmatpush3.bf16.msra.mxu0 %v3118_v48  ;;  %v601_v48 = vld [vmem:[%s5152_s1 + $0x1108] sm:$0xff] }
  0xf2   :  { %3121 = vmatprep.subr.bf16.mxu0 %v3120_v50  ;;  %v587_v50 = vld [vmem:[%s5152_s1 + $0x1098] sm:$0xff]  ;;  %v3202_v56 = vpack.c.bf16 %v601_v48, %v600_v46 }
  0xf3   :  { %3151 = vmatpush3.bf16.msra.mxu1 %v3150_v49  ;;  %v586_v49 = vld [vmem:[%s5152_s1 + $0x1090] sm:$0xff]  ;;  %v579_v46 = vld [vmem:[%s5152_s1 + $0x1058] sm:$0xff] }
  0xf4   :  { %3153 = vmatprep.subr.bf16.mxu1 %v3152_v54  ;;  %v3170_v54 = vpack.c.bf16 %v569_v45, %v568_v44  ;;  %v3172_v57 = vpack.c.bf16 %v587_v50, %v586_v49  ;;  %v3188_v44 = vpack.c.bf16 %v595_v38, %v594_v37  ;;  %v578_v45 = vld [vmem:[%s5152_s1 + $0x1050] sm:$0xff]  ;;  %v611_v49 = vld [vmem:[%s5152_s1 + $0x1158] sm:$0xff]  ;;  %v596_v50 = vld [vmem:[%s5152_s1 + $0x10e0] sm:$0xff]  ;;  %v3247_v37 = vmov 0.0|0.0  }
  0xf5   :  { %3123 = vmatpush3.bf16.msra.mxu0 %v3122_v60  ;;  %v602_v60 = vld [vmem:[%s5152_s1 + $0x1110] sm:$0xff]  ;;  %v1900_v38 = vld [vmem:[%s5155_s3] sm:$0xff] }
  0xf6   :  { %3125 = vmatprep.subr.bf16.mxu0 %v3124_v62  ;;  %v603_v62 = vld [vmem:[%s5152_s1 + $0x1118] sm:$0xff] }
  0xf7   :  { %3155 = vmatpush3.bf16.msra.mxu1 %v3154_v61  ;;  %v2030_v14 = vpop.f32.mrb[0].mxu0  ;;  %v3204_v61 = vpack.c.bf16 %v619_v52, %v618_v51  ;;  %v3206_v6 = vpack.c.bf16 %v603_v62, %v602_v60  ;;  %v597_v51 = vld [vmem:[%s5152_s1 + $0x10e8] sm:$0xff]  ;;  %v628_v52 = vld [vmem:[%s5152_s1 + $0x11e0] sm:$0xff] }
  0xf8   :  { %3157 = vmatprep.subr.bf16.mxu1 %v3156_v2  ;;  %v2031_v20 = vpop.f32.mrb[1].mxu0  ;;  %v621_v2 = vld [vmem:[%s5152_s1 + $0x11a8] sm:$0xff] }
  0xf9   :  { %v2065_v21 = vpop.f32.mrb[0].mxu1  ;;  %v2032_v24 = vadd.f32 %v2031_v20, %v2030_v14  ;;  %3127 = vmatpush3.bf16.msra.mxu0 %v3126_v8  ;;  %v572_v8 = vld [vmem:[%s5152_s1 + $0x1020] sm:$0xff]  ;;  %v3208_v11 = vpack.c.bf16 %v621_v2, %v620_v1  ;;  %v591_v14 = vld [vmem:[%s5152_s1 + $0x10b8] sm:$0xff]  ;;  %v574_v20 = vld [vmem:[%s5152_s1 + $0x1030] sm:$0xff] }
  0xfa   :  { %v2066_v25 = vpop.f32.mrb[1].mxu1  ;;  %3129 = vmatprep.subr.bf16.mxu0 %v3128_v10  ;;  %v604_v10 = vld [vmem:[%s5152_s1 + $0x1120] sm:$0xff]  ;;  %v613_v62 = vld [vmem:[%s5152_s1 + $0x1168] sm:$0xff] }
  0xfb   :  { %v2067_v27 = vadd.f32 %v2066_v25, %v2065_v21  ;;  %3159 = vmatpush3.bf16.msra.mxu1 %v3158_v9  ;;  %v706_v33 = vadd.f32 %v2032_v24, %v1995_v19  ;;  %v573_v9 = vld [vmem:[%s5152_s1 + $0x1028] sm:$0xff]  ;;  %v3210_v18 = vpack.c.bf16 %v605_v12, %v604_v10  ;;  %v3180_v19 = vpack.c.bf16 %v591_v14, %v590_v13  ;;  %v575_v21 = vld [vmem:[%s5152_s1 + $0x1038] sm:$0xff]  ;;  %v592_v25 = vld [vmem:[%s5152_s1 + $0x10c0] sm:$0xff] }
  0xfc   :  { %3161 = vmatprep.subr.bf16.mxu1 %v3160_v15  ;;  %v622_v15 = vld [vmem:[%s5152_s1 + $0x11b0] sm:$0xff]  ;;  %v3178_v17 = vpack.c.bf16 %v573_v9, %v572_v8  ;;  %v607_v24 = vld [vmem:[%s5152_s1 + $0x1138] sm:$0xff]  ;;  %v3226_v9 = vpack.c.bf16 %v613_v62, %v612_v59  ;;  %v3196_v10 = vpack.c.bf16 %v599_v0, %v598_v63  ;;  %v3249_v59 = vmov 0.0  }
  0xfd   :  { %v4921_v40 = vadd.f32 %v2067_v27, %v706_v33  ;;  %3131 = vmatpush3.bf16.msra.mxu0 %v3130_v26  ;;  %v3212_v23 = vpack.c.bf16 %v623_v16, %v622_v15  ;;  %v593_v26 = vld [vmem:[%s5152_s1 + $0x10c8] sm:$0xff]  ;;  %v624_v27 = vld [vmem:[%s5152_s1 + $0x11c0] sm:$0xff]  ;;  %v3214_v30 = vpack.c.bf16 %v607_v24, %v606_v22  ;;  %v583_v12 = vld [vmem:[%s5152_s1 + $0x1078] sm:$0xff] }
  0xfe   :  { %3133 = vmatprep.subr.bf16.mxu0 %v3132_v29  ;;  %v3182_v29 = vpack.c.bf16 %v575_v21, %v574_v20  ;;  %v3184_v31 = vpack.c.bf16 %v593_v26, %v592_v25  ;;  %v577_v33 = vld [vmem:[%s5152_s1 + $0x1048] sm:$0xff]  ;;  %v614_v15 = vld [vmem:[%s5152_s1 + $0x1170] sm:$0xff]  ;;  %v615_v16 = vld [vmem:[%s5152_s1 + $0x1178] sm:$0xff] }
  0xff   :  { %3163 = vmatpush3.bf16.msra.mxu1 %v3162_v28  ;;  %v625_v28 = vld [vmem:[%s5152_s1 + $0x11c8] sm:$0xff]  ;;  %v54_v20 = vld [vmem:[%s5153_s0 + $0x110] sm:$0xff] }
 0x100   :  { %3165 = vmatprep.subr.bf16.mxu1 %v3164_v34  ;;  %v608_v34 = vld [vmem:[%s5152_s1 + $0x1140] sm:$0xff]  ;;  %v3216_v35 = vpack.c.bf16 %v625_v28, %v624_v27 }
 0x101   :  { %3135 = vmatpush3.bf16.msra.mxu0 %v3134_v41  ;;  %v627_v41 = vld [vmem:[%s5152_s1 + $0x11d8] sm:$0xff] }
 0x102   :  { %3169 = vmatprep.subr.bf16.mxu0 %v3168_v43  ;;  %v3218_v43 = vpack.c.bf16 %v609_v36, %v608_v34  ;;  %v3220_v48 = vpack.c.bf16 %v627_v41, %v626_v39  ;;  %v1901_v39 = vld [vmem:[%s5155_s3 + $0x8] sm:$0xff]  ;;  %v1902_v41 = vld [vmem:[%s5155_s3 + $0x10] sm:$0xff] }
 0x103   :  { %3167 = vmatpush3.bf16.msra.mxu1 %v3166_v42  ;;  %v3186_v42 = vpack.c.bf16 %v577_v33, %v576_v32 }
 0x104   :  { %3201 = vmatprep.subr.bf16.mxu1 %v3200_v47  ;;  %1684 = vmatmul.mubr.f32.vlgmr.msra.gmra.mrb[14].mxu0 %v48_v53  ;;  %v610_v47 = vld [vmem:[%s5152_s1 + $0x1150] sm:$0xff]  ;;  %v629_v53 = vld [vmem:[%s5152_s1 + $0x11e8] sm:$0xff] }
 0x105   :  { %3171 = vmatpush3.bf16.msra.mxu0 %v3170_v54  ;;  %1823 = vmatprep.mubr.f32.mxu0 %v53_v3  ;;  %v3190_v54 = vpack.c.bf16 %v579_v46, %v578_v45  ;;  %v630_v3 = vld [vmem:[%s5152_s1 + $0x11f0] sm:$0xff]  ;;  %v1904_v46 = vld [vmem:[%s5155_s3 + $0x20] sm:$0xff] }
 0x106   :  { %1754 = vmatmul.mubr.f32.vlgmr.msra.gmra.mrb[14].mxu1 %v50_v55  ;;  %3173 = vmatprep.subr.bf16.mxu0 %v3172_v57  ;;  %v3222_v55 = vpack.c.bf16 %v611_v49, %v610_v47  ;;  %v580_v57 = vld [vmem:[%s5152_s1 + $0x1060] sm:$0xff]  ;;  %v1905_v47 = vld [vmem:[%s5155_s3 + $0x28] sm:$0xff] }
 0x107   :  { %3203 = vmatpush3.bf16.msra.mxu1 %v3202_v56  ;;  %1893 = vmatprep.mubr.f32.mxu1 %v55_v5  ;;  %v3192_v56 = vpack.c.bf16 %v597_v51, %v596_v50  ;;  %v3239_v50 = vpack.c.bf16 %v1905_v47, %v1904_v46 }
 0x108   :  { %3205 = vmatprep.subr.bf16.mxu1 %v3204_v61  ;;  %v3224_v61 = vpack.c.bf16 %v629_v53, %v628_v52 }
 0x109   :  { %3175 = vmatpush3.bf16.msra.mxu0 %v3174_v4  ;;  %v631_v4 = vld [vmem:[%s5152_s1 + $0x11f8] sm:$0xff] }
 0x10a   :  { %3177 = vmatprep.subr.bf16.mxu0 %v3176_v7  ;;  %v3194_v7 = vpack.c.bf16 %v581_v58, %v580_v57  ;;  %v3228_v14 = vpack.c.bf16 %v631_v4, %v630_v3 }
 0x10b   :  { %3207 = vmatpush3.bf16.msra.mxu1 %v3206_v6 }
 0x10c   :  { %3209 = vmatprep.subr.bf16.mxu1 %v3208_v11  ;;  %v582_v11 = vld [vmem:[%s5152_s1 + $0x1070] sm:$0xff] }
 0x10d   :  { %3179 = vmatpush3.bf16.msra.mxu0 %v3178_v17 }
 0x10e   :  { %3181 = vmatprep.subr.bf16.mxu0 %v3180_v19  ;;  %v3230_v19 = vpack.c.bf16 %v615_v16, %v614_v15 }
 0x10f   :  { %3211 = vmatpush3.bf16.msra.mxu1 %v3210_v18  ;;  %v3198_v18 = vpack.c.bf16 %v583_v12, %v582_v11 }
 0x110   :  { %3213 = vmatprep.subr.bf16.mxu1 %v3212_v23 }
 0x111   :  { %3183 = vmatpush3.bf16.msra.mxu0 %v3182_v29 }
 0x112   :  { %3185 = vmatprep.subr.bf16.mxu0 %v3184_v31 }
 0x113   :  { %3215 = vmatpush3.bf16.msra.mxu1 %v3214_v30 }
 0x114   :  { %3217 = vmatprep.subr.bf16.mxu1 %v3216_v35 }
 0x115   :  { %3187 = vmatpush3.bf16.msra.mxu0 %v3186_v42  ;;  %v3233_v42 = vpack.c.bf16 %v1901_v39, %v1900_v38 }
 0x116   :  { %3189 = vmatprep.subr.bf16.mxu0 %v3188_v44 }
 0x117   :  { %3219 = vmatpush3.bf16.msra.mxu1 %v3218_v43  ;;  %v2100_v60 = vpop.f32.mrb[2].mxu0  ;;  %v1903_v43 = vld [vmem:[%s5155_s3 + $0x18] sm:$0xff] }
 0x118   :  { %3221 = vmatprep.subr.bf16.mxu1 %v3220_v48  ;;  %v2101_v1 = vpop.f32.mrb[3].mxu0  ;;  %v3236_v44 = vpack.c.bf16 %v1903_v43, %v1902_v41 }
 0x119   :  { %v2135_v2 = vpop.f32.mrb[2].mxu1  ;;  %v2102_v5 = vadd.f32 %v2101_v1, %v2100_v60  ;;  %3191 = vmatpush3.bf16.msra.mxu0 %v3190_v54 }
 0x11a   :  { %v2136_v6 = vpop.f32.mrb[3].mxu1  ;;  %3193 = vmatprep.subr.bf16.mxu0 %v3192_v56  ;;  %v1907_v56 = vld [vmem:[%s5155_s3 + $0x38] sm:$0xff] }
 0x11b   :  { %v2137_v8 = vadd.f32 %v2136_v6, %v2135_v2  ;;  %3223 = vmatpush3.bf16.msra.mxu1 %v3222_v55  ;;  %v846_v13 = vadd.f32 %v2102_v5, %v4921_v40  ;;  %v52_v40 = vld [vmem:[%s5153_s0 + $0x100] sm:$0xff]  ;;  %v1906_v55 = vld [vmem:[%s5155_s3 + $0x30] sm:$0xff] }
 0x11c   :  { %3225 = vmatprep.subr.bf16.mxu1 %v3224_v61  ;;  %v3242_v57 = vpack.c.bf16 %v1907_v56, %v1906_v55 }
 0x11d   :  { %v916_v17 = vadd.f32 %v2137_v8, %v846_v13  ;;  %3195 = vmatpush3.bf16.msra.mxu0 %v3194_v7 }
 0x11e   :  { %3197 = vmatprep.subr.bf16.mxu0 %v3196_v10 }
 0x11f   :  { %3227 = vmatpush3.bf16.msra.mxu1 %v3226_v9 }
 0x120   :  { %3229 = vmatprep.subr.bf16.mxu1 %v3228_v14 }
 0x121   :  { %3199 = vmatpush3.bf16.msra.mxu0 %v3198_v18 }
 0x122   :  { %3232 = vmatprep.subr.bf16.mxu0 %v3247_v37 }
 0x123   :  { %3231 = vmatpush3.bf16.msra.mxu1 %v3230_v19 }
 0x124   :  { %1824 = vmatmul.mubr.f32.vlgmr.msra.gmra.mrb[16].mxu0 %v52_v40 }
 0x125   :  { %3234 = vmatpush3.bf16.msra.mxu0 %v3233_v42  ;;  %2653 = vmatprep.mubr.msk.f32.mxu0 %vm3248_vm0, %v3249_v59 }
 0x126   :  { %1894 = vmatmul.mubr.f32.vlgmr.msra.gmra.mrb[16].mxu1 %v54_v20  ;;  %3235 = vmatprep.subr.bf16.mxu0 %v3247_v37 }
 0x129   :  { %3237 = vmatpush3.bf16.msra.mxu0 %v3236_v44 }
 0x12a   :  { %3238 = vmatprep.subr.bf16.mxu0 %v3247_v37 }
 0x12d   :  { %3240 = vmatpush3.bf16.msra.mxu0 %v3239_v50 }
 0x12e   :  { %3241 = vmatprep.subr.bf16.mxu0 %v3247_v37 }
 0x131   :  { %3243 = vmatpush3.bf16.msra.mxu0 %v3242_v57 }
 0x137   :  { %v2170_v21 = vpop.f32.mrb[4].mxu0 }
 0x138   :  { %v2171_v22 = vpop.f32.mrb[5].mxu0 }
 0x139   :  { %v2205_v23 = vpop.f32.mrb[4].mxu1  ;;  %v2172_v24 = vadd.f32 %v2171_v22, %v2170_v21 }
 0x13a   :  { %v2206_v25 = vpop.f32.mrb[5].mxu1 }
 0x13b   :  { %v2207_v26 = vadd.f32 %v2206_v25, %v2205_v23  ;;  %v986_v27 = vadd.f32 %v2172_v24, %v916_v17 }
 0x13d   :  { %v1056_v28 = vadd.f32 %v2207_v26, %v986_v27 }
 0x157   :  { %v2240_v29 = vpop.f32.mrb[6].mxu0 }
 0x158   :  { %v2241_v30 = vpop.f32.mrb[7].mxu0 }
 0x159   :  { %v2275_v31 = vpop.f32.mrb[6].mxu1  ;;  %v2242_v32 = vadd.f32 %v2241_v30, %v2240_v29 }
 0x15a   :  { %v2276_v33 = vpop.f32.mrb[7].mxu1 }
 0x15b   :  { %v2277_v34 = vadd.f32 %v2276_v33, %v2275_v31  ;;  %v1126_v35 = vadd.f32 %v2242_v32, %v1056_v28  ;;  %v1996_v28 = vld [vmem:[%s5156_s4] ss:$0 sm:$0xff] }
 0x15d   :  { %v1196_v36 = vadd.f32 %v2277_v34, %v1126_v35 }
 0x177   :  { %v2310_v45 = vpop.f32.mrb[8].mxu0 }
 0x178   :  { %v2311_v48 = vpop.f32.mrb[9].mxu0 }
 0x179   :  { %v2345_v49 = vpop.f32.mrb[8].mxu1  ;;  %v2312_v51 = vadd.f32 %v2311_v48, %v2310_v45 }
 0x17a   :  { %v2346_v52 = vpop.f32.mrb[9].mxu1 }
 0x17b   :  { %v2347_v53 = vadd.f32 %v2346_v52, %v2345_v49  ;;  %v1266_v54 = vadd.f32 %v2312_v51, %v1196_v36 }
 0x17d   :  { %v1336_v58 = vadd.f32 %v2347_v53, %v1266_v54 }
 0x197   :  { %v2380_v60 = vpop.f32.mrb[10].mxu0 }
 0x198   :  { %v2381_v61 = vpop.f32.mrb[11].mxu0 }
 0x199   :  { %v2415_v62 = vpop.f32.mrb[10].mxu1  ;;  %v2382_v63 = vadd.f32 %v2381_v61, %v2380_v60 }
 0x19a   :  { %v2416_v0 = vpop.f32.mrb[11].mxu1 }
 0x19b   :  { %v2417_v1 = vadd.f32 %v2416_v0, %v2415_v62  ;;  %v1406_v2 = vadd.f32 %v2382_v63, %v1336_v58 }
 0x19d   :  { %v1476_v3 = vadd.f32 %v2417_v1, %v1406_v2 }
 0x1b7   :  { %v2450_v4 = vpop.f32.mrb[12].mxu0 }
 0x1b8   :  { %v2451_v5 = vpop.f32.mrb[13].mxu0 }
 0x1b9   :  { %v2485_v6 = vpop.f32.mrb[12].mxu1  ;;  %v2452_v7 = vadd.f32 %v2451_v5, %v2450_v4 }
 0x1ba   :  { %v2486_v8 = vpop.f32.mrb[13].mxu1 }
 0x1bb   :  { %v2487_v9 = vadd.f32 %v2486_v8, %v2485_v6  ;;  %v1546_v10 = vadd.f32 %v2452_v7, %v1476_v3 }
 0x1bd   :  { %v1616_v11 = vadd.f32 %v2487_v9, %v1546_v10 }
 0x1d7   :  { %v2520_v12 = vpop.f32.mrb[14].mxu0 }
 0x1d8   :  { %v2521_v13 = vpop.f32.mrb[15].mxu0 }
 0x1d9   :  { %v2555_v14 = vpop.f32.mrb[14].mxu1  ;;  %v2522_v15 = vadd.f32 %v2521_v13, %v2520_v12 }
 0x1da   :  { %v2556_v16 = vpop.f32.mrb[15].mxu1 }
 0x1db   :  { %v2557_v17 = vadd.f32 %v2556_v16, %v2555_v14  ;;  %v1686_v18 = vadd.f32 %v2522_v15, %v1616_v11 }
 0x1dd   :  { %v1756_v19 = vadd.f32 %v2557_v17, %v1686_v18 }
 0x1f7   :  { %v2590_v40 = vpop.f32.mrb[16].mxu0 }
 0x1f8   :  { %v2591_v20 = vpop.f32.mrb[17].mxu0 }
 0x1f9   :  { %v2625_v21 = vpop.f32.mrb[16].mxu1  ;;  %v2592_v22 = vadd.f32 %v2591_v20, %v2590_v40 }
 0x1fa   :  { %v2626_v23 = vpop.f32.mrb[17].mxu1 }
 0x1fb   :  { %v2627_v24 = vadd.f32 %v2626_v23, %v2625_v21  ;;  %v1826_v25 = vadd.f32 %v2592_v22, %v1756_v19 }
 0x1fd   :  { %v1896_v26 = vadd.f32 %v2627_v24, %v1826_v25 }
 0x1ff   :  { %v1899_v27 = vmax.f32 %v1896_v26, 0.0 }
 0x201   :  { %2654 = vmatmul.mubr.msk.f32.vlgmr.msra.gmra.mrb[18].mxu0 %vm1915_vm1, %v1899_v27 }
 0x2d4   :  { %v1985_v29 = vpop.f32.mrb[18].mxu0 }
 0x2d5   :  { %v1986_v30 = vadd.f32 %v1996_v28, %v1985_v29  ;;  %v2655_v31 = vpop.f32.mrb[19].mxu0 }
 0x2d7   :  { %1990 = vst.msk [vmem:[%s5157_s5] sm:$0xff] %vm1989_vm2, %v1986_v30 }

</bundles_post_ra>
